<compile_context>
chip_gen: v7x
topology: tpu7x:2x2x1
jax: 0.10.0
libtpu: 0.0.40
codegen_flags: <defaults>
</compile_context>

<pallas_src>
import functools

import jax
import jax.numpy as jnp
from jax import lax
from jax.experimental import pallas as pl
from jax.experimental.pallas import tpu as pltpu


def _round_up(x, m):
    return (x + m - 1) // m * m


# ---------------------------------------------------------------------------
# Row-tiled fused  (x @ W + b) [+ ReLU]  -- used for both conv stages (im2col).
# ---------------------------------------------------------------------------
def _linear_act_kernel(x_ref, w_ref, b_ref, o_ref, *, apply_relu):
    y = jnp.dot(x_ref[...], w_ref[...], preferred_element_type=jnp.float32)
    y = y + b_ref[...]
    if apply_relu:
        y = jnp.maximum(y, 0.0)
    o_ref[...] = y.astype(o_ref.dtype)


def linear_act(x, w, b, *, relu, tile_m=512):
    """x: (M, K), w: (K, N), b: (N,) -> (M, N) f32. Row-tiled, pipelined."""
    x = x.astype(jnp.float32)
    M, K = x.shape
    Kw, N = w.shape
    assert K == Kw, (K, Kw)
    Mp = _round_up(M, tile_m)
    if Mp != M:
        x = jnp.pad(x, ((0, Mp - M), (0, 0)))      # zero rows, sliced off below
    w = w.astype(jnp.float32)
    b2d = b.reshape(1, N).astype(jnp.float32)

    out = pl.pallas_call(
        functools.partial(_linear_act_kernel, apply_relu=relu),
        out_shape=jax.ShapeDtypeStruct((Mp, N), jnp.float32),
        grid=(Mp // tile_m,),
        in_specs=[
            pl.BlockSpec((tile_m, K), lambda i: (i, 0)),  # row tile (pipelined)
            pl.BlockSpec((K, N), lambda i: (0, 0)),       # weights VMEM-resident
            pl.BlockSpec((1, N), lambda i: (0, 0)),       # bias    VMEM-resident
        ],
        out_specs=pl.BlockSpec((tile_m, N), lambda i: (i, 0)),
        compiler_params=pltpu.CompilerParams(
            dimension_semantics=("parallel",)),
        cost_estimate=pl.CostEstimate(
            flops=2 * Mp * K * N,
            transcendentals=0,
            bytes_accessed=4 * (Mp * K + K * N + Mp * N)),
    )(x, w, b2d)
    return out[:M]


# ---------------------------------------------------------------------------
# Fused fc1 + ReLU + fc2 head, K-tiled with a VMEM accumulator.
# ---------------------------------------------------------------------------
def _mlp_head_kernel(x_ref, w1_ref, b1_ref, w2_ref, b2_ref, o_ref, acc_ref):
    k = pl.program_id(1)

    @pl.when(k == 0)
    def _():
        acc_ref[...] = jnp.zeros_like(acc_ref)

    acc_ref[...] += jnp.dot(x_ref[...], w1_ref[...],
                            preferred_element_type=jnp.float32)

    @pl.when(k == pl.num_programs(1) - 1)
    def _():
        h = jnp.maximum(acc_ref[...] + b1_ref[...], 0.0)          # fc1 + ReLU
        o_ref[...] = (jnp.dot(h, w2_ref[...],
                              preferred_element_type=jnp.float32)
                      + b2_ref[...]).astype(o_ref.dtype)          # fc2


def mlp_head(x, w1, b1, w2, b2, *, tile_k=2048):
    """x: (B, K); w1: (K, H); b1: (H,); w2: (H, O); b2: (O,) -> (B, O)."""
    x = x.astype(jnp.float32)
    B, K = x.shape
    Kw, H = w1.shape
    Hw, O = w2.shape
    assert K == Kw and H == Hw

    TB = min(128, _round_up(B, 8))           # batch-row tile
    Bp = _round_up(B, TB)
    Kp = _round_up(K, tile_k)
    NO = _round_up(O, 128)                   # lane-dense output (pad 2 -> 128)

    x_p = jnp.pad(x, ((0, Bp - B), (0, Kp - K)))
    w1_p = jnp.pad(w1.astype(jnp.float32), ((0, Kp - K), (0, 0)))
    w2_p = jnp.pad(w2.astype(jnp.float32), ((0, 0), (0, NO - O)))
    b1r = b1.reshape(1, H).astype(jnp.float32)
    b2r = jnp.pad(b2.reshape(1, O).astype(jnp.float32), ((0, 0), (0, NO - O)))

    nb, nk = Bp // TB, Kp // tile_k
    out = pl.pallas_call(
        _mlp_head_kernel,
        out_shape=jax.ShapeDtypeStruct((Bp, NO), jnp.float32),
        grid=(nb, nk),                       # reduction axis last
        in_specs=[
            pl.BlockSpec((TB, tile_k), lambda b, k: (b, k)),
            pl.BlockSpec((tile_k, H), lambda b, k: (k, 0)),
            pl.BlockSpec((1, H), lambda b, k: (0, 0)),
            pl.BlockSpec((H, NO), lambda b, k: (0, 0)),
            pl.BlockSpec((1, NO), lambda b, k: (0, 0)),
        ],
        out_specs=pl.BlockSpec((TB, NO), lambda b, k: (b, 0)),
        scratch_shapes=[pltpu.VMEM((TB, H), jnp.float32)],
        compiler_params=pltpu.CompilerParams(
            dimension_semantics=("parallel", "arbitrary")),
        cost_estimate=pl.CostEstimate(
            flops=2 * Bp * Kp * H + 2 * Bp * H * NO,
            transcendentals=0,
            bytes_accessed=4 * (Bp * Kp + Kp * H + Bp * NO + H * NO)),
    )(x_p, w1_p, b1r, w2_p, b2r)
    return out[:B, :O]


# ---------------------------------------------------------------------------
# Model wrapper
# ---------------------------------------------------------------------------
def _im2col(img, kh, kw):
    """img: (B, H, W, C) -> (B, H-kh+1, W-kw+1, kh*kw*C); col = (di*kw+dj)*C + c."""
    B, H, W, C = img.shape
    oh, ow = H - kh + 1, W - kw + 1
    cols = []
    for di in range(kh):
        for dj in range(kw):
            cols.append(img[:, di:di + oh, dj:dj + ow, :])
    return jnp.concatenate(cols, axis=-1)


def nopool_cnn1_forward(x, params):
    """x: (B, 1, 50, 50) -> (B, 2), matching NoPoolCNN1.forward."""
    w1, b1, w2, b2, wf1, bf1, wf2, bf2 = params
    B = x.shape[0]
    x = x.astype(jnp.float32)

    # TODO(synk): im2col patch extraction stays in the XLA wrapper (pure layout
    # plumbing); doing it in-kernel needs (H,W,C)->(H*W,C) relayout-heavy
    # reshapes Mosaic handles poorly. All matmul/bias/ReLU FLOPs run in Pallas.

    # conv1 (1 -> 32, 3x3, valid) + ReLU as im2col matmul.
    img = x.reshape(B, x.shape[2], x.shape[3], 1)                   # NHWC, C=1
    p1 = _im2col(img, 3, 3)                                         # (B, 48, 48, 9)
    oh1, ow1 = p1.shape[1], p1.shape[2]
    w1r = w1.reshape(w1.shape[0], -1).T                             # (9, 32)
    h1 = linear_act(p1.reshape(B * oh1 * ow1, p1.shape[3]), w1r, b1, relu=True)
    h1 = h1.reshape(B, oh1, ow1, w1.shape[0])                       # (B, 48, 48, 32)

    # conv2 (32 -> 16, 3x3, valid) + ReLU as im2col matmul.
    p2 = _im2col(h1, 3, 3)                                          # (B, 46, 46, 288)
    oh2, ow2 = p2.shape[1], p2.shape[2]
    w2r = jnp.transpose(w2, (2, 3, 1, 0)).reshape(-1, w2.shape[0])  # (288, 16)
    h2 = linear_act(p2.reshape(B * oh2 * ow2, p2.shape[3]), w2r, b2, relu=True)
    h2 = h2.reshape(B, oh2, ow2, w2.shape[0])                       # (B, 46, 46, 16)

    # Flatten exactly like PyTorch's x.view(B, -1) on NCHW activations.
    flat = jnp.transpose(h2, (0, 3, 1, 2)).reshape(B, -1)           # (B, 33856)

    # fc1 + ReLU + fc2 fused, K-tiled.
    return mlp_head(flat, wf1, bf1, wf2, bf2)


# ---------------------------------------------------------------------------
# Params, reference, driver
# ---------------------------------------------------------------------------
def init_params(key):
    """nn.Conv2d / nn.Linear style U(-1/sqrt(fan_in), +1/sqrt(fan_in)) init.

    Conv weights in PyTorch (O, I, kh, kw) layout; Linear weights stored
    already transposed, i.e. (in_features, out_features).
    """
    ks = jax.random.split(key, 8)

    def u(k, shape, fan_in):
        bound = 1.0 / float(jnp.sqrt(fan_in))
        return jax.random.uniform(k, shape, jnp.float32, -bound, bound)

    w1 = u(ks[0], (32, 1, 3, 3), 9.0);       b1 = u(ks[1], (32,), 9.0)
    w2 = u(ks[2], (16, 32, 3, 3), 288.0);    b2 = u(ks[3], (16,), 288.0)
    wf1 = u(ks[4], (33856, 128), 33856.0);   bf1 = u(ks[5], (128,), 33856.0)
    wf2 = u(ks[6], (128, 2), 128.0);         bf2 = u(ks[7], (2,), 128.0)
    return w1, b1, w2, b2, wf1, bf1, wf2, bf2


def reference_forward(x, params):
    """Pure-JAX/XLA reference mirroring the PyTorch module exactly."""
    w1, b1, w2, b2, wf1, bf1, wf2, bf2 = params
    dn = ("NCHW", "OIHW", "NCHW")
    y = lax.conv_general_dilated(x, w1, (1, 1), "VALID", dimension_numbers=dn)
    y = jnp.maximum(y + b1.reshape(1, -1, 1, 1), 0.0)
    y = lax.conv_general_dilated(y, w2, (1, 1), "VALID", dimension_numbers=dn)
    y = jnp.maximum(y + b2.reshape(1, -1, 1, 1), 0.0)
    y = y.reshape(y.shape[0], -1)            # NCHW flatten == PyTorch .view
    y = jnp.maximum(y @ wf1 + bf1, 0.0)
    return y @ wf2 + bf2


if __name__ == "__main__":
    key = jax.random.PRNGKey(0)
    kx, kp = jax.random.split(key)

    B = 2                      # fc1 in_features=33856 fixes spatial size at 50x50
    x = jax.random.normal(kx, (B, 1, 50, 50), jnp.float32)
    params = init_params(kp)

    fwd = jax.jit(nopool_cnn1_forward)
    out = jax.block_until_ready(fwd(x, params))

    ref = reference_forward(x, params)
    assert out.shape == (B, 2), out.shape
    assert jnp.allclose(out, ref, atol=1e-3, rtol=1e-3), (
        "mismatch vs reference", float(jnp.max(jnp.abs(out - ref))))

    print("KERNEL_OK")
</pallas_src>

<mosaic_0001>
module attributes {stable_mosaic.version = 11 : i64} {
  func.func @_linear_act_kernel(%arg0: i32, %arg1: memref<512x9xf32, #tpu.memory_space<vmem>>, %arg2: memref<9x32xf32, #tpu.memory_space<vmem>>, %arg3: memref<1x32xf32, #tpu.memory_space<vmem>>, %arg4: memref<512x32xf32, #tpu.memory_space<vmem>>) attributes {dimension_semantics = [#tpu.dimension_semantics<parallel>], iteration_bounds = array<i64: 9>, scalar_prefetch = 0 : i64, scratch_operands = 0 : i64, tpu.core_type = #tpu.core_type<tc>, window_params = [{transform_indices = @transform_0, window_bounds = array<i64: 512, 9>}, {pipeline_mode = #tpu.pipeline_mode<synchronous>, transform_indices = @transform_1, window_bounds = array<i64: 9, 32>}, {pipeline_mode = #tpu.pipeline_mode<synchronous>, transform_indices = @transform_2, window_bounds = array<i64: 1, 32>}, {transform_indices = @transform_3, window_bounds = array<i64: 512, 32>}]} {
    %c0 = arith.constant 0 : index
    %c0_0 = arith.constant 0 : index
    %0 = vector.load %arg1[%c0, %c0_0] : memref<512x9xf32, #tpu.memory_space<vmem>>, vector<512x9xf32>
    %c0_1 = arith.constant 0 : index
    %c0_2 = arith.constant 0 : index
    %1 = vector.load %arg2[%c0_1, %c0_2] : memref<9x32xf32, #tpu.memory_space<vmem>>, vector<9x32xf32>
    %cst = arith.constant dense<0.000000e+00> : vector<512x32xf32>
    %2 = tpu.matmul %0, %1, %cst {dimension_numbers = #tpu.dot_dimension_numbers<[1], [0], [0], [1], [0, 0, 1, 1], [], []>} : vector<512x9xf32>, vector<9x32xf32>, vector<512x32xf32> -> vector<512x32xf32>
    %c0_3 = arith.constant 0 : index
    %c0_4 = arith.constant 0 : index
    %3 = vector.load %arg3[%c0_3, %c0_4] : memref<1x32xf32, #tpu.memory_space<vmem>>, vector<1x32xf32>
    %4 = vector.broadcast %3 : vector<1x32xf32> to vector<512x32xf32>
    %5 = arith.addf %2, %4 : vector<512x32xf32>
    %cst_5 = arith.constant 0.000000e+00 : f32
    %6 = vector.broadcast %cst_5 : f32 to vector<512x32xf32>
    %7 = arith.maximumf %5, %6 : vector<512x32xf32>
    %c0_6 = arith.constant 0 : index
    %c0_7 = arith.constant 0 : index
    %8 = vector.load %arg4[%c0_6, %c0_7] : memref<512x32xf32, #tpu.memory_space<vmem>>, vector<512x32xf32>
    tpu.vector_store %arg4[%c0_6, %c0_7], %7 {strides = array<i32>} : memref<512x32xf32, #tpu.memory_space<vmem>>, vector<512x32xf32>,
    return
  }
  func.func @transform_0(%arg0: i32) -> (i32, i32) {
    %c0_i32 = arith.constant 0 : i32
    %c0_i32_0 = arith.constant 0 : i32
    return %arg0, %c0_i32 : i32, i32
  }
  func.func @transform_1(%arg0: i32) -> (i32, i32) {
    %c0_i32 = arith.constant 0 : i32
    %c0_i32_0 = arith.constant 0 : i32
    %c0_i32_1 = arith.constant 0 : i32
    return %c0_i32, %c0_i32_0 : i32, i32
  }
  func.func @transform_2(%arg0: i32) -> (i32, i32) {
    %c0_i32 = arith.constant 0 : i32
    %c0_i32_0 = arith.constant 0 : i32
    %c0_i32_1 = arith.constant 0 : i32
    return %c0_i32, %c0_i32_0 : i32, i32
  }
  func.func @transform_3(%arg0: i32) -> (i32, i32) {
    %c0_i32 = arith.constant 0 : i32
    %c0_i32_0 = arith.constant 0 : i32
    return %arg0, %c0_i32 : i32, i32
  }
}

module attributes {stable_mosaic.version = 11 : i64} {
  func.func @_linear_act_kernel(%arg0: i32, %arg1: memref<512x288xf32, #tpu.memory_space<vmem>>, %arg2: memref<288x16xf32, #tpu.memory_space<vmem>>, %arg3: memref<1x16xf32, #tpu.memory_space<vmem>>, %arg4: memref<512x16xf32, #tpu.memory_space<vmem>>) attributes {dimension_semantics = [#tpu.dimension_semantics<parallel>], iteration_bounds = array<i64: 9>, scalar_prefetch = 0 : i64, scratch_operands = 0 : i64, tpu.core_type = #tpu.core_type<tc>, window_params = [{transform_indices = @transform_0, window_bounds = array<i64: 512, 288>}, {pipeline_mode = #tpu.pipeline_mode<synchronous>, transform_indices = @transform_1, window_bounds = array<i64: 288, 16>}, {pipeline_mode = #tpu.pipeline_mode<synchronous>, transform_indices = @transform_2, window_bounds = array<i64: 1, 16>}, {transform_indices = @transform_3, window_bounds = array<i64: 512, 16>}]} {
    %c0 = arith.constant 0 : index
    %c0_0 = arith.constant 0 : index
    %0 = vector.load %arg1[%c0, %c0_0] : memref<512x288xf32, #tpu.memory_space<vmem>>, vector<512x288xf32>
    %c0_1 = arith.constant 0 : index
    %c0_2 = arith.constant 0 : index
    %1 = vector.load %arg2[%c0_1, %c0_2] : memref<288x16xf32, #tpu.memory_space<vmem>>, vector<288x16xf32>
    %cst = arith.constant dense<0.000000e+00> : vector<512x16xf32>
    %2 = tpu.matmul %0, %1, %cst {dimension_numbers = #tpu.dot_dimension_numbers<[1], [0], [0], [1], [0, 0, 1, 1], [], []>} : vector<512x288xf32>, vector<288x16xf32>, vector<512x16xf32> -> vector<512x16xf32>
    %c0_3 = arith.constant 0 : index
    %c0_4 = arith.constant 0 : index
    %3 = vector.load %arg3[%c0_3, %c0_4] : memref<1x16xf32, #tpu.memory_space<vmem>>, vector<1x16xf32>
    %4 = vector.broadcast %3 : vector<1x16xf32> to vector<512x16xf32>
    %5 = arith.addf %2, %4 : vector<512x16xf32>
    %cst_5 = arith.constant 0.000000e+00 : f32
    %6 = vector.broadcast %cst_5 : f32 to vector<512x16xf32>
    %7 = arith.maximumf %5, %6 : vector<512x16xf32>
    %c0_6 = arith.constant 0 : index
    %c0_7 = arith.constant 0 : index
    %8 = vector.load %arg4[%c0_6, %c0_7] : memref<512x16xf32, #tpu.memory_space<vmem>>, vector<512x16xf32>
    tpu.vector_store %arg4[%c0_6, %c0_7], %7 {strides = array<i32>} : memref<512x16xf32, #tpu.memory_space<vmem>>, vector<512x16xf32>,
    return
  }
  func.func @transform_0(%arg0: i32) -> (i32, i32) {
    %c0_i32 = arith.constant 0 : i32
    %c0_i32_0 = arith.constant 0 : i32
    return %arg0, %c0_i32 : i32, i32
  }
  func.func @transform_1(%arg0: i32) -> (i32, i32) {
    %c0_i32 = arith.constant 0 : i32
    %c0_i32_0 = arith.constant 0 : i32
    %c0_i32_1 = arith.constant 0 : i32
    return %c0_i32, %c0_i32_0 : i32, i32
  }
  func.func @transform_2(%arg0: i32) -> (i32, i32) {
    %c0_i32 = arith.constant 0 : i32
    %c0_i32_0 = arith.constant 0 : i32
    %c0_i32_1 = arith.constant 0 : i32
    return %c0_i32, %c0_i32_0 : i32, i32
  }
  func.func @transform_3(%arg0: i32) -> (i32, i32) {
    %c0_i32 = arith.constant 0 : i32
    %c0_i32_0 = arith.constant 0 : i32
    return %arg0, %c0_i32 : i32, i32
  }
}

module attributes {stable_mosaic.version = 11 : i64} {
  func.func @_mlp_head_kernel(%arg0: i32, %arg1: i32, %arg2: memref<8x2048xf32, #tpu.memory_space<vmem>>, %arg3: memref<2048x128xf32, #tpu.memory_space<vmem>>, %arg4: memref<1x128xf32, #tpu.memory_space<vmem>>, %arg5: memref<128x128xf32, #tpu.memory_space<vmem>>, %arg6: memref<1x128xf32, #tpu.memory_space<vmem>>, %arg7: memref<8x128xf32, #tpu.memory_space<vmem>>, %arg8: memref<8x128xf32, #tpu.memory_space<vmem>>) attributes {dimension_semantics = [#tpu.dimension_semantics<parallel>, #tpu.dimension_semantics<arbitrary>], iteration_bounds = array<i64: 1, 17>, scalar_prefetch = 0 : i64, scratch_operands = 1 : i64, tpu.core_type = #tpu.core_type<tc>, window_params = [{transform_indices = @transform_0, window_bounds = array<i64: 8, 2048>}, {transform_indices = @transform_1, window_bounds = array<i64: 2048, 128>}, {pipeline_mode = #tpu.pipeline_mode<synchronous>, transform_indices = @transform_2, window_bounds = array<i64: 1, 128>}, {pipeline_mode = #tpu.pipeline_mode<synchronous>, transform_indices = @transform_3, window_bounds = array<i64: 128, 128>}, {pipeline_mode = #tpu.pipeline_mode<synchronous>, transform_indices = @transform_4, window_bounds = array<i64: 1, 128>}, {transform_indices = @transform_5, window_bounds = array<i64: 8, 128>}]} {
    %c0_i32 = arith.constant 0 : i32
    %0 = arith.cmpi eq, %arg1, %c0_i32 : i32
    %1 = arith.extui %0 : i1 to i32
    %c0_i32_0 = arith.constant 0 : i32
    %2 = arith.cmpi ne, %1, %c0_i32_0 : i32
    scf.if %2 {
      %cst_9 = arith.constant 0.000000e+00 : f32
      %12 = vector.broadcast %cst_9 : f32 to vector<8x128xf32>
      %c0_10 = arith.constant 0 : index
      %c0_11 = arith.constant 0 : index
      %13 = vector.load %arg8[%c0_10, %c0_11] : memref<8x128xf32, #tpu.memory_space<vmem>>, vector<8x128xf32>
      tpu.vector_store %arg8[%c0_10, %c0_11], %12 {strides = array<i32>} : memref<8x128xf32, #tpu.memory_space<vmem>>, vector<8x128xf32>,
    } else {
    }
    %c0 = arith.constant 0 : index
    %c0_1 = arith.constant 0 : index
    %3 = vector.load %arg8[%c0, %c0_1] : memref<8x128xf32, #tpu.memory_space<vmem>>, vector<8x128xf32>
    %c0_2 = arith.constant 0 : index
    %c0_3 = arith.constant 0 : index
    %4 = vector.load %arg2[%c0_2, %c0_3] : memref<8x2048xf32, #tpu.memory_space<vmem>>, vector<8x2048xf32>
    %c0_4 = arith.constant 0 : index
    %c0_5 = arith.constant 0 : index
    %5 = vector.load %arg3[%c0_4, %c0_5] : memref<2048x128xf32, #tpu.memory_space<vmem>>, vector<2048x128xf32>
    %cst = arith.constant dense<0.000000e+00> : vector<8x128xf32>
    %6 = tpu.matmul %4, %5, %cst {dimension_numbers = #tpu.dot_dimension_numbers<[1], [0], [0], [1], [0, 0, 1, 1], [], []>} : vector<8x2048xf32>, vector<2048x128xf32>, vector<8x128xf32> -> vector<8x128xf32>
    %7 = arith.addf %3, %6 : vector<8x128xf32>
    %c0_6 = arith.constant 0 : index
    %c0_7 = arith.constant 0 : index
    %8 = vector.load %arg8[%c0_6, %c0_7] : memref<8x128xf32, #tpu.memory_space<vmem>>, vector<8x128xf32>
    tpu.vector_store %arg8[%c0_6, %c0_7], %7 {strides = array<i32>} : memref<8x128xf32, #tpu.memory_space<vmem>>, vector<8x128xf32>,
    %c16_i32 = arith.constant 16 : i32
    %9 = arith.cmpi eq, %arg1, %c16_i32 : i32
    %10 = arith.extui %9 : i1 to i32
    %c0_i32_8 = arith.constant 0 : i32
    %11 = arith.cmpi ne, %10, %c0_i32_8 : i32
    scf.if %11 {
      %c0_9 = arith.constant 0 : index
      %c0_10 = arith.constant 0 : index
      %12 = vector.load %arg8[%c0_9, %c0_10] : memref<8x128xf32, #tpu.memory_space<vmem>>, vector<8x128xf32>
      %c0_11 = arith.constant 0 : index
      %c0_12 = arith.constant 0 : index
      %13 = vector.load %arg4[%c0_11, %c0_12] : memref<1x128xf32, #tpu.memory_space<vmem>>, vector<1x128xf32>
      %14 = vector.broadcast %13 : vector<1x128xf32> to vector<8x128xf32>
      %15 = arith.addf %12, %14 : vector<8x128xf32>
      %cst_13 = arith.constant 0.000000e+00 : f32
      %16 = vector.broadcast %cst_13 : f32 to vector<8x128xf32>
      %17 = arith.maximumf %15, %16 : vector<8x128xf32>
      %c0_14 = arith.constant 0 : index
      %c0_15 = arith.constant 0 : index
      %18 = vector.load %arg5[%c0_14, %c0_15] : memref<128x128xf32, #tpu.memory_space<vmem>>, vector<128x128xf32>
      %cst_16 = arith.constant dense<0.000000e+00> : vector<8x128xf32>
      %19 = tpu.matmul %17, %18, %cst_16 {dimension_numbers = #tpu.dot_dimension_numbers<[1], [0], [0], [1], [0, 0, 1, 1], [], []>} : vector<8x128xf32>, vector<128x128xf32>, vector<8x128xf32> -> vector<8x128xf32>
      %c0_17 = arith.constant 0 : index
      %c0_18 = arith.constant 0 : index
      %20 = vector.load %arg6[%c0_17, %c0_18] : memref<1x128xf32, #tpu.memory_space<vmem>>, vector<1x128xf32>
      %21 = vector.broadcast %20 : vector<1x128xf32> to vector<8x128xf32>
      %22 = arith.addf %19, %21 : vector<8x128xf32>
      %c0_19 = arith.constant 0 : index
      %c0_20 = arith.constant 0 : index
      %23 = vector.load %arg7[%c0_19, %c0_20] : memref<8x128xf32, #tpu.memory_space<vmem>>, vector<8x128xf32>
      tpu.vector_store %arg7[%c0_19, %c0_20], %22 {strides = array<i32>} : memref<8x128xf32, #tpu.memory_space<vmem>>, vector<8x128xf32>,
    } else {
    }
    return
  }
  func.func @transform_0(%arg0: i32, %arg1: i32) -> (i32, i32) {
    %c0_i32 = arith.constant 0 : i32
    return %arg0, %arg1 : i32, i32
  }
  func.func @transform_1(%arg0: i32, %arg1: i32) -> (i32, i32) {
    %c0_i32 = arith.constant 0 : i32
    %c0_i32_0 = arith.constant 0 : i32
    return %arg1, %c0_i32 : i32, i32
  }
  func.func @transform_2(%arg0: i32, %arg1: i32) -> (i32, i32) {
    %c0_i32 = arith.constant 0 : i32
    %c0_i32_0 = arith.constant 0 : i32
    %c0_i32_1 = arith.constant 0 : i32
    return %c0_i32, %c0_i32_0 : i32, i32
  }
  func.func @transform_3(%arg0: i32, %arg1: i32) -> (i32, i32) {
    %c0_i32 = arith.constant 0 : i32
    %c0_i32_0 = arith.constant 0 : i32
    %c0_i32_1 = arith.constant 0 : i32
    return %c0_i32, %c0_i32_0 : i32, i32
  }
  func.func @transform_4(%arg0: i32, %arg1: i32) -> (i32, i32) {
    %c0_i32 = arith.constant 0 : i32
    %c0_i32_0 = arith.constant 0 : i32
    %c0_i32_1 = arith.constant 0 : i32
    return %c0_i32, %c0_i32_0 : i32, i32
  }
  func.func @transform_5(%arg0: i32, %arg1: i32) -> (i32, i32) {
    %c0_i32 = arith.constant 0 : i32
    %c0_i32_0 = arith.constant 0 : i32
    return %arg0, %c0_i32 : i32, i32
  }
}

</mosaic_0001>

<bundles_post_ra>
// kernel: nopool_cnn1_forward.3
= control target key start
LH: loop header
LB: loop body
LE: loop exit
PB: predicated region body
PF: predicated region fallthrough
CT: control target
= control target key end

     0   :  { %s1303_s12 = smov 0   ;;  %s1662_s0 = inlined_call_operand.vmem [shape: f32[4608,9], index: 0, kind: input, shape index: {}]   ;;  %s1663_s1 = inlined_call_operand.vmem [shape: f32[9,32], index: 1, kind: input, shape index: {}]   ;;  %s1664_s2 = inlined_call_operand.vmem [shape: f32[1,32], index: 2, kind: input, shape index: {}]   ;;  %s1665_s3 = inlined_call_operand.vmem [shape: f32[4608,32], index: 3, kind: output, shape index: {}]  }
   0x1 LB: > { %s1014_s13 = sadd.s32 4294967295, %s1280_s12   ;;  %p1018_p0 = scmp.ge.s32.totalorder %s1280_s12, 1  ;;  %s1280_s12 = sphi %s1303_s12, %s13_s12  }
   0x2   : > { %p138_p1 = scmp.lt.s32.totalorder %s1280_s12, 10 }
   0x4   : > { %p139_p2 = pnand %p1018_p0, %p138_p1 }
   0x5   : > { %v238_v0 = vld [vmem:[%s1663_s1] sm:$0xff] (!%p139_p2)  ;;  %v239_v1 = vld [vmem:[%s1663_s1 + $0x8] sm:$0x1] (!%p139_p2)  ;;  %vm440_vm0 = vcmask (!%p139_p2), 1040384   ;;  %s1019_s18 = sshll.u32 (!%p139_p2), %s1014_s13, 6  ;;  %vm1282_vm1 = vmmov (!%p139_p2), 1  }
   0x6   : > { %142 = sbr.rel (%p139_p2) target bundleno = 297 (0x129), region = 32  ;;  %v1257_v2 = vpack.c.bf16 (!%p139_p2), %v239_v1, %v238_v0  ;;  %vm1258_vm2 = vmpackc.low (!%p139_p2), %vm440_vm0, %vm1282_vm1  ;;  %p163_p3 = scmp.lt.s32.totalorder (!%p139_p2), %s1019_s18, 575  ;;  %vm247_vm3 = vcmask (!%p139_p2), 72704   ;;  %vm893_vm4 = vcmask (!%p139_p2), 261120  }
   0x8   : > { %1259 = vmatprep.subr.msk.bf16.mxu0 (!%p139_p2), %vm1258_vm2, %v1257_v2  ;;  %1263 = vmatprep.subr.msk.bf16.mxu1 (!%p139_p2), %vm1258_vm2, %v1257_v2 }
   0x9   : > { %1262 = vmatpush3.bf16.msk.msra.mxu0 (!%p139_p2), %vm1258_vm2, %v1257_v2  ;;  %1264 = vmatpush3.bf16.msk.msra.mxu1 (!%p139_p2), %vm1258_vm2, %v1257_v2 }
   0xd   : > { %s1667_s18 = smov (!%p163_p3, %s1019_s18), 575 }
   0xe   : > { %s1020_s19 = sshll.u32 %s1667_s18, 3 }
   0xf   : > { %s1325_s22 = scalar_lea.vmem %s1662_s0, %s1020_s19  ;;  %s1467_s27 = scalar_lea.vmem %s1665_s3, %s1020_s19 }
  0x10   : > { %v174_v3 = vld [vmem:[%s1325_s22] sm:$0xff]  ;;  %v175_v5 = vld [vmem:[%s1325_s22 + $0x8] sm:$0xff]  ;;  %v176_v7 = vld [vmem:[%s1325_s22 + $0x10] sm:$0xff] }
  0x11   : > { %v206_v4 = vld [vmem:[%s1325_s22 + $0x100] sm:$0xff]  ;;  %1161 = vmatprep.mubr.msk.f32.mxu0 %vm247_vm3, %v174_v3  ;;  %v207_v6 = vld [vmem:[%s1325_s22 + $0x108] sm:$0xff]  ;;  %v208_v8 = vld [vmem:[%s1325_s22 + $0x110] sm:$0xff] }
  0x12   : > { %1209 = vmatprep.mubr.msk.f32.mxu1 %vm247_vm3, %v206_v4  ;;  %1162 = vmatmul.mubr.msk.f32.vlgmr.msra.gmra.mrb[0].mxu0 %vm247_vm3, %v175_v5  ;;  %v177_v9 = vld [vmem:[%s1325_s22 + $0x18] sm:$0xff]  ;;  %v178_v11 = vld [vmem:[%s1325_s22 + $0x20] sm:$0xff]  ;;  %v179_v13 = vld [vmem:[%s1325_s22 + $0x28] sm:$0xff] }
  0x13   : > { %1210 = vmatmul.mubr.msk.f32.vlgmr.msra.gmra.mrb[0].mxu1 %vm247_vm3, %v207_v6  ;;  %1164 = vmatprep.mubr.msk.f32.mxu0 %vm247_vm3, %v176_v7  ;;  %v209_v10 = vld [vmem:[%s1325_s22 + $0x118] sm:$0xff]  ;;  %v210_v12 = vld [vmem:[%s1325_s22 + $0x120] sm:$0xff]  ;;  %v211_v14 = vld [vmem:[%s1325_s22 + $0x128] sm:$0xff] }
  0x14   : > { %1212 = vmatprep.mubr.msk.f32.mxu1 %vm247_vm3, %v208_v8  ;;  %v180_v15 = vld [vmem:[%s1325_s22 + $0x30] sm:$0xff]  ;;  %v181_v17 = vld [vmem:[%s1325_s22 + $0x38] sm:$0xff]  ;;  %v182_v19 = vld [vmem:[%s1325_s22 + $0x40] sm:$0xff] }
  0x15   : > { %v212_v16 = vld [vmem:[%s1325_s22 + $0x130] sm:$0xff]  ;;  %v213_v18 = vld [vmem:[%s1325_s22 + $0x138] sm:$0xff]  ;;  %v214_v20 = vld [vmem:[%s1325_s22 + $0x140] sm:$0xff] }
  0x16   : > { %1165 = vmatmul.mubr.msk.f32.gmra.mrb[2].mxu0 %vm247_vm3, %v177_v9  ;;  %v183_v21 = vld [vmem:[%s1325_s22 + $0x48] sm:$0xff]  ;;  %v184_v23 = vld [vmem:[%s1325_s22 + $0x50] sm:$0xff]  ;;  %v185_v25 = vld [vmem:[%s1325_s22 + $0x58] sm:$0xff] }
  0x17   : > { %1213 = vmatmul.mubr.msk.f32.gmra.mrb[2].mxu1 %vm247_vm3, %v209_v10  ;;  %1167 = vmatprep.mubr.msk.f32.mxu0 %vm247_vm3, %v178_v11  ;;  %v215_v22 = vld [vmem:[%s1325_s22 + $0x148] sm:$0xff]  ;;  %v216_v24 = vld [vmem:[%s1325_s22 + $0x150] sm:$0xff]  ;;  %v217_v26 = vld [vmem:[%s1325_s22 + $0x158] sm:$0xff] }
  0x18   : > { %1215 = vmatprep.mubr.msk.f32.mxu1 %vm247_vm3, %v210_v12  ;;  %v186_v27 = vld [vmem:[%s1325_s22 + $0x60] sm:$0xff]  ;;  %v187_v29 = vld [vmem:[%s1325_s22 + $0x68] sm:$0xff]  ;;  %v188_v31 = vld [vmem:[%s1325_s22 + $0x70] sm:$0xff] }
  0x19   : > { %v218_v28 = vld [vmem:[%s1325_s22 + $0x160] sm:$0xff]  ;;  %v219_v30 = vld [vmem:[%s1325_s22 + $0x168] sm:$0xff]  ;;  %v220_v32 = vld [vmem:[%s1325_s22 + $0x170] sm:$0xff] }
  0x1a   : > { %1168 = vmatmul.mubr.msk.f32.gmra.mrb[4].mxu0 %vm247_vm3, %v179_v13  ;;  %v189_v33 = vld [vmem:[%s1325_s22 + $0x78] sm:$0xff]  ;;  %v190_v35 = vld [vmem:[%s1325_s22 + $0x80] sm:$0xff]  ;;  %v191_v37 = vld [vmem:[%s1325_s22 + $0x88] sm:$0xff] }
  0x1b   : > { %1216 = vmatmul.mubr.msk.f32.gmra.mrb[4].mxu1 %vm247_vm3, %v211_v14  ;;  %1170 = vmatprep.mubr.msk.f32.mxu0 %vm247_vm3, %v180_v15  ;;  %v221_v34 = vld [vmem:[%s1325_s22 + $0x178] sm:$0xff]  ;;  %v222_v36 = vld [vmem:[%s1325_s22 + $0x180] sm:$0xff]  ;;  %v223_v38 = vld [vmem:[%s1325_s22 + $0x188] sm:$0xff] }
  0x1c   : > { %1218 = vmatprep.mubr.msk.f32.mxu1 %vm247_vm3, %v212_v16  ;;  %v192_v39 = vld [vmem:[%s1325_s22 + $0x90] sm:$0xff]  ;;  %v193_v41 = vld [vmem:[%s1325_s22 + $0x98] sm:$0xff]  ;;  %v194_v43 = vld [vmem:[%s1325_s22 + $0xa0] sm:$0xff] }
  0x1d   : > { %v224_v40 = vld [vmem:[%s1325_s22 + $0x190] sm:$0xff]  ;;  %v225_v42 = vld [vmem:[%s1325_s22 + $0x198] sm:$0xff]  ;;  %v226_v44 = vld [vmem:[%s1325_s22 + $0x1a0] sm:$0xff] }
  0x1e   : > { %1171 = vmatmul.mubr.msk.f32.gmra.mrb[6].mxu0 %vm247_vm3, %v181_v17  ;;  %v195_v45 = vld [vmem:[%s1325_s22 + $0xa8] sm:$0xff]  ;;  %v196_v47 = vld [vmem:[%s1325_s22 + $0xb0] sm:$0xff]  ;;  %v197_v49 = vld [vmem:[%s1325_s22 + $0xb8] sm:$0xff] }
  0x1f   : > { %1219 = vmatmul.mubr.msk.f32.gmra.mrb[6].mxu1 %vm247_vm3, %v213_v18  ;;  %1173 = vmatprep.mubr.msk.f32.mxu0 %vm247_vm3, %v182_v19  ;;  %v227_v46 = vld [vmem:[%s1325_s22 + $0x1a8] sm:$0xff]  ;;  %v228_v48 = vld [vmem:[%s1325_s22 + $0x1b0] sm:$0xff]  ;;  %v229_v50 = vld [vmem:[%s1325_s22 + $0x1b8] sm:$0xff] }
  0x20   : > { %1221 = vmatprep.mubr.msk.f32.mxu1 %vm247_vm3, %v214_v20  ;;  %v198_v51 = vld [vmem:[%s1325_s22 + $0xc0] sm:$0xff]  ;;  %v199_v53 = vld [vmem:[%s1325_s22 + $0xc8] sm:$0xff]  ;;  %v200_v55 = vld [vmem:[%s1325_s22 + $0xd0] sm:$0xff] }
  0x21   : > { %v230_v52 = vld [vmem:[%s1325_s22 + $0x1c0] sm:$0xff]  ;;  %v231_v54 = vld [vmem:[%s1325_s22 + $0x1c8] sm:$0xff]  ;;  %v232_v56 = vld [vmem:[%s1325_s22 + $0x1d0] sm:$0xff] }
  0x22   : > { %1174 = vmatmul.mubr.msk.f32.gmra.mrb[8].mxu0 %vm247_vm3, %v183_v21  ;;  %v201_v57 = vld [vmem:[%s1325_s22 + $0xd8] sm:$0xff]  ;;  %v202_v59 = vld [vmem:[%s1325_s22 + $0xe0] sm:$0xff]  ;;  %v203_v61 = vld [vmem:[%s1325_s22 + $0xe8] sm:$0xff] }
  0x23   : > { %1222 = vmatmul.mubr.msk.f32.gmra.mrb[8].mxu1 %vm247_vm3, %v215_v22  ;;  %1176 = vmatprep.mubr.msk.f32.mxu0 %vm247_vm3, %v184_v23  ;;  %v233_v58 = vld [vmem:[%s1325_s22 + $0x1d8] sm:$0xff]  ;;  %v234_v60 = vld [vmem:[%s1325_s22 + $0x1e0] sm:$0xff]  ;;  %v235_v62 = vld [vmem:[%s1325_s22 + $0x1e8] sm:$0xff] }
  0x24   : > { %1224 = vmatprep.mubr.msk.f32.mxu1 %vm247_vm3, %v216_v24  ;;  %v204_v63 = vld [vmem:[%s1325_s22 + $0xf0] sm:$0xff]  ;;  %v205_v1 = vld [vmem:[%s1325_s22 + $0xf8] sm:$0xff]  ;;  %v1458_v3 = vld [vmem:[%s1664_s2] ss:$0 sm:$0xff] }
  0x25   : > { %v236_v0 = vld [vmem:[%s1325_s22 + $0x1f0] sm:$0xff]  ;;  %v237_v2 = vld [vmem:[%s1325_s22 + $0x1f8] sm:$0xff] }
  0x26   : > { %1177 = vmatmul.mubr.msk.f32.gmra.mrb[10].mxu0 %vm247_vm3, %v185_v25 }
  0x27   : > { %1225 = vmatmul.mubr.msk.f32.gmra.mrb[10].mxu1 %vm247_vm3, %v217_v26  ;;  %1179 = vmatprep.mubr.msk.f32.mxu0 %vm247_vm3, %v186_v27 }
  0x28   : > { %1227 = vmatprep.mubr.msk.f32.mxu1 %vm247_vm3, %v218_v28 }
  0x2a   : > { %1180 = vmatmul.mubr.msk.f32.gmra.mrb[12].mxu0 %vm247_vm3, %v187_v29 }
  0x2b   : > { %1228 = vmatmul.mubr.msk.f32.gmra.mrb[12].mxu1 %vm247_vm3, %v219_v30  ;;  %1182 = vmatprep.mubr.msk.f32.mxu0 %vm247_vm3, %v188_v31 }
  0x2c   : > { %1230 = vmatprep.mubr.msk.f32.mxu1 %vm247_vm3, %v220_v32 }
  0x2e   : > { %1183 = vmatmul.mubr.msk.f32.gmra.mrb[14].mxu0 %vm247_vm3, %v189_v33 }
  0x2f   : > { %1231 = vmatmul.mubr.msk.f32.gmra.mrb[14].mxu1 %vm247_vm3, %v221_v34  ;;  %1185 = vmatprep.mubr.msk.f32.mxu0 %vm247_vm3, %v190_v35 }
  0x30   : > { %1233 = vmatprep.mubr.msk.f32.mxu1 %vm247_vm3, %v222_v36 }
  0x32   : > { %1186 = vmatmul.mubr.msk.f32.gmra.mrb[16].mxu0 %vm247_vm3, %v191_v37 }
  0x33   : > { %1234 = vmatmul.mubr.msk.f32.gmra.mrb[16].mxu1 %vm247_vm3, %v223_v38  ;;  %1188 = vmatprep.mubr.msk.f32.mxu0 %vm247_vm3, %v192_v39 }
  0x34   : > { %1236 = vmatprep.mubr.msk.f32.mxu1 %vm247_vm3, %v224_v40 }
  0x36   : > { %1189 = vmatmul.mubr.msk.f32.gmra.mrb[18].mxu0 %vm247_vm3, %v193_v41 }
  0x37   : > { %1237 = vmatmul.mubr.msk.f32.gmra.mrb[18].mxu1 %vm247_vm3, %v225_v42  ;;  %1191 = vmatprep.mubr.msk.f32.mxu0 %vm247_vm3, %v194_v43 }
  0x38   : > { %1239 = vmatprep.mubr.msk.f32.mxu1 %vm247_vm3, %v226_v44 }
  0x3a   : > { %1192 = vmatmul.mubr.msk.f32.gmra.mrb[20].mxu0 %vm247_vm3, %v195_v45 }
  0x3b   : > { %1240 = vmatmul.mubr.msk.f32.gmra.mrb[20].mxu1 %vm247_vm3, %v227_v46  ;;  %1194 = vmatprep.mubr.msk.f32.mxu0 %vm247_vm3, %v196_v47 }
  0x3c   : > { %1242 = vmatprep.mubr.msk.f32.mxu1 %vm247_vm3, %v228_v48 }
  0x3e   : > { %1195 = vmatmul.mubr.msk.f32.gmra.mrb[22].mxu0 %vm247_vm3, %v197_v49 }
  0x3f   : > { %1243 = vmatmul.mubr.msk.f32.gmra.mrb[22].mxu1 %vm247_vm3, %v229_v50  ;;  %1197 = vmatprep.mubr.msk.f32.mxu0 %vm247_vm3, %v198_v51 }
  0x40   : > { %1245 = vmatprep.mubr.msk.f32.mxu1 %vm247_vm3, %v230_v52 }
  0x42   : > { %1198 = vmatmul.mubr.msk.f32.gmra.mrb[24].mxu0 %vm247_vm3, %v199_v53 }
  0x43   : > { %1246 = vmatmul.mubr.msk.f32.gmra.mrb[24].mxu1 %vm247_vm3, %v231_v54  ;;  %1200 = vmatprep.mubr.msk.f32.mxu0 %vm247_vm3, %v200_v55 }
  0x44   : > { %1248 = vmatprep.mubr.msk.f32.mxu1 %vm247_vm3, %v232_v56 }
  0x46   : > { %1201 = vmatmul.mubr.msk.f32.gmra.mrb[26].mxu0 %vm247_vm3, %v201_v57 }
  0x47   : > { %1249 = vmatmul.mubr.msk.f32.gmra.mrb[26].mxu1 %vm247_vm3, %v233_v58  ;;  %1203 = vmatprep.mubr.msk.f32.mxu0 %vm247_vm3, %v202_v59 }
  0x48   : > { %1251 = vmatprep.mubr.msk.f32.mxu1 %vm247_vm3, %v234_v60 }
  0x4a   : > { %1204 = vmatmul.mubr.msk.f32.gmra.mrb[28].mxu0 %vm247_vm3, %v203_v61 }
  0x4b   : > { %1252 = vmatmul.mubr.msk.f32.gmra.mrb[28].mxu1 %vm247_vm3, %v235_v62  ;;  %1206 = vmatprep.mubr.msk.f32.mxu0 %vm247_vm3, %v204_v63 }
  0x4c   : > { %1254 = vmatprep.mubr.msk.f32.mxu1 %vm247_vm3, %v236_v0 }
  0x4e   : > { %1207 = vmatmul.mubr.msk.f32.gmra.mrb[30].mxu0 %vm247_vm3, %v205_v1 }
  0x4f   : > { %1255 = vmatmul.mubr.msk.f32.gmra.mrb[30].mxu1 %vm247_vm3, %v237_v2 }
  0xe5   : > { %v1163_v4 = vpop.f32.mrb[0].mxu0 }
  0xe6   : > { %v1211_v5 = vpop.f32.mrb[0].mxu1  ;;  %v516_v6 = vadd.f32 %v1163_v4, %v1458_v3  ;;  %v510_v8 = vpop.f32.mrb[1].mxu0 }
  0xe7   : > { %v676_v7 = vadd.f32 %v1211_v5, %v1458_v3  ;;  %v670_v9 = vpop.f32.mrb[1].mxu1  ;;  %v511_v10 = vadd.f32 %v1458_v3, %v510_v8 }
  0xe8   : > { %v671_v11 = vadd.f32 %v1458_v3, %v670_v9  ;;  %v830_v12 = vmax.f32 %v516_v6, 0.0 }
  0xe9   : > { %v862_v13 = vmax.f32 %v676_v7, 0.0  ;;  %v829_v14 = vmax.f32 %v511_v10, 0.0  ;;  %v1166_v16 = vpop.f32.mrb[2].mxu0 }
  0xea   : > { %v861_v15 = vmax.f32 %v671_v11, 0.0  ;;  %v1214_v17 = vpop.f32.mrb[2].mxu1  ;;  %895 = vst.msk [vmem:[%s1467_s27 + $0x8] sm:$0xff] %vm893_vm4, %v830_v12  ;;  %v526_v18 = vadd.f32 %v1166_v16, %v1458_v3  ;;  %v520_v20 = vpop.f32.mrb[3].mxu0 }
  0xeb   : > { %927 = vst.msk [vmem:[%s1467_s27 + $0x108] sm:$0xff] %vm893_vm4, %v862_v13  ;;  %v686_v19 = vadd.f32 %v1214_v17, %v1458_v3  ;;  %v680_v21 = vpop.f32.mrb[3].mxu1  ;;  %894 = vst.msk [vmem:[%s1467_s27] sm:$0xff] %vm893_vm4, %v829_v14  ;;  %v521_v22 = vadd.f32 %v1458_v3, %v520_v20 }
  0xec   : > { %926 = vst.msk [vmem:[%s1467_s27 + $0x100] sm:$0xff] %vm893_vm4, %v861_v15  ;;  %v681_v23 = vadd.f32 %v1458_v3, %v680_v21  ;;  %v832_v24 = vmax.f32 %v526_v18, 0.0 }
  0xed   : > { %v864_v25 = vmax.f32 %v686_v19, 0.0  ;;  %v831_v26 = vmax.f32 %v521_v22, 0.0  ;;  %v1169_v28 = vpop.f32.mrb[4].mxu0 }
  0xee   : > { %v863_v27 = vmax.f32 %v681_v23, 0.0  ;;  %v1217_v29 = vpop.f32.mrb[4].mxu1  ;;  %897 = vst.msk [vmem:[%s1467_s27 + $0x18] sm:$0xff] %vm893_vm4, %v832_v24  ;;  %v536_v30 = vadd.f32 %v1169_v28, %v1458_v3  ;;  %v530_v32 = vpop.f32.mrb[5].mxu0 }
  0xef   : > { %929 = vst.msk [vmem:[%s1467_s27 + $0x118] sm:$0xff] %vm893_vm4, %v864_v25  ;;  %v696_v31 = vadd.f32 %v1217_v29, %v1458_v3  ;;  %v690_v33 = vpop.f32.mrb[5].mxu1  ;;  %896 = vst.msk [vmem:[%s1467_s27 + $0x10] sm:$0xff] %vm893_vm4, %v831_v26  ;;  %v531_v34 = vadd.f32 %v1458_v3, %v530_v32 }
  0xf0   : > { %928 = vst.msk [vmem:[%s1467_s27 + $0x110] sm:$0xff] %vm893_vm4, %v863_v27  ;;  %v691_v35 = vadd.f32 %v1458_v3, %v690_v33  ;;  %v834_v36 = vmax.f32 %v536_v30, 0.0 }
  0xf1   : > { %v866_v37 = vmax.f32 %v696_v31, 0.0  ;;  %v833_v38 = vmax.f32 %v531_v34, 0.0  ;;  %v1172_v40 = vpop.f32.mrb[6].mxu0 }
  0xf2   : > { %v865_v39 = vmax.f32 %v691_v35, 0.0  ;;  %v1220_v41 = vpop.f32.mrb[6].mxu1  ;;  %899 = vst.msk [vmem:[%s1467_s27 + $0x28] sm:$0xff] %vm893_vm4, %v834_v36  ;;  %v546_v42 = vadd.f32 %v1172_v40, %v1458_v3  ;;  %v540_v44 = vpop.f32.mrb[7].mxu0 }
  0xf3   : > { %931 = vst.msk [vmem:[%s1467_s27 + $0x128] sm:$0xff] %vm893_vm4, %v866_v37  ;;  %v706_v43 = vadd.f32 %v1220_v41, %v1458_v3  ;;  %v700_v45 = vpop.f32.mrb[7].mxu1  ;;  %898 = vst.msk [vmem:[%s1467_s27 + $0x20] sm:$0xff] %vm893_vm4, %v833_v38  ;;  %v541_v46 = vadd.f32 %v1458_v3, %v540_v44 }
  0xf4   : > { %930 = vst.msk [vmem:[%s1467_s27 + $0x120] sm:$0xff] %vm893_vm4, %v865_v39  ;;  %v701_v47 = vadd.f32 %v1458_v3, %v700_v45  ;;  %v836_v48 = vmax.f32 %v546_v42, 0.0 }
  0xf5   : > { %v868_v49 = vmax.f32 %v706_v43, 0.0  ;;  %v835_v50 = vmax.f32 %v541_v46, 0.0  ;;  %v1175_v52 = vpop.f32.mrb[8].mxu0 }
  0xf6   : > { %v867_v51 = vmax.f32 %v701_v47, 0.0  ;;  %v1223_v53 = vpop.f32.mrb[8].mxu1  ;;  %901 = vst.msk [vmem:[%s1467_s27 + $0x38] sm:$0xff] %vm893_vm4, %v836_v48  ;;  %v556_v54 = vadd.f32 %v1175_v52, %v1458_v3  ;;  %v550_v56 = vpop.f32.mrb[9].mxu0 }
  0xf7   : > { %933 = vst.msk [vmem:[%s1467_s27 + $0x138] sm:$0xff] %vm893_vm4, %v868_v49  ;;  %v716_v55 = vadd.f32 %v1223_v53, %v1458_v3  ;;  %v710_v57 = vpop.f32.mrb[9].mxu1  ;;  %900 = vst.msk [vmem:[%s1467_s27 + $0x30] sm:$0xff] %vm893_vm4, %v835_v50  ;;  %v551_v58 = vadd.f32 %v1458_v3, %v550_v56 }
  0xf8   : > { %932 = vst.msk [vmem:[%s1467_s27 + $0x130] sm:$0xff] %vm893_vm4, %v867_v51  ;;  %v711_v59 = vadd.f32 %v1458_v3, %v710_v57  ;;  %v838_v60 = vmax.f32 %v556_v54, 0.0 }
  0xf9   : > { %v870_v61 = vmax.f32 %v716_v55, 0.0  ;;  %v837_v62 = vmax.f32 %v551_v58, 0.0  ;;  %v1178_v0 = vpop.f32.mrb[10].mxu0 }
  0xfa   : > { %v869_v63 = vmax.f32 %v711_v59, 0.0  ;;  %v1226_v1 = vpop.f32.mrb[10].mxu1  ;;  %903 = vst.msk [vmem:[%s1467_s27 + $0x48] sm:$0xff] %vm893_vm4, %v838_v60  ;;  %v566_v2 = vadd.f32 %v1178_v0, %v1458_v3  ;;  %v560_v5 = vpop.f32.mrb[11].mxu0 }
  0xfb   : > { %935 = vst.msk [vmem:[%s1467_s27 + $0x148] sm:$0xff] %vm893_vm4, %v870_v61  ;;  %v726_v4 = vadd.f32 %v1226_v1, %v1458_v3  ;;  %v720_v6 = vpop.f32.mrb[11].mxu1  ;;  %902 = vst.msk [vmem:[%s1467_s27 + $0x40] sm:$0xff] %vm893_vm4, %v837_v62  ;;  %v561_v7 = vadd.f32 %v1458_v3, %v560_v5 }
  0xfc   : > { %934 = vst.msk [vmem:[%s1467_s27 + $0x140] sm:$0xff] %vm893_vm4, %v869_v63  ;;  %v721_v8 = vadd.f32 %v1458_v3, %v720_v6  ;;  %v840_v9 = vmax.f32 %v566_v2, 0.0 }
  0xfd   : > { %v872_v10 = vmax.f32 %v726_v4, 0.0  ;;  %v839_v11 = vmax.f32 %v561_v7, 0.0  ;;  %v1181_v13 = vpop.f32.mrb[12].mxu0 }
  0xfe   : > { %v871_v12 = vmax.f32 %v721_v8, 0.0  ;;  %v1229_v14 = vpop.f32.mrb[12].mxu1  ;;  %905 = vst.msk [vmem:[%s1467_s27 + $0x58] sm:$0xff] %vm893_vm4, %v840_v9  ;;  %v576_v15 = vadd.f32 %v1181_v13, %v1458_v3  ;;  %v570_v17 = vpop.f32.mrb[13].mxu0 }
  0xff   : > { %937 = vst.msk [vmem:[%s1467_s27 + $0x158] sm:$0xff] %vm893_vm4, %v872_v10  ;;  %v736_v16 = vadd.f32 %v1229_v14, %v1458_v3  ;;  %v730_v18 = vpop.f32.mrb[13].mxu1  ;;  %904 = vst.msk [vmem:[%s1467_s27 + $0x50] sm:$0xff] %vm893_vm4, %v839_v11  ;;  %v571_v19 = vadd.f32 %v1458_v3, %v570_v17 }
 0x100   : > { %936 = vst.msk [vmem:[%s1467_s27 + $0x150] sm:$0xff] %vm893_vm4, %v871_v12  ;;  %v731_v20 = vadd.f32 %v1458_v3, %v730_v18  ;;  %v842_v21 = vmax.f32 %v576_v15, 0.0 }
 0x101   : > { %v874_v22 = vmax.f32 %v736_v16, 0.0  ;;  %v841_v23 = vmax.f32 %v571_v19, 0.0  ;;  %v1184_v25 = vpop.f32.mrb[14].mxu0 }
 0x102   : > { %v873_v24 = vmax.f32 %v731_v20, 0.0  ;;  %v1232_v26 = vpop.f32.mrb[14].mxu1  ;;  %907 = vst.msk [vmem:[%s1467_s27 + $0x68] sm:$0xff] %vm893_vm4, %v842_v21  ;;  %v586_v27 = vadd.f32 %v1184_v25, %v1458_v3  ;;  %v580_v29 = vpop.f32.mrb[15].mxu0 }
 0x103   : > { %939 = vst.msk [vmem:[%s1467_s27 + $0x168] sm:$0xff] %vm893_vm4, %v874_v22  ;;  %v746_v28 = vadd.f32 %v1232_v26, %v1458_v3  ;;  %v740_v30 = vpop.f32.mrb[15].mxu1  ;;  %906 = vst.msk [vmem:[%s1467_s27 + $0x60] sm:$0xff] %vm893_vm4, %v841_v23  ;;  %v581_v31 = vadd.f32 %v1458_v3, %v580_v29 }
 0x104   : > { %938 = vst.msk [vmem:[%s1467_s27 + $0x160] sm:$0xff] %vm893_vm4, %v873_v24  ;;  %v741_v32 = vadd.f32 %v1458_v3, %v740_v30  ;;  %v844_v33 = vmax.f32 %v586_v27, 0.0 }
 0x105   : > { %v876_v34 = vmax.f32 %v746_v28, 0.0  ;;  %v843_v35 = vmax.f32 %v581_v31, 0.0  ;;  %v1187_v37 = vpop.f32.mrb[16].mxu0 }
 0x106   : > { %v875_v36 = vmax.f32 %v741_v32, 0.0  ;;  %v1235_v38 = vpop.f32.mrb[16].mxu1  ;;  %909 = vst.msk [vmem:[%s1467_s27 + $0x78] sm:$0xff] %vm893_vm4, %v844_v33  ;;  %v596_v39 = vadd.f32 %v1187_v37, %v1458_v3  ;;  %v590_v41 = vpop.f32.mrb[17].mxu0 }
 0x107   : > { %941 = vst.msk [vmem:[%s1467_s27 + $0x178] sm:$0xff] %vm893_vm4, %v876_v34  ;;  %v756_v40 = vadd.f32 %v1235_v38, %v1458_v3  ;;  %v750_v42 = vpop.f32.mrb[17].mxu1  ;;  %908 = vst.msk [vmem:[%s1467_s27 + $0x70] sm:$0xff] %vm893_vm4, %v843_v35  ;;  %v591_v43 = vadd.f32 %v1458_v3, %v590_v41 }
 0x108   : > { %940 = vst.msk [vmem:[%s1467_s27 + $0x170] sm:$0xff] %vm893_vm4, %v875_v36  ;;  %v751_v44 = vadd.f32 %v1458_v3, %v750_v42  ;;  %v846_v45 = vmax.f32 %v596_v39, 0.0 }
 0x109   : > { %v878_v46 = vmax.f32 %v756_v40, 0.0  ;;  %v845_v47 = vmax.f32 %v591_v43, 0.0  ;;  %v1190_v49 = vpop.f32.mrb[18].mxu0 }
 0x10a   : > { %v877_v48 = vmax.f32 %v751_v44, 0.0  ;;  %v1238_v50 = vpop.f32.mrb[18].mxu1  ;;  %911 = vst.msk [vmem:[%s1467_s27 + $0x88] sm:$0xff] %vm893_vm4, %v846_v45  ;;  %v606_v51 = vadd.f32 %v1190_v49, %v1458_v3  ;;  %v600_v53 = vpop.f32.mrb[19].mxu0 }
 0x10b   : > { %943 = vst.msk [vmem:[%s1467_s27 + $0x188] sm:$0xff] %vm893_vm4, %v878_v46  ;;  %v766_v52 = vadd.f32 %v1238_v50, %v1458_v3  ;;  %v760_v54 = vpop.f32.mrb[19].mxu1  ;;  %910 = vst.msk [vmem:[%s1467_s27 + $0x80] sm:$0xff] %vm893_vm4, %v845_v47  ;;  %v601_v55 = vadd.f32 %v1458_v3, %v600_v53 }
 0x10c   : > { %942 = vst.msk [vmem:[%s1467_s27 + $0x180] sm:$0xff] %vm893_vm4, %v877_v48  ;;  %v761_v56 = vadd.f32 %v1458_v3, %v760_v54  ;;  %v848_v57 = vmax.f32 %v606_v51, 0.0 }
 0x10d   : > { %v880_v58 = vmax.f32 %v766_v52, 0.0  ;;  %v847_v59 = vmax.f32 %v601_v55, 0.0  ;;  %v1193_v61 = vpop.f32.mrb[20].mxu0 }
 0x10e   : > { %v879_v60 = vmax.f32 %v761_v56, 0.0  ;;  %v1241_v62 = vpop.f32.mrb[20].mxu1  ;;  %913 = vst.msk [vmem:[%s1467_s27 + $0x98] sm:$0xff] %vm893_vm4, %v848_v57  ;;  %v616_v63 = vadd.f32 %v1193_v61, %v1458_v3  ;;  %v610_v1 = vpop.f32.mrb[21].mxu0 }
 0x10f   : > { %945 = vst.msk [vmem:[%s1467_s27 + $0x198] sm:$0xff] %vm893_vm4, %v880_v58  ;;  %v776_v0 = vadd.f32 %v1241_v62, %v1458_v3  ;;  %v770_v2 = vpop.f32.mrb[21].mxu1  ;;  %912 = vst.msk [vmem:[%s1467_s27 + $0x90] sm:$0xff] %vm893_vm4, %v847_v59  ;;  %v611_v4 = vadd.f32 %v1458_v3, %v610_v1 }
 0x110   : > { %944 = vst.msk [vmem:[%s1467_s27 + $0x190] sm:$0xff] %vm893_vm4, %v879_v60  ;;  %v771_v5 = vadd.f32 %v1458_v3, %v770_v2  ;;  %v850_v6 = vmax.f32 %v616_v63, 0.0 }
 0x111   : > { %v882_v7 = vmax.f32 %v776_v0, 0.0  ;;  %v849_v8 = vmax.f32 %v611_v4, 0.0  ;;  %v1196_v10 = vpop.f32.mrb[22].mxu0 }
 0x112   : > { %v881_v9 = vmax.f32 %v771_v5, 0.0  ;;  %v1244_v11 = vpop.f32.mrb[22].mxu1  ;;  %915 = vst.msk [vmem:[%s1467_s27 + $0xa8] sm:$0xff] %vm893_vm4, %v850_v6  ;;  %v626_v12 = vadd.f32 %v1196_v10, %v1458_v3  ;;  %v620_v14 = vpop.f32.mrb[23].mxu0 }
 0x113   : > { %947 = vst.msk [vmem:[%s1467_s27 + $0x1a8] sm:$0xff] %vm893_vm4, %v882_v7  ;;  %v786_v13 = vadd.f32 %v1244_v11, %v1458_v3  ;;  %v780_v15 = vpop.f32.mrb[23].mxu1  ;;  %914 = vst.msk [vmem:[%s1467_s27 + $0xa0] sm:$0xff] %vm893_vm4, %v849_v8  ;;  %v621_v16 = vadd.f32 %v1458_v3, %v620_v14 }
 0x114   : > { %946 = vst.msk [vmem:[%s1467_s27 + $0x1a0] sm:$0xff] %vm893_vm4, %v881_v9  ;;  %v781_v17 = vadd.f32 %v1458_v3, %v780_v15  ;;  %v852_v18 = vmax.f32 %v626_v12, 0.0 }
 0x115   : > { %v884_v19 = vmax.f32 %v786_v13, 0.0  ;;  %v851_v20 = vmax.f32 %v621_v16, 0.0  ;;  %v1199_v22 = vpop.f32.mrb[24].mxu0 }
 0x116   : > { %v883_v21 = vmax.f32 %v781_v17, 0.0  ;;  %v1247_v23 = vpop.f32.mrb[24].mxu1  ;;  %917 = vst.msk [vmem:[%s1467_s27 + $0xb8] sm:$0xff] %vm893_vm4, %v852_v18  ;;  %v636_v24 = vadd.f32 %v1199_v22, %v1458_v3  ;;  %v630_v26 = vpop.f32.mrb[25].mxu0 }
 0x117   : > { %949 = vst.msk [vmem:[%s1467_s27 + $0x1b8] sm:$0xff] %vm893_vm4, %v884_v19  ;;  %v796_v25 = vadd.f32 %v1247_v23, %v1458_v3  ;;  %v790_v27 = vpop.f32.mrb[25].mxu1  ;;  %916 = vst.msk [vmem:[%s1467_s27 + $0xb0] sm:$0xff] %vm893_vm4, %v851_v20  ;;  %v631_v28 = vadd.f32 %v1458_v3, %v630_v26 }
 0x118   : > { %948 = vst.msk [vmem:[%s1467_s27 + $0x1b0] sm:$0xff] %vm893_vm4, %v883_v21  ;;  %v791_v29 = vadd.f32 %v1458_v3, %v790_v27  ;;  %v854_v30 = vmax.f32 %v636_v24, 0.0 }
 0x119   : > { %v886_v31 = vmax.f32 %v796_v25, 0.0  ;;  %v853_v32 = vmax.f32 %v631_v28, 0.0  ;;  %v1202_v34 = vpop.f32.mrb[26].mxu0 }
 0x11a   : > { %v885_v33 = vmax.f32 %v791_v29, 0.0  ;;  %v1250_v35 = vpop.f32.mrb[26].mxu1  ;;  %919 = vst.msk [vmem:[%s1467_s27 + $0xc8] sm:$0xff] %vm893_vm4, %v854_v30  ;;  %v646_v36 = vadd.f32 %v1202_v34, %v1458_v3  ;;  %v640_v38 = vpop.f32.mrb[27].mxu0 }
 0x11b   : > { %951 = vst.msk [vmem:[%s1467_s27 + $0x1c8] sm:$0xff] %vm893_vm4, %v886_v31  ;;  %v806_v37 = vadd.f32 %v1250_v35, %v1458_v3  ;;  %v800_v39 = vpop.f32.mrb[27].mxu1  ;;  %918 = vst.msk [vmem:[%s1467_s27 + $0xc0] sm:$0xff] %vm893_vm4, %v853_v32  ;;  %v641_v40 = vadd.f32 %v1458_v3, %v640_v38 }
 0x11c   : > { %950 = vst.msk [vmem:[%s1467_s27 + $0x1c0] sm:$0xff] %vm893_vm4, %v885_v33  ;;  %v801_v41 = vadd.f32 %v1458_v3, %v800_v39  ;;  %v856_v42 = vmax.f32 %v646_v36, 0.0 }
 0x11d   : > { %v888_v43 = vmax.f32 %v806_v37, 0.0  ;;  %v855_v44 = vmax.f32 %v641_v40, 0.0  ;;  %v1205_v46 = vpop.f32.mrb[28].mxu0 }
 0x11e   : > { %v887_v45 = vmax.f32 %v801_v41, 0.0  ;;  %v1253_v47 = vpop.f32.mrb[28].mxu1  ;;  %921 = vst.msk [vmem:[%s1467_s27 + $0xd8] sm:$0xff] %vm893_vm4, %v856_v42  ;;  %v656_v48 = vadd.f32 %v1205_v46, %v1458_v3  ;;  %v650_v50 = vpop.f32.mrb[29].mxu0 }
 0x11f   : > { %953 = vst.msk [vmem:[%s1467_s27 + $0x1d8] sm:$0xff] %vm893_vm4, %v888_v43  ;;  %v816_v49 = vadd.f32 %v1253_v47, %v1458_v3  ;;  %v810_v51 = vpop.f32.mrb[29].mxu1  ;;  %920 = vst.msk [vmem:[%s1467_s27 + $0xd0] sm:$0xff] %vm893_vm4, %v855_v44  ;;  %v651_v52 = vadd.f32 %v1458_v3, %v650_v50 }
 0x120   : > { %952 = vst.msk [vmem:[%s1467_s27 + $0x1d0] sm:$0xff] %vm893_vm4, %v887_v45  ;;  %v811_v53 = vadd.f32 %v1458_v3, %v810_v51  ;;  %v858_v54 = vmax.f32 %v656_v48, 0.0 }
 0x121   : > { %v890_v55 = vmax.f32 %v816_v49, 0.0  ;;  %v857_v56 = vmax.f32 %v651_v52, 0.0  ;;  %v1208_v58 = vpop.f32.mrb[30].mxu0 }
 0x122   : > { %v889_v57 = vmax.f32 %v811_v53, 0.0  ;;  %v1256_v59 = vpop.f32.mrb[30].mxu1  ;;  %923 = vst.msk [vmem:[%s1467_s27 + $0xe8] sm:$0xff] %vm893_vm4, %v858_v54  ;;  %v666_v60 = vadd.f32 %v1208_v58, %v1458_v3  ;;  %v660_v62 = vpop.f32.mrb[31].mxu0 }
 0x123   : > { %955 = vst.msk [vmem:[%s1467_s27 + $0x1e8] sm:$0xff] %vm893_vm4, %v890_v55  ;;  %v826_v61 = vadd.f32 %v1256_v59, %v1458_v3  ;;  %v820_v63 = vpop.f32.mrb[31].mxu1  ;;  %922 = vst.msk [vmem:[%s1467_s27 + $0xe0] sm:$0xff] %vm893_vm4, %v857_v56  ;;  %v661_v0 = vadd.f32 %v1458_v3, %v660_v62 }
 0x124   : > { %954 = vst.msk [vmem:[%s1467_s27 + $0x1e0] sm:$0xff] %vm893_vm4, %v889_v57  ;;  %v821_v1 = vadd.f32 %v1458_v3, %v820_v63  ;;  %v860_v2 = vmax.f32 %v666_v60, 0.0 }
 0x125   : > { %v892_v4 = vmax.f32 %v826_v61, 0.0  ;;  %v859_v5 = vmax.f32 %v661_v0, 0.0 }
 0x126   : > { %v891_v6 = vmax.f32 %v821_v1, 0.0  ;;  %925 = vst.msk [vmem:[%s1467_s27 + $0xf8] sm:$0xff] %vm893_vm4, %v860_v2 }
 0x127   : > { %957 = vst.msk [vmem:[%s1467_s27 + $0x1f8] sm:$0xff] %vm893_vm4, %v892_v4  ;;  %924 = vst.msk [vmem:[%s1467_s27 + $0xf0] sm:$0xff] %vm893_vm4, %v859_v5 }
 0x128   : > { %956 = vst.msk [vmem:[%s1467_s27 + $0x1f0] sm:$0xff] %vm893_vm4, %v891_v6 }
 0x129 PF: > { %s13_s12 = sadd.s32 1, %s1280_s12  }
 0x12a   : > { %p10_p4 = scmp.ge.s32.totalorder %s13_s12, 11  }
 0x12c   :  { %12 = sbr.rel (!%p10_p4) target bundleno = 1 (0x1), region = 62 }

// kernel: nopool_cnn1_forward.4
= control target key start
LH: loop header
LB: loop body
LE: loop exit
PB: predicated region body
PF: predicated region fallthrough
CT: control target
= control target key end

     0   :  { %s1935_s12 = smov 0   ;;  %s2679_s0 = inlined_call_operand.vmem [shape: f32[4608,288], index: 0, kind: input, shape index: {}]   ;;  %s2680_s1 = inlined_call_operand.vmem [shape: f32[288,16], index: 1, kind: input, shape index: {}]   ;;  %s2681_s2 = inlined_call_operand.vmem [shape: f32[1,16], index: 2, kind: input, shape index: {}]   ;;  %s2682_s3 = inlined_call_operand.vmem [shape: f32[4608,16], index: 3, kind: output, shape index: {}]  }
   0x1 LB: > { %s1560_s13 = sadd.s32 4294967295, %s1912_s12   ;;  %p1564_p0 = scmp.ge.s32.totalorder %s1912_s12, 1  ;;  %s1912_s12 = sphi %s1935_s12, %s13_s12  }
   0x2   : > { %p139_p1 = scmp.lt.s32.totalorder %s1912_s12, 10 }
   0x4   : > { %p140_p2 = pnand %p1564_p0, %p139_p1 }
   0x5   : > { %v369_v0 = vld [vmem:[%s2680_s1] sm:$0xff] (!%p140_p2)  ;;  %v370_v1 = vld [vmem:[%s2680_s1 + $0x8] sm:$0xff] (!%p140_p2)  ;;  %v371_v2 = vld [vmem:[%s2680_s1 + $0x10] sm:$0xff] (!%p140_p2)  ;;  %s1565_s20 = sshll.u32 (!%p140_p2), %s1560_s13, 6  ;;  %v1914_v3 = vmov (!%p140_p2), 0.0|0.0   ;;  %vm412_vm0 = vcmask (!%p140_p2), 261120  }
   0x6   : > { %143 = sbr.rel (%p140_p2) target bundleno = 478 (0x1de), region = 32  ;;  %1808 = vmatprep.subr.bf16.mxu0 (!%p140_p2), %v1914_v3  ;;  %1864 = vmatprep.subr.bf16.mxu1 (!%p140_p2), %v1914_v3  ;;  %v1809_v4 = vpack.c.bf16 (!%p140_p2), %v370_v1, %v369_v0  ;;  %v372_v5 = vld [vmem:[%s2680_s1 + $0x18] sm:$0xff] (!%p140_p2)  ;;  %p165_p3 = scmp.lt.s32.totalorder (!%p140_p2), %s1565_s20, 575  ;;  %v373_v7 = vld [vmem:[%s2680_s1 + $0x20] sm:$0xff] (!%p140_p2)  ;;  %v374_v8 = vld [vmem:[%s2680_s1 + $0x28] sm:$0xff] (!%p140_p2)  ;;  %vm1439_vm1 = vcmask (!%p140_p2), 130048  }
   0x7   : > { %v1812_v6 = vpack.c.bf16 (!%p140_p2), %v372_v5, %v371_v2  ;;  %v1815_v9 = vpack.c.bf16 (!%p140_p2), %v374_v8, %v373_v7  ;;  %v375_v10 = vld [vmem:[%s2680_s1 + $0x30] sm:$0xff] (!%p140_p2)  ;;  %v376_v11 = vld [vmem:[%s2680_s1 + $0x38] sm:$0xff] (!%p140_p2)  ;;  %v377_v15 = vld [vmem:[%s2680_s1 + $0x40] sm:$0xff] (!%p140_p2) }
   0x8   : > { %1810 = vmatpush1.bf16.msra.mxu0 (!%p140_p2), %v1809_v4  ;;  %1880 = vmatpush1.bf16.msra.mxu1 (!%p140_p2), %v1809_v4  ;;  %v1818_v13 = vpack.c.bf16 (!%p140_p2), %v376_v11, %v375_v10  ;;  %v378_v16 = vld [vmem:[%s2680_s1 + $0x48] sm:$0xff] (!%p140_p2)  ;;  %v379_v18 = vld [vmem:[%s2680_s1 + $0x50] sm:$0xff] (!%p140_p2)  ;;  %v380_v19 = vld [vmem:[%s2680_s1 + $0x58] sm:$0xff] (!%p140_p2) }
   0x9   : > { %1811 = vmatprep.subr.bf16.mxu0 (!%p140_p2), %v1914_v3  ;;  %1865 = vmatprep.subr.bf16.mxu1 (!%p140_p2), %v1914_v3  ;;  %v1821_v17 = vpack.c.bf16 (!%p140_p2), %v378_v16, %v377_v15  ;;  %v1824_v20 = vpack.c.bf16 (!%p140_p2), %v380_v19, %v379_v18  ;;  %v381_v21 = vld [vmem:[%s2680_s1 + $0x60] sm:$0xff] (!%p140_p2)  ;;  %v382_v22 = vld [vmem:[%s2680_s1 + $0x68] sm:$0xff] (!%p140_p2)  ;;  %v383_v24 = vld [vmem:[%s2680_s1 + $0x70] sm:$0xff] (!%p140_p2) }
   0xa   : > { %v1827_v23 = vpack.c.bf16 (!%p140_p2), %v382_v22, %v381_v21  ;;  %v384_v25 = vld [vmem:[%s2680_s1 + $0x78] sm:$0xff] (!%p140_p2)  ;;  %v385_v27 = vld [vmem:[%s2680_s1 + $0x80] sm:$0xff] (!%p140_p2)  ;;  %v386_v28 = vld [vmem:[%s2680_s1 + $0x88] sm:$0xff] (!%p140_p2) }
   0xb   : > { %v1830_v26 = vpack.c.bf16 (!%p140_p2), %v384_v25, %v383_v24  ;;  %v1833_v29 = vpack.c.bf16 (!%p140_p2), %v386_v28, %v385_v27  ;;  %v387_v30 = vld [vmem:[%s2680_s1 + $0x90] sm:$0xff] (!%p140_p2)  ;;  %v388_v31 = vld [vmem:[%s2680_s1 + $0x98] sm:$0xff] (!%p140_p2)  ;;  %v389_v33 = vld [vmem:[%s2680_s1 + $0xa0] sm:$0xff] (!%p140_p2) }
   0xc   : > { %1813 = vmatpush1.bf16.msra.mxu0 (!%p140_p2), %v1812_v6  ;;  %1881 = vmatpush1.bf16.msra.mxu1 (!%p140_p2), %v1812_v6  ;;  %v1836_v32 = vpack.c.bf16 (!%p140_p2), %v388_v31, %v387_v30  ;;  %v390_v34 = vld [vmem:[%s2680_s1 + $0xa8] sm:$0xff] (!%p140_p2)  ;;  %v391_v36 = vld [vmem:[%s2680_s1 + $0xb0] sm:$0xff] (!%p140_p2)  ;;  %v392_v37 = vld [vmem:[%s2680_s1 + $0xb8] sm:$0xff] (!%p140_p2) }
   0xd   : > { %s2684_s20 = smov (!%p165_p3, %s1565_s20), 575  ;;  %1814 = vmatprep.subr.bf16.mxu0 %v1914_v3  ;;  %1866 = vmatprep.subr.bf16.mxu1 %v1914_v3  ;;  %v1839_v35 = vpack.c.bf16 %v390_v34, %v389_v33  ;;  %v1842_v38 = vpack.c.bf16 %v392_v37, %v391_v36  ;;  %v393_v39 = vld [vmem:[%s2680_s1 + $0xc0] sm:$0xff]  ;;  %v394_v40 = vld [vmem:[%s2680_s1 + $0xc8] sm:$0xff]  ;;  %v395_v42 = vld [vmem:[%s2680_s1 + $0xd0] sm:$0xff] }
   0xe   : > { %s1896_s27 = smul.u32 24, %s2684_s20  ;;  %v1845_v41 = vpack.c.bf16 %v394_v40, %v393_v39  ;;  %v396_v43 = vld [vmem:[%s2680_s1 + $0xd8] sm:$0xff]  ;;  %v397_v45 = vld [vmem:[%s2680_s1 + $0xe0] sm:$0xff]  ;;  %v398_v46 = vld [vmem:[%s2680_s1 + $0xe8] sm:$0xff]  ;;  %s1568_s18 = sshll.u32 %s2684_s20, 3 }
   0xf   : > { %v1848_v44 = vpack.c.bf16 %v396_v43, %v395_v42  ;;  %v1851_v47 = vpack.c.bf16 %v398_v46, %v397_v45  ;;  %v399_v48 = vld [vmem:[%s2680_s1 + $0xf0] sm:$0xff]  ;;  %v400_v49 = vld [vmem:[%s2680_s1 + $0xf8] sm:$0xff]  ;;  %v401_v50 = vld [vmem:[%s2680_s1 + $0x100] sm:$0xff]  ;;  %s2423_s22 = scalar_lea.vmem %s2682_s3, %s1568_s18 }
  0x10   : > { %s1971_s30 = scalar_lea.vmem %s2679_s0, %s1896_s27  ;;  %1816 = vmatpush1.bf16.msra.mxu0 %v1815_v9  ;;  %1882 = vmatpush1.bf16.msra.mxu1 %v1815_v9  ;;  %v402_v51 = vld [vmem:[%s2680_s1 + $0x108] sm:$0xff]  ;;  %v1854_v52 = vpack.c.bf16 %v400_v49, %v399_v48  ;;  %v403_v54 = vld [vmem:[%s2680_s1 + $0x110] sm:$0xff]  ;;  %v404_v55 = vld [vmem:[%s2680_s1 + $0x118] sm:$0xff] }
  0x11   : > { %v178_v12 = vld [vmem:[%s1971_s30 + $0x8] sm:$0xff]  ;;  %1817 = vmatprep.subr.bf16.mxu0 %v1914_v3  ;;  %1867 = vmatprep.subr.bf16.mxu1 %v1914_v3  ;;  %v1856_v53 = vpack.c.bf16 %v402_v51, %v401_v50  ;;  %v177_v56 = vld [vmem:[%s1971_s30] sm:$0xff]  ;;  %v1860_v59 = vpack.c.bf16 %v404_v55, %v403_v54  ;;  %v180_v61 = vld [vmem:[%s1971_s30 + $0x18] sm:$0xff] }
  0x12   : > { %v322_v14 = vld [vmem:[%s1971_s30 + $0x488] sm:$0xff]  ;;  %669 = vmatprep.mubr.f32.mxu0 %v178_v12  ;;  %v321_v57 = vld [vmem:[%s1971_s30 + $0x480] sm:$0xff]  ;;  %v324_v62 = vld [vmem:[%s1971_s30 + $0x498] sm:$0xff] }
  0x13   : > { %909 = vmatprep.mubr.f32.mxu1 %v322_v14  ;;  %v181_v58 = vld [vmem:[%s1971_s30 + $0x20] sm:$0xff]  ;;  %v184_v63 = vld [vmem:[%s1971_s30 + $0x38] sm:$0xff]  ;;  %v183_v1 = vld [vmem:[%s1971_s30 + $0x30] sm:$0xff] }
  0x14   : > { %1819 = vmatpush1.bf16.msra.mxu0 %v1818_v13  ;;  %1883 = vmatpush1.bf16.msra.mxu1 %v1818_v13  ;;  %v325_v60 = vld [vmem:[%s1971_s30 + $0x4a0] sm:$0xff]  ;;  %v328_v0 = vld [vmem:[%s1971_s30 + $0x4b8] sm:$0xff]  ;;  %v327_v2 = vld [vmem:[%s1971_s30 + $0x4b0] sm:$0xff] }
  0x15   : > { %1820 = vmatprep.subr.bf16.mxu0 %v1914_v3  ;;  %1868 = vmatprep.subr.bf16.mxu1 %v1914_v3  ;;  %v331_v4 = vld [vmem:[%s1971_s30 + $0x4d0] sm:$0xff]  ;;  %v186_v5 = vld [vmem:[%s1971_s30 + $0x48] sm:$0xff]  ;;  %v189_v9 = vld [vmem:[%s1971_s30 + $0x60] sm:$0xff] }
  0x16   : > { %v330_v6 = vld [vmem:[%s1971_s30 + $0x4c8] sm:$0xff]  ;;  %v333_v10 = vld [vmem:[%s1971_s30 + $0x4e0] sm:$0xff]  ;;  %v192_v13 = vld [vmem:[%s1971_s30 + $0x78] sm:$0xff] }
  0x17   : > { %v190_v7 = vld [vmem:[%s1971_s30 + $0x68] sm:$0xff]  ;;  %v193_v11 = vld [vmem:[%s1971_s30 + $0x80] sm:$0xff]  ;;  %v336_v14 = vld [vmem:[%s1971_s30 + $0x4f8] sm:$0xff] }
  0x18   : > { %1822 = vmatpush1.bf16.msra.mxu0 %v1821_v17  ;;  %1884 = vmatpush1.bf16.msra.mxu1 %v1821_v17  ;;  %v334_v8 = vld [vmem:[%s1971_s30 + $0x4e8] sm:$0xff]  ;;  %v337_v12 = vld [vmem:[%s1971_s30 + $0x500] sm:$0xff]  ;;  %v196_v15 = vld [vmem:[%s1971_s30 + $0x98] sm:$0xff] }
  0x19   : > { %1823 = vmatprep.subr.bf16.mxu0 %v1914_v3  ;;  %1869 = vmatprep.subr.bf16.mxu1 %v1914_v3  ;;  %v340_v16 = vld [vmem:[%s1971_s30 + $0x518] sm:$0xff]  ;;  %v195_v17 = vld [vmem:[%s1971_s30 + $0x90] sm:$0xff]  ;;  %v198_v21 = vld [vmem:[%s1971_s30 + $0xa8] sm:$0xff] }
  0x1a   : > { %v339_v18 = vld [vmem:[%s1971_s30 + $0x510] sm:$0xff]  ;;  %v342_v22 = vld [vmem:[%s1971_s30 + $0x528] sm:$0xff]  ;;  %v201_v25 = vld [vmem:[%s1971_s30 + $0xc0] sm:$0xff] }
  0x1b   : > { %v199_v19 = vld [vmem:[%s1971_s30 + $0xb0] sm:$0xff]  ;;  %v346_v24 = vld [vmem:[%s1971_s30 + $0x548] sm:$0xff]  ;;  %v205_v27 = vld [vmem:[%s1971_s30 + $0xe0] sm:$0xff] }
  0x1c   : > { %1825 = vmatpush1.bf16.msra.mxu0 %v1824_v20  ;;  %1885 = vmatpush1.bf16.msra.mxu1 %v1824_v20  ;;  %v343_v20 = vld [vmem:[%s1971_s30 + $0x530] sm:$0xff]  ;;  %v349_v28 = vld [vmem:[%s1971_s30 + $0x560] sm:$0xff]  ;;  %v348_v30 = vld [vmem:[%s1971_s30 + $0x558] sm:$0xff] }
  0x1d   : > { %1826 = vmatprep.subr.bf16.mxu0 %v1914_v3  ;;  %1870 = vmatprep.subr.bf16.mxu1 %v1914_v3  ;;  %v208_v31 = vld [vmem:[%s1971_s30 + $0xf8] sm:$0xff]  ;;  %v207_v33 = vld [vmem:[%s1971_s30 + $0xf0] sm:$0xff]  ;;  %v210_v37 = vld [vmem:[%s1971_s30 + $0x108] sm:$0xff] }
  0x1e   : > { %v351_v34 = vld [vmem:[%s1971_s30 + $0x570] sm:$0xff]  ;;  %v214_v39 = vld [vmem:[%s1971_s30 + $0x128] sm:$0xff]  ;;  %v357_v42 = vld [vmem:[%s1971_s30 + $0x5a0] sm:$0xff] }
  0x1f   : > { %v355_v36 = vld [vmem:[%s1971_s30 + $0x590] sm:$0xff]  ;;  %v358_v40 = vld [vmem:[%s1971_s30 + $0x5a8] sm:$0xff]  ;;  %v217_v43 = vld [vmem:[%s1971_s30 + $0x140] sm:$0xff] }
  0x20   : > { %1828 = vmatpush1.bf16.msra.mxu0 %v1827_v23  ;;  %1886 = vmatpush1.bf16.msra.mxu1 %v1827_v23  ;;  %v202_v23 = vld [vmem:[%s1971_s30 + $0xc8] sm:$0xff]  ;;  %v216_v45 = vld [vmem:[%s1971_s30 + $0x138] sm:$0xff]  ;;  %v219_v49 = vld [vmem:[%s1971_s30 + $0x150] sm:$0xff] }
  0x21   : > { %1829 = vmatprep.subr.bf16.mxu0 %v1914_v3  ;;  %1871 = vmatprep.subr.bf16.mxu1 %v1914_v3  ;;  %v360_v46 = vld [vmem:[%s1971_s30 + $0x5b8] sm:$0xff]  ;;  %v363_v50 = vld [vmem:[%s1971_s30 + $0x5d0] sm:$0xff]  ;;  %v366_v54 = vld [vmem:[%s1971_s30 + $0x5e8] sm:$0xff] }
  0x22   : > { %v364_v48 = vld [vmem:[%s1971_s30 + $0x5d8] sm:$0xff]  ;;  %v223_v51 = vld [vmem:[%s1971_s30 + $0x170] sm:$0xff]  ;;  %v226_v55 = vld [vmem:[%s1971_s30 + $0x188] sm:$0xff] }
  0x24   : > { %1831 = vmatpush1.bf16.msra.mxu0 %v1830_v26  ;;  %1887 = vmatpush1.bf16.msra.mxu1 %v1830_v26  ;;  %v345_v26 = vld [vmem:[%s1971_s30 + $0x540] sm:$0xff] }
  0x25   : > { %1832 = vmatprep.subr.bf16.mxu0 %v1914_v3  ;;  %1872 = vmatprep.subr.bf16.mxu1 %v1914_v3 }
  0x28   : > { %1834 = vmatpush1.bf16.msra.mxu0 %v1833_v29  ;;  %1888 = vmatpush1.bf16.msra.mxu1 %v1833_v29  ;;  %v204_v29 = vld [vmem:[%s1971_s30 + $0xd8] sm:$0xff] }
  0x29   : > { %1835 = vmatprep.subr.bf16.mxu0 %v1914_v3  ;;  %1873 = vmatprep.subr.bf16.mxu1 %v1914_v3 }
  0x2c   : > { %1837 = vmatpush1.bf16.msra.mxu0 %v1836_v32  ;;  %1889 = vmatpush1.bf16.msra.mxu1 %v1836_v32  ;;  %v352_v32 = vld [vmem:[%s1971_s30 + $0x578] sm:$0xff] }
  0x2d   : > { %1838 = vmatprep.subr.bf16.mxu0 %v1914_v3  ;;  %1874 = vmatprep.subr.bf16.mxu1 %v1914_v3 }
  0x30   : > { %1840 = vmatpush1.bf16.msra.mxu0 %v1839_v35  ;;  %1890 = vmatpush1.bf16.msra.mxu1 %v1839_v35  ;;  %v211_v35 = vld [vmem:[%s1971_s30 + $0x110] sm:$0xff] }
  0x31   : > { %1841 = vmatprep.subr.bf16.mxu0 %v1914_v3  ;;  %1875 = vmatprep.subr.bf16.mxu1 %v1914_v3 }
  0x34   : > { %1843 = vmatpush1.bf16.msra.mxu0 %v1842_v38  ;;  %1891 = vmatpush1.bf16.msra.mxu1 %v1842_v38  ;;  %v354_v38 = vld [vmem:[%s1971_s30 + $0x588] sm:$0xff] }
  0x35   : > { %1844 = vmatprep.subr.bf16.mxu0 %v1914_v3  ;;  %1876 = vmatprep.subr.bf16.mxu1 %v1914_v3 }
  0x38   : > { %1846 = vmatpush1.bf16.msra.mxu0 %v1845_v41  ;;  %1892 = vmatpush1.bf16.msra.mxu1 %v1845_v41  ;;  %v213_v41 = vld [vmem:[%s1971_s30 + $0x120] sm:$0xff] }
  0x39   : > { %1847 = vmatprep.subr.bf16.mxu0 %v1914_v3  ;;  %1877 = vmatprep.subr.bf16.mxu1 %v1914_v3 }
  0x3c   : > { %1849 = vmatpush1.bf16.msra.mxu0 %v1848_v44  ;;  %1893 = vmatpush1.bf16.msra.mxu1 %v1848_v44  ;;  %v361_v44 = vld [vmem:[%s1971_s30 + $0x5c0] sm:$0xff] }
  0x3d   : > { %1850 = vmatprep.subr.bf16.mxu0 %v1914_v3  ;;  %1878 = vmatprep.subr.bf16.mxu1 %v1914_v3 }
  0x40   : > { %1852 = vmatpush1.bf16.msra.mxu0 %v1851_v47  ;;  %1894 = vmatpush1.bf16.msra.mxu1 %v1851_v47  ;;  %v220_v47 = vld [vmem:[%s1971_s30 + $0x158] sm:$0xff] }
  0x41   : > { %1853 = vmatprep.subr.bf16.mxu0 %v1914_v3  ;;  %1879 = vmatprep.subr.bf16.mxu1 %v1914_v3  ;;  %v187_v3 = vld [vmem:[%s1971_s30 + $0x50] sm:$0xff] }
  0x44   : > { %1855 = vmatpush1.bf16.msra.mxu0 %v1854_v52  ;;  %1895 = vmatpush1.bf16.msra.mxu1 %v1854_v52  ;;  %v367_v52 = vld [vmem:[%s1971_s30 + $0x5f0] sm:$0xff] }
  0x45   : > { %1857 = vmatprep.subr.bf16.mxu1 %v1856_v53 }
  0x47   : > { %670 = vmatmul.mubr.f32.vlgmr.msra.gmra.mrb[0].mxu0 %v177_v56  ;;  %910 = vmatmul.mubr.f32.vlgmr.msra.gmra.mrb[0].mxu1 %v321_v57  ;;  %v179_v56 = vld [vmem:[%s1971_s30 + $0x10] sm:$0xff]  ;;  %v225_v57 = vld [vmem:[%s1971_s30 + $0x180] sm:$0xff] }
  0x48   : > { %1859 = vmatpush3.bf16.msra.mxu1 %v1856_v53  ;;  %674 = vmatprep.mubr.f32.mxu0 %v181_v58  ;;  %v222_v53 = vld [vmem:[%s1971_s30 + $0x168] sm:$0xff] }
  0x49   : > { %914 = vmatprep.mubr.f32.mxu1 %v325_v60  ;;  %1861 = vmatprep.subr.bf16.mxu1 %v1860_v59  ;;  %v182_v58 = vld [vmem:[%s1971_s30 + $0x28] sm:$0xff]  ;;  %v185_v60 = vld [vmem:[%s1971_s30 + $0x40] sm:$0xff] }
  0x4b   : > { %675 = vmatmul.mubr.f32.gmra.mrb[2].mxu0 %v180_v61  ;;  %915 = vmatmul.mubr.f32.gmra.mrb[2].mxu1 %v324_v62  ;;  %v228_v61 = vld [vmem:[%s1971_s30 + $0x198] sm:$0xff] }
  0x4c   : > { %679 = vmatprep.mubr.f32.mxu0 %v184_v63  ;;  %919 = vmatprep.mubr.f32.mxu1 %v328_v0  ;;  %v188_v62 = vld [vmem:[%s1971_s30 + $0x58] sm:$0xff]  ;;  %v191_v0 = vld [vmem:[%s1971_s30 + $0x70] sm:$0xff] }
  0x4d   : > { %1863 = vmatpush3.bf16.msra.mxu1 %v1860_v59  ;;  %v229_v59 = vld [vmem:[%s1971_s30 + $0x1a0] sm:$0xff]  ;;  %v232_v63 = vld [vmem:[%s1971_s30 + $0x1b8] sm:$0xff] }
  0x4f   : > { %680 = vmatmul.mubr.f32.gmra.mrb[4].mxu0 %v183_v1  ;;  %920 = vmatmul.mubr.f32.gmra.mrb[4].mxu1 %v327_v2  ;;  %v231_v1 = vld [vmem:[%s1971_s30 + $0x1b0] sm:$0xff]  ;;  %v194_v2 = vld [vmem:[%s1971_s30 + $0x88] sm:$0xff] }
  0x50   : > { %684 = vmatprep.mubr.f32.mxu0 %v187_v3  ;;  %924 = vmatprep.mubr.f32.mxu1 %v331_v4  ;;  %v235_v3 = vld [vmem:[%s1971_s30 + $0x1d0] sm:$0xff]  ;;  %v197_v4 = vld [vmem:[%s1971_s30 + $0xa0] sm:$0xff] }
  0x53   : > { %685 = vmatmul.mubr.f32.gmra.mrb[6].mxu0 %v186_v5  ;;  %925 = vmatmul.mubr.f32.gmra.mrb[6].mxu1 %v330_v6  ;;  %v234_v5 = vld [vmem:[%s1971_s30 + $0x1c8] sm:$0xff]  ;;  %v200_v6 = vld [vmem:[%s1971_s30 + $0xb8] sm:$0xff] }
  0x54   : > { %689 = vmatprep.mubr.f32.mxu0 %v190_v7  ;;  %929 = vmatprep.mubr.f32.mxu1 %v334_v8  ;;  %v238_v7 = vld [vmem:[%s1971_s30 + $0x1e8] sm:$0xff]  ;;  %v203_v8 = vld [vmem:[%s1971_s30 + $0xd0] sm:$0xff] }
  0x57   : > { %690 = vmatmul.mubr.f32.gmra.mrb[8].mxu0 %v189_v9  ;;  %930 = vmatmul.mubr.f32.gmra.mrb[8].mxu1 %v333_v10  ;;  %v237_v9 = vld [vmem:[%s1971_s30 + $0x1e0] sm:$0xff]  ;;  %v206_v10 = vld [vmem:[%s1971_s30 + $0xe8] sm:$0xff] }
  0x58   : > { %694 = vmatprep.mubr.f32.mxu0 %v193_v11  ;;  %934 = vmatprep.mubr.f32.mxu1 %v337_v12  ;;  %v241_v11 = vld [vmem:[%s1971_s30 + $0x200] sm:$0xff] }
  0x59   : > { %v209_v12 = vld [vmem:[%s1971_s30 + $0x100] sm:$0xff] }
  0x5b   : > { %695 = vmatmul.mubr.f32.gmra.mrb[10].mxu0 %v192_v13  ;;  %935 = vmatmul.mubr.f32.gmra.mrb[10].mxu1 %v336_v14  ;;  %v240_v13 = vld [vmem:[%s1971_s30 + $0x1f8] sm:$0xff] }
  0x5c   : > { %699 = vmatprep.mubr.f32.mxu0 %v196_v15  ;;  %939 = vmatprep.mubr.f32.mxu1 %v340_v16  ;;  %v212_v14 = vld [vmem:[%s1971_s30 + $0x118] sm:$0xff]  ;;  %v215_v16 = vld [vmem:[%s1971_s30 + $0x130] sm:$0xff] }
  0x5d   : > { %v244_v15 = vld [vmem:[%s1971_s30 + $0x218] sm:$0xff] }
  0x5f   : > { %700 = vmatmul.mubr.f32.gmra.mrb[12].mxu0 %v195_v17  ;;  %940 = vmatmul.mubr.f32.gmra.mrb[12].mxu1 %v339_v18  ;;  %v243_v17 = vld [vmem:[%s1971_s30 + $0x210] sm:$0xff]  ;;  %v218_v18 = vld [vmem:[%s1971_s30 + $0x148] sm:$0xff] }
  0x60   : > { %704 = vmatprep.mubr.f32.mxu0 %v199_v19  ;;  %944 = vmatprep.mubr.f32.mxu1 %v343_v20  ;;  %v247_v19 = vld [vmem:[%s1971_s30 + $0x230] sm:$0xff]  ;;  %v221_v20 = vld [vmem:[%s1971_s30 + $0x160] sm:$0xff] }
  0x63   : > { %705 = vmatmul.mubr.f32.gmra.mrb[14].mxu0 %v198_v21  ;;  %945 = vmatmul.mubr.f32.gmra.mrb[14].mxu1 %v342_v22  ;;  %v246_v21 = vld [vmem:[%s1971_s30 + $0x228] sm:$0xff]  ;;  %v224_v22 = vld [vmem:[%s1971_s30 + $0x178] sm:$0xff] }
  0x64   : > { %709 = vmatprep.mubr.f32.mxu0 %v202_v23  ;;  %949 = vmatprep.mubr.f32.mxu1 %v346_v24  ;;  %v250_v23 = vld [vmem:[%s1971_s30 + $0x248] sm:$0xff]  ;;  %v227_v24 = vld [vmem:[%s1971_s30 + $0x190] sm:$0xff] }
  0x67   : > { %710 = vmatmul.mubr.f32.gmra.mrb[16].mxu0 %v201_v25  ;;  %950 = vmatmul.mubr.f32.gmra.mrb[16].mxu1 %v345_v26  ;;  %v249_v25 = vld [vmem:[%s1971_s30 + $0x240] sm:$0xff]  ;;  %v230_v26 = vld [vmem:[%s1971_s30 + $0x1a8] sm:$0xff] }
  0x68   : > { %714 = vmatprep.mubr.f32.mxu0 %v205_v27  ;;  %954 = vmatprep.mubr.f32.mxu1 %v349_v28  ;;  %v253_v27 = vld [vmem:[%s1971_s30 + $0x260] sm:$0xff] }
  0x69   : > { %v233_v28 = vld [vmem:[%s1971_s30 + $0x1c0] sm:$0xff] }
  0x6b   : > { %715 = vmatmul.mubr.f32.gmra.mrb[18].mxu0 %v204_v29  ;;  %955 = vmatmul.mubr.f32.gmra.mrb[18].mxu1 %v348_v30  ;;  %v252_v29 = vld [vmem:[%s1971_s30 + $0x258] sm:$0xff] }
  0x6c   : > { %719 = vmatprep.mubr.f32.mxu0 %v208_v31  ;;  %959 = vmatprep.mubr.f32.mxu1 %v352_v32  ;;  %v236_v30 = vld [vmem:[%s1971_s30 + $0x1d8] sm:$0xff]  ;;  %v239_v32 = vld [vmem:[%s1971_s30 + $0x1f0] sm:$0xff] }
  0x6d   : > { %v256_v31 = vld [vmem:[%s1971_s30 + $0x278] sm:$0xff] }
  0x6f   : > { %720 = vmatmul.mubr.f32.gmra.mrb[20].mxu0 %v207_v33  ;;  %960 = vmatmul.mubr.f32.gmra.mrb[20].mxu1 %v351_v34  ;;  %v255_v33 = vld [vmem:[%s1971_s30 + $0x270] sm:$0xff]  ;;  %v242_v34 = vld [vmem:[%s1971_s30 + $0x208] sm:$0xff] }
  0x70   : > { %724 = vmatprep.mubr.f32.mxu0 %v211_v35  ;;  %964 = vmatprep.mubr.f32.mxu1 %v355_v36  ;;  %v259_v35 = vld [vmem:[%s1971_s30 + $0x290] sm:$0xff]  ;;  %v245_v36 = vld [vmem:[%s1971_s30 + $0x220] sm:$0xff] }
  0x73   : > { %725 = vmatmul.mubr.f32.gmra.mrb[22].mxu0 %v210_v37  ;;  %965 = vmatmul.mubr.f32.gmra.mrb[22].mxu1 %v354_v38  ;;  %v258_v37 = vld [vmem:[%s1971_s30 + $0x288] sm:$0xff]  ;;  %v248_v38 = vld [vmem:[%s1971_s30 + $0x238] sm:$0xff] }
  0x74   : > { %729 = vmatprep.mubr.f32.mxu0 %v214_v39  ;;  %969 = vmatprep.mubr.f32.mxu1 %v358_v40  ;;  %v262_v39 = vld [vmem:[%s1971_s30 + $0x2a8] sm:$0xff]  ;;  %v251_v40 = vld [vmem:[%s1971_s30 + $0x250] sm:$0xff] }
  0x77   : > { %730 = vmatmul.mubr.f32.gmra.mrb[24].mxu0 %v213_v41  ;;  %970 = vmatmul.mubr.f32.gmra.mrb[24].mxu1 %v357_v42  ;;  %v261_v41 = vld [vmem:[%s1971_s30 + $0x2a0] sm:$0xff]  ;;  %v254_v42 = vld [vmem:[%s1971_s30 + $0x268] sm:$0xff] }
  0x78   : > { %734 = vmatprep.mubr.f32.mxu0 %v217_v43  ;;  %974 = vmatprep.mubr.f32.mxu1 %v361_v44  ;;  %v265_v43 = vld [vmem:[%s1971_s30 + $0x2c0] sm:$0xff] }
  0x79   : > { %v257_v44 = vld [vmem:[%s1971_s30 + $0x280] sm:$0xff] }
  0x7b   : > { %735 = vmatmul.mubr.f32.gmra.mrb[26].mxu0 %v216_v45  ;;  %975 = vmatmul.mubr.f32.gmra.mrb[26].mxu1 %v360_v46  ;;  %v264_v45 = vld [vmem:[%s1971_s30 + $0x2b8] sm:$0xff] }
  0x7c   : > { %739 = vmatprep.mubr.f32.mxu0 %v220_v47  ;;  %979 = vmatprep.mubr.f32.mxu1 %v364_v48  ;;  %v260_v46 = vld [vmem:[%s1971_s30 + $0x298] sm:$0xff]  ;;  %v263_v48 = vld [vmem:[%s1971_s30 + $0x2b0] sm:$0xff] }
  0x7d   : > { %v268_v47 = vld [vmem:[%s1971_s30 + $0x2d8] sm:$0xff] }
  0x7f   : > { %740 = vmatmul.mubr.f32.gmra.mrb[28].mxu0 %v219_v49  ;;  %980 = vmatmul.mubr.f32.gmra.mrb[28].mxu1 %v363_v50  ;;  %v267_v49 = vld [vmem:[%s1971_s30 + $0x2d0] sm:$0xff]  ;;  %v266_v50 = vld [vmem:[%s1971_s30 + $0x2c8] sm:$0xff] }
  0x80   : > { %744 = vmatprep.mubr.f32.mxu0 %v223_v51  ;;  %984 = vmatprep.mubr.f32.mxu1 %v367_v52  ;;  %v271_v51 = vld [vmem:[%s1971_s30 + $0x2f0] sm:$0xff]  ;;  %v269_v52 = vld [vmem:[%s1971_s30 + $0x2e0] sm:$0xff] }
  0x83   : > { %745 = vmatmul.mubr.f32.gmra.mrb[30].mxu0 %v222_v53  ;;  %985 = vmatmul.mubr.f32.gmra.mrb[30].mxu1 %v366_v54  ;;  %v270_v53 = vld [vmem:[%s1971_s30 + $0x2e8] sm:$0xff]  ;;  %v272_v54 = vld [vmem:[%s1971_s30 + $0x2f8] sm:$0xff] }
  0x84   : > { %749 = vmatprep.mubr.f32.mxu0 %v226_v55  ;;  %1712 = vmatprep.mubr.msk.f32.mxu1 %vm412_vm0, %v179_v56  ;;  %v274_v55 = vld [vmem:[%s1971_s30 + $0x308] sm:$0xff]  ;;  %v275_v56 = vld [vmem:[%s1971_s30 + $0x310] sm:$0xff] }
  0x87   : > { %750 = vmatmul.mubr.f32.gmra.mrb[32].mxu0 %v225_v57  ;;  %1713 = vmatmul.mubr.msk.f32.vlgmr.msra.gmra.mrb[32].mxu1 %vm412_vm0, %v182_v58  ;;  %v273_v57 = vld [vmem:[%s1971_s30 + $0x300] sm:$0xff]  ;;  %v278_v58 = vld [vmem:[%s1971_s30 + $0x328] sm:$0xff] }
  0x88   : > { %754 = vmatprep.mubr.f32.mxu0 %v229_v59  ;;  %1715 = vmatprep.mubr.msk.f32.mxu1 %vm412_vm0, %v185_v60  ;;  %v277_v59 = vld [vmem:[%s1971_s30 + $0x320] sm:$0xff] }
  0x89   : > { %v281_v60 = vld [vmem:[%s1971_s30 + $0x340] sm:$0xff] }
  0x8b   : > { %755 = vmatmul.mubr.f32.gmra.mrb[34].mxu0 %v228_v61  ;;  %1716 = vmatmul.mubr.msk.f32.gmra.mrb[34].mxu1 %vm412_vm0, %v188_v62  ;;  %v276_v61 = vld [vmem:[%s1971_s30 + $0x318] sm:$0xff] }
  0x8c   : > { %759 = vmatprep.mubr.f32.mxu0 %v232_v63  ;;  %1718 = vmatprep.mubr.msk.f32.mxu1 %vm412_vm0, %v191_v0  ;;  %v284_v62 = vld [vmem:[%s1971_s30 + $0x358] sm:$0xff]  ;;  %v287_v0 = vld [vmem:[%s1971_s30 + $0x370] sm:$0xff] }
  0x8d   : > { %v280_v63 = vld [vmem:[%s1971_s30 + $0x338] sm:$0xff] }
  0x8f   : > { %760 = vmatmul.mubr.f32.gmra.mrb[36].mxu0 %v231_v1  ;;  %1719 = vmatmul.mubr.msk.f32.gmra.mrb[36].mxu1 %vm412_vm0, %v194_v2  ;;  %v279_v1 = vld [vmem:[%s1971_s30 + $0x330] sm:$0xff]  ;;  %v290_v2 = vld [vmem:[%s1971_s30 + $0x388] sm:$0xff] }
  0x90   : > { %764 = vmatprep.mubr.f32.mxu0 %v235_v3  ;;  %1721 = vmatprep.mubr.msk.f32.mxu1 %vm412_vm0, %v197_v4  ;;  %v283_v3 = vld [vmem:[%s1971_s30 + $0x350] sm:$0xff]  ;;  %v293_v4 = vld [vmem:[%s1971_s30 + $0x3a0] sm:$0xff] }
  0x93   : > { %765 = vmatmul.mubr.f32.gmra.mrb[38].mxu0 %v234_v5  ;;  %1722 = vmatmul.mubr.msk.f32.gmra.mrb[38].mxu1 %vm412_vm0, %v200_v6  ;;  %v282_v5 = vld [vmem:[%s1971_s30 + $0x348] sm:$0xff]  ;;  %v296_v6 = vld [vmem:[%s1971_s30 + $0x3b8] sm:$0xff] }
  0x94   : > { %769 = vmatprep.mubr.f32.mxu0 %v238_v7  ;;  %1724 = vmatprep.mubr.msk.f32.mxu1 %vm412_vm0, %v203_v8  ;;  %v286_v7 = vld [vmem:[%s1971_s30 + $0x368] sm:$0xff]  ;;  %v299_v8 = vld [vmem:[%s1971_s30 + $0x3d0] sm:$0xff] }
  0x97   : > { %770 = vmatmul.mubr.f32.gmra.mrb[40].mxu0 %v237_v9  ;;  %1725 = vmatmul.mubr.msk.f32.gmra.mrb[40].mxu1 %vm412_vm0, %v206_v10  ;;  %v285_v9 = vld [vmem:[%s1971_s30 + $0x360] sm:$0xff]  ;;  %v302_v10 = vld [vmem:[%s1971_s30 + $0x3e8] sm:$0xff] }
  0x98   : > { %774 = vmatprep.mubr.f32.mxu0 %v241_v11  ;;  %1727 = vmatprep.mubr.msk.f32.mxu1 %vm412_vm0, %v209_v12  ;;  %v289_v11 = vld [vmem:[%s1971_s30 + $0x380] sm:$0xff] }
  0x99   : > { %v305_v12 = vld [vmem:[%s1971_s30 + $0x400] sm:$0xff] }
  0x9b   : > { %775 = vmatmul.mubr.f32.gmra.mrb[42].mxu0 %v240_v13  ;;  %1728 = vmatmul.mubr.msk.f32.gmra.mrb[42].mxu1 %vm412_vm0, %v212_v14  ;;  %v288_v13 = vld [vmem:[%s1971_s30 + $0x378] sm:$0xff] }
  0x9c   : > { %779 = vmatprep.mubr.f32.mxu0 %v244_v15  ;;  %1730 = vmatprep.mubr.msk.f32.mxu1 %vm412_vm0, %v215_v16  ;;  %v308_v14 = vld [vmem:[%s1971_s30 + $0x418] sm:$0xff]  ;;  %v311_v16 = vld [vmem:[%s1971_s30 + $0x430] sm:$0xff] }
  0x9d   : > { %v292_v15 = vld [vmem:[%s1971_s30 + $0x398] sm:$0xff] }
  0x9f   : > { %780 = vmatmul.mubr.f32.gmra.mrb[44].mxu0 %v243_v17  ;;  %1731 = vmatmul.mubr.msk.f32.gmra.mrb[44].mxu1 %vm412_vm0, %v218_v18  ;;  %v291_v17 = vld [vmem:[%s1971_s30 + $0x390] sm:$0xff]  ;;  %v314_v18 = vld [vmem:[%s1971_s30 + $0x448] sm:$0xff] }
  0xa0   : > { %784 = vmatprep.mubr.f32.mxu0 %v247_v19  ;;  %1733 = vmatprep.mubr.msk.f32.mxu1 %vm412_vm0, %v221_v20  ;;  %v295_v19 = vld [vmem:[%s1971_s30 + $0x3b0] sm:$0xff]  ;;  %v317_v20 = vld [vmem:[%s1971_s30 + $0x460] sm:$0xff] }
  0xa3   : > { %785 = vmatmul.mubr.f32.gmra.mrb[46].mxu0 %v246_v21  ;;  %1734 = vmatmul.mubr.msk.f32.gmra.mrb[46].mxu1 %vm412_vm0, %v224_v22  ;;  %v294_v21 = vld [vmem:[%s1971_s30 + $0x3a8] sm:$0xff]  ;;  %v320_v22 = vld [vmem:[%s1971_s30 + $0x478] sm:$0xff] }
  0xa4   : > { %789 = vmatprep.mubr.f32.mxu0 %v250_v23  ;;  %1736 = vmatprep.mubr.msk.f32.mxu1 %vm412_vm0, %v227_v24  ;;  %v298_v23 = vld [vmem:[%s1971_s30 + $0x3c8] sm:$0xff]  ;;  %v323_v24 = vld [vmem:[%s1971_s30 + $0x490] sm:$0xff] }
  0xa7   : > { %790 = vmatmul.mubr.f32.gmra.mrb[48].mxu0 %v249_v25  ;;  %1737 = vmatmul.mubr.msk.f32.gmra.mrb[48].mxu1 %vm412_vm0, %v230_v26  ;;  %v297_v25 = vld [vmem:[%s1971_s30 + $0x3c0] sm:$0xff]  ;;  %v326_v26 = vld [vmem:[%s1971_s30 + $0x4a8] sm:$0xff] }
  0xa8   : > { %794 = vmatprep.mubr.f32.mxu0 %v253_v27  ;;  %1739 = vmatprep.mubr.msk.f32.mxu1 %vm412_vm0, %v233_v28  ;;  %v301_v27 = vld [vmem:[%s1971_s30 + $0x3e0] sm:$0xff] }
  0xa9   : > { %v329_v28 = vld [vmem:[%s1971_s30 + $0x4c0] sm:$0xff] }
  0xab   : > { %795 = vmatmul.mubr.f32.gmra.mrb[50].mxu0 %v252_v29  ;;  %1740 = vmatmul.mubr.msk.f32.gmra.mrb[50].mxu1 %vm412_vm0, %v236_v30  ;;  %v300_v29 = vld [vmem:[%s1971_s30 + $0x3d8] sm:$0xff] }
  0xac   : > { %799 = vmatprep.mubr.f32.mxu0 %v256_v31  ;;  %1742 = vmatprep.mubr.msk.f32.mxu1 %vm412_vm0, %v239_v32  ;;  %v332_v30 = vld [vmem:[%s1971_s30 + $0x4d8] sm:$0xff]  ;;  %v335_v32 = vld [vmem:[%s1971_s30 + $0x4f0] sm:$0xff] }
  0xad   : > { %v304_v31 = vld [vmem:[%s1971_s30 + $0x3f8] sm:$0xff] }
  0xaf   : > { %800 = vmatmul.mubr.f32.gmra.mrb[52].mxu0 %v255_v33  ;;  %1743 = vmatmul.mubr.msk.f32.gmra.mrb[52].mxu1 %vm412_vm0, %v242_v34  ;;  %v303_v33 = vld [vmem:[%s1971_s30 + $0x3f0] sm:$0xff]  ;;  %v338_v34 = vld [vmem:[%s1971_s30 + $0x508] sm:$0xff] }
  0xb0   : > { %804 = vmatprep.mubr.f32.mxu0 %v259_v35  ;;  %1745 = vmatprep.mubr.msk.f32.mxu1 %vm412_vm0, %v245_v36  ;;  %v307_v35 = vld [vmem:[%s1971_s30 + $0x410] sm:$0xff]  ;;  %v341_v36 = vld [vmem:[%s1971_s30 + $0x520] sm:$0xff] }
  0xb3   : > { %805 = vmatmul.mubr.f32.gmra.mrb[54].mxu0 %v258_v37  ;;  %1746 = vmatmul.mubr.msk.f32.gmra.mrb[54].mxu1 %vm412_vm0, %v248_v38  ;;  %v306_v37 = vld [vmem:[%s1971_s30 + $0x408] sm:$0xff]  ;;  %v344_v38 = vld [vmem:[%s1971_s30 + $0x538] sm:$0xff] }
  0xb4   : > { %809 = vmatprep.mubr.f32.mxu0 %v262_v39  ;;  %1748 = vmatprep.mubr.msk.f32.mxu1 %vm412_vm0, %v251_v40  ;;  %v310_v39 = vld [vmem:[%s1971_s30 + $0x428] sm:$0xff]  ;;  %v347_v40 = vld [vmem:[%s1971_s30 + $0x550] sm:$0xff] }
  0xb7   : > { %810 = vmatmul.mubr.f32.gmra.mrb[56].mxu0 %v261_v41  ;;  %1749 = vmatmul.mubr.msk.f32.gmra.mrb[56].mxu1 %vm412_vm0, %v254_v42  ;;  %v309_v41 = vld [vmem:[%s1971_s30 + $0x420] sm:$0xff]  ;;  %v350_v42 = vld [vmem:[%s1971_s30 + $0x568] sm:$0xff] }
  0xb8   : > { %814 = vmatprep.mubr.f32.mxu0 %v265_v43  ;;  %1751 = vmatprep.mubr.msk.f32.mxu1 %vm412_vm0, %v257_v44  ;;  %v313_v43 = vld [vmem:[%s1971_s30 + $0x440] sm:$0xff] }
  0xb9   : > { %v353_v44 = vld [vmem:[%s1971_s30 + $0x580] sm:$0xff] }
  0xbb   : > { %815 = vmatmul.mubr.f32.gmra.mrb[58].mxu0 %v264_v45  ;;  %1752 = vmatmul.mubr.msk.f32.gmra.mrb[58].mxu1 %vm412_vm0, %v260_v46  ;;  %v312_v45 = vld [vmem:[%s1971_s30 + $0x438] sm:$0xff] }
  0xbc   : > { %819 = vmatprep.mubr.f32.mxu0 %v268_v47  ;;  %1754 = vmatprep.mubr.msk.f32.mxu1 %vm412_vm0, %v263_v48  ;;  %v356_v46 = vld [vmem:[%s1971_s30 + $0x598] sm:$0xff]  ;;  %v359_v48 = vld [vmem:[%s1971_s30 + $0x5b0] sm:$0xff] }
  0xbd   : > { %v316_v47 = vld [vmem:[%s1971_s30 + $0x458] sm:$0xff] }
  0xbf   : > { %820 = vmatmul.mubr.f32.gmra.mrb[60].mxu0 %v267_v49  ;;  %1755 = vmatmul.mubr.msk.f32.gmra.mrb[60].mxu1 %vm412_vm0, %v266_v50  ;;  %v315_v49 = vld [vmem:[%s1971_s30 + $0x450] sm:$0xff]  ;;  %v362_v50 = vld [vmem:[%s1971_s30 + $0x5c8] sm:$0xff] }
  0xc0   : > { %824 = vmatprep.mubr.f32.mxu0 %v271_v51  ;;  %1757 = vmatprep.mubr.msk.f32.mxu1 %vm412_vm0, %v269_v52  ;;  %v319_v51 = vld [vmem:[%s1971_s30 + $0x470] sm:$0xff]  ;;  %v365_v52 = vld [vmem:[%s1971_s30 + $0x5e0] sm:$0xff] }
  0xc3   : > { %825 = vmatmul.mubr.f32.gmra.mrb[62].mxu0 %v270_v53  ;;  %1758 = vmatmul.mubr.msk.f32.gmra.mrb[62].mxu1 %vm412_vm0, %v272_v54  ;;  %v318_v53 = vld [vmem:[%s1971_s30 + $0x468] sm:$0xff]  ;;  %v368_v54 = vld [vmem:[%s1971_s30 + $0x5f8] sm:$0xff] }
  0xc4   : > { %829 = vmatprep.mubr.f32.mxu0 %v274_v55  ;;  %1760 = vmatprep.mubr.msk.f32.mxu1 %vm412_vm0, %v275_v56 }
  0xc7   : > { %830 = vmatmul.mubr.f32.gmra.mrb[64].mxu0 %v273_v57  ;;  %1761 = vmatmul.mubr.msk.f32.gmra.mrb[64].mxu1 %vm412_vm0, %v278_v58 }
  0xc8   : > { %834 = vmatprep.mubr.f32.mxu0 %v277_v59  ;;  %1763 = vmatprep.mubr.msk.f32.mxu1 %vm412_vm0, %v281_v60 }
  0xcb   : > { %835 = vmatmul.mubr.f32.gmra.mrb[66].mxu0 %v276_v61  ;;  %1764 = vmatmul.mubr.msk.f32.gmra.mrb[66].mxu1 %vm412_vm0, %v284_v62 }
  0xcc   : > { %839 = vmatprep.mubr.f32.mxu0 %v280_v63  ;;  %1766 = vmatprep.mubr.msk.f32.mxu1 %vm412_vm0, %v287_v0 }
  0xcf   : > { %840 = vmatmul.mubr.f32.gmra.mrb[68].mxu0 %v279_v1  ;;  %1767 = vmatmul.mubr.msk.f32.gmra.mrb[68].mxu1 %vm412_vm0, %v290_v2 }
  0xd0   : > { %844 = vmatprep.mubr.f32.mxu0 %v283_v3  ;;  %1769 = vmatprep.mubr.msk.f32.mxu1 %vm412_vm0, %v293_v4 }
  0xd3   : > { %845 = vmatmul.mubr.f32.gmra.mrb[70].mxu0 %v282_v5  ;;  %1770 = vmatmul.mubr.msk.f32.gmra.mrb[70].mxu1 %vm412_vm0, %v296_v6 }
  0xd4   : > { %849 = vmatprep.mubr.f32.mxu0 %v286_v7  ;;  %1772 = vmatprep.mubr.msk.f32.mxu1 %vm412_vm0, %v299_v8 }
  0xd7   : > { %850 = vmatmul.mubr.f32.gmra.mrb[72].mxu0 %v285_v9  ;;  %1773 = vmatmul.mubr.msk.f32.gmra.mrb[72].mxu1 %vm412_vm0, %v302_v10 }
  0xd8   : > { %854 = vmatprep.mubr.f32.mxu0 %v289_v11  ;;  %1775 = vmatprep.mubr.msk.f32.mxu1 %vm412_vm0, %v305_v12 }
  0xdb   : > { %855 = vmatmul.mubr.f32.gmra.mrb[74].mxu0 %v288_v13  ;;  %1776 = vmatmul.mubr.msk.f32.gmra.mrb[74].mxu1 %vm412_vm0, %v308_v14 }
  0xdc   : > { %859 = vmatprep.mubr.f32.mxu0 %v292_v15  ;;  %1778 = vmatprep.mubr.msk.f32.mxu1 %vm412_vm0, %v311_v16 }
  0xdf   : > { %860 = vmatmul.mubr.f32.gmra.mrb[76].mxu0 %v291_v17  ;;  %1779 = vmatmul.mubr.msk.f32.gmra.mrb[76].mxu1 %vm412_vm0, %v314_v18 }
  0xe0   : > { %864 = vmatprep.mubr.f32.mxu0 %v295_v19  ;;  %1781 = vmatprep.mubr.msk.f32.mxu1 %vm412_vm0, %v317_v20 }
  0xe3   : > { %865 = vmatmul.mubr.f32.gmra.mrb[78].mxu0 %v294_v21  ;;  %1782 = vmatmul.mubr.msk.f32.gmra.mrb[78].mxu1 %vm412_vm0, %v320_v22 }
  0xe4   : > { %869 = vmatprep.mubr.f32.mxu0 %v298_v23  ;;  %1784 = vmatprep.mubr.msk.f32.mxu1 %vm412_vm0, %v323_v24 }
  0xe7   : > { %870 = vmatmul.mubr.f32.gmra.mrb[80].mxu0 %v297_v25  ;;  %1785 = vmatmul.mubr.msk.f32.gmra.mrb[80].mxu1 %vm412_vm0, %v326_v26 }
  0xe8   : > { %874 = vmatprep.mubr.f32.mxu0 %v301_v27  ;;  %1787 = vmatprep.mubr.msk.f32.mxu1 %vm412_vm0, %v329_v28 }
  0xeb   : > { %875 = vmatmul.mubr.f32.gmra.mrb[82].mxu0 %v300_v29  ;;  %1788 = vmatmul.mubr.msk.f32.gmra.mrb[82].mxu1 %vm412_vm0, %v332_v30 }
  0xec   : > { %879 = vmatprep.mubr.f32.mxu0 %v304_v31  ;;  %1790 = vmatprep.mubr.msk.f32.mxu1 %vm412_vm0, %v335_v32 }
  0xef   : > { %880 = vmatmul.mubr.f32.gmra.mrb[84].mxu0 %v303_v33  ;;  %1791 = vmatmul.mubr.msk.f32.gmra.mrb[84].mxu1 %vm412_vm0, %v338_v34 }
  0xf0   : > { %884 = vmatprep.mubr.f32.mxu0 %v307_v35  ;;  %1793 = vmatprep.mubr.msk.f32.mxu1 %vm412_vm0, %v341_v36 }
  0xf3   : > { %885 = vmatmul.mubr.f32.gmra.mrb[86].mxu0 %v306_v37  ;;  %1794 = vmatmul.mubr.msk.f32.gmra.mrb[86].mxu1 %vm412_vm0, %v344_v38 }
  0xf4   : > { %889 = vmatprep.mubr.f32.mxu0 %v310_v39  ;;  %1796 = vmatprep.mubr.msk.f32.mxu1 %vm412_vm0, %v347_v40 }
  0xf7   : > { %890 = vmatmul.mubr.f32.gmra.mrb[88].mxu0 %v309_v41  ;;  %1797 = vmatmul.mubr.msk.f32.gmra.mrb[88].mxu1 %vm412_vm0, %v350_v42 }
  0xf8   : > { %894 = vmatprep.mubr.f32.mxu0 %v313_v43  ;;  %1799 = vmatprep.mubr.msk.f32.mxu1 %vm412_vm0, %v353_v44 }
  0xfb   : > { %895 = vmatmul.mubr.f32.gmra.mrb[90].mxu0 %v312_v45  ;;  %1800 = vmatmul.mubr.msk.f32.gmra.mrb[90].mxu1 %vm412_vm0, %v356_v46 }
  0xfc   : > { %899 = vmatprep.mubr.f32.mxu0 %v316_v47  ;;  %1802 = vmatprep.mubr.msk.f32.mxu1 %vm412_vm0, %v359_v48 }
  0xff   : > { %900 = vmatmul.mubr.f32.gmra.mrb[92].mxu0 %v315_v49  ;;  %1803 = vmatmul.mubr.msk.f32.gmra.mrb[92].mxu1 %vm412_vm0, %v362_v50 }
 0x100   : > { %904 = vmatprep.mubr.f32.mxu0 %v319_v51  ;;  %1805 = vmatprep.mubr.msk.f32.mxu1 %vm412_vm0, %v365_v52 }
 0x103   : > { %905 = vmatmul.mubr.f32.gmra.mrb[94].mxu0 %v318_v53  ;;  %1806 = vmatmul.mubr.msk.f32.gmra.mrb[94].mxu1 %vm412_vm0, %v368_v54  ;;  %v2412_v53 = vld [vmem:[%s2681_s2] ss:$0 sm:$0xff] }
 0x11a   : > { %v2347_v55 = vpop.f32.mrb[0].mxu0  ;;  %v2349_v56 = vpop.f32.mrb[0].mxu1 }
 0x11b   : > { %v673_v57 = vpop.f32.mrb[1].mxu0  ;;  %v913_v58 = vpop.f32.mrb[1].mxu1 }
 0x11e   : > { %v676_v59 = vpop.f32.mrb[2].mxu0  ;;  %v2351_v60 = vpop.f32.mrb[2].mxu1 }
 0x11f   : > { %v678_v61 = vpop.f32.mrb[3].mxu0  ;;  %v918_v62 = vpop.f32.mrb[3].mxu1  ;;  %v677_v58 = vadd.f32 %v2412_v53, %v676_v59 }
 0x120   : > { %v672_v61 = vadd.f32 %v2412_v53, %v2347_v55 }
 0x122   : > { %v2353_v63 = vpop.f32.mrb[4].mxu0  ;;  %v2355_v0 = vpop.f32.mrb[4].mxu1 }
 0x123   : > { %v683_v1 = vpop.f32.mrb[5].mxu0  ;;  %v923_v2 = vpop.f32.mrb[5].mxu1  ;;  %v682_v55 = vadd.f32 %v2412_v53, %v2353_v63 }
 0x126   : > { %v2357_v3 = vpop.f32.mrb[6].mxu0  ;;  %v2359_v4 = vpop.f32.mrb[6].mxu1 }
 0x127   : > { %v688_v5 = vpop.f32.mrb[7].mxu0  ;;  %v928_v6 = vpop.f32.mrb[7].mxu1  ;;  %v687_v59 = vadd.f32 %v2412_v53, %v2357_v3 }
 0x12a   : > { %v2361_v7 = vpop.f32.mrb[8].mxu0  ;;  %v2363_v8 = vpop.f32.mrb[8].mxu1 }
 0x12b   : > { %v693_v9 = vpop.f32.mrb[9].mxu0  ;;  %v933_v10 = vpop.f32.mrb[9].mxu1  ;;  %v692_v63 = vadd.f32 %v2412_v53, %v2361_v7 }
 0x12e   : > { %v2365_v11 = vpop.f32.mrb[10].mxu0  ;;  %v2367_v12 = vpop.f32.mrb[10].mxu1 }
 0x12f   : > { %v698_v13 = vpop.f32.mrb[11].mxu0  ;;  %v938_v14 = vpop.f32.mrb[11].mxu1  ;;  %v697_v3 = vadd.f32 %v2412_v53, %v2365_v11 }
 0x132   : > { %v2369_v15 = vpop.f32.mrb[12].mxu0  ;;  %v2371_v16 = vpop.f32.mrb[12].mxu1 }
 0x133   : > { %v703_v17 = vpop.f32.mrb[13].mxu0  ;;  %v943_v18 = vpop.f32.mrb[13].mxu1  ;;  %v702_v7 = vadd.f32 %v2412_v53, %v2369_v15 }
 0x136   : > { %v2373_v19 = vpop.f32.mrb[14].mxu0  ;;  %v2375_v20 = vpop.f32.mrb[14].mxu1 }
 0x137   : > { %v708_v21 = vpop.f32.mrb[15].mxu0  ;;  %v948_v22 = vpop.f32.mrb[15].mxu1  ;;  %v707_v11 = vadd.f32 %v2412_v53, %v2373_v19 }
 0x13a   : > { %v2377_v23 = vpop.f32.mrb[16].mxu0  ;;  %v2379_v24 = vpop.f32.mrb[16].mxu1 }
 0x13b   : > { %v713_v25 = vpop.f32.mrb[17].mxu0  ;;  %v953_v26 = vpop.f32.mrb[17].mxu1  ;;  %v712_v15 = vadd.f32 %v2412_v53, %v2377_v23 }
 0x13e   : > { %v2381_v27 = vpop.f32.mrb[18].mxu0  ;;  %v2383_v28 = vpop.f32.mrb[18].mxu1 }
 0x13f   : > { %v718_v29 = vpop.f32.mrb[19].mxu0  ;;  %v958_v30 = vpop.f32.mrb[19].mxu1  ;;  %v717_v19 = vadd.f32 %v2412_v53, %v2381_v27 }
 0x142   : > { %v2385_v31 = vpop.f32.mrb[20].mxu0  ;;  %v2387_v32 = vpop.f32.mrb[20].mxu1 }
 0x143   : > { %v723_v33 = vpop.f32.mrb[21].mxu0  ;;  %v963_v34 = vpop.f32.mrb[21].mxu1  ;;  %v722_v23 = vadd.f32 %v2412_v53, %v2385_v31 }
 0x146   : > { %v2389_v35 = vpop.f32.mrb[22].mxu0  ;;  %v2391_v36 = vpop.f32.mrb[22].mxu1 }
 0x147   : > { %v728_v37 = vpop.f32.mrb[23].mxu0  ;;  %v968_v38 = vpop.f32.mrb[23].mxu1  ;;  %v727_v27 = vadd.f32 %v2412_v53, %v2389_v35 }
 0x14a   : > { %v2393_v39 = vpop.f32.mrb[24].mxu0  ;;  %v2395_v40 = vpop.f32.mrb[24].mxu1 }
 0x14b   : > { %v733_v41 = vpop.f32.mrb[25].mxu0  ;;  %v973_v42 = vpop.f32.mrb[25].mxu1  ;;  %v732_v31 = vadd.f32 %v2412_v53, %v2393_v39 }
 0x14e   : > { %v2397_v43 = vpop.f32.mrb[26].mxu0  ;;  %v2399_v44 = vpop.f32.mrb[26].mxu1 }
 0x14f   : > { %v738_v45 = vpop.f32.mrb[27].mxu0  ;;  %v978_v46 = vpop.f32.mrb[27].mxu1  ;;  %v737_v35 = vadd.f32 %v2412_v53, %v2397_v43 }
 0x152   : > { %v2401_v47 = vpop.f32.mrb[28].mxu0  ;;  %v2403_v48 = vpop.f32.mrb[28].mxu1 }
 0x153   : > { %v743_v49 = vpop.f32.mrb[29].mxu0  ;;  %v983_v50 = vpop.f32.mrb[29].mxu1  ;;  %v742_v39 = vadd.f32 %v2412_v53, %v2401_v47 }
 0x156   : > { %v2405_v51 = vpop.f32.mrb[30].mxu0  ;;  %v2407_v52 = vpop.f32.mrb[30].mxu1 }
 0x157   : > { %v748_v54 = vpop.f32.mrb[31].mxu0  ;;  %v988_v57 = vpop.f32.mrb[31].mxu1  ;;  %v747_v43 = vadd.f32 %v2412_v53, %v2405_v51 }
 0x15a   : > { %v2418_v62 = vpop.f32.mrb[32].mxu0  ;;  %v1714_v1 = vpop.f32.mrb[32].mxu1 }
 0x15b   : > { %v1062_v2 = vadd.f32 %v1714_v1, %v677_v58  ;;  %v753_v5 = vpop.f32.mrb[33].mxu0  ;;  %v1056_v6 = vpop.f32.mrb[33].mxu1  ;;  %v752_v47 = vadd.f32 %v2412_v53, %v2418_v62 }
 0x15c   : > { %v1057_v9 = vadd.f32 %v1056_v6, %v672_v61 }
 0x15d   : > { %v1376_v10 = vmax.f32 %v1062_v2, 0.0 }
 0x15e   : > { %v1375_v13 = vmax.f32 %v1057_v9, 0.0  ;;  %v2429_v14 = vpop.f32.mrb[34].mxu0  ;;  %v1717_v17 = vpop.f32.mrb[34].mxu1 }
 0x15f   : > { %1441 = vst.msk [vmem:[%s2423_s22 + $0x8] sm:$0xff] %vm1439_vm1, %v1376_v10  ;;  %v1072_v18 = vadd.f32 %v1717_v17, %v687_v59  ;;  %v758_v21 = vpop.f32.mrb[35].mxu0  ;;  %v1066_v22 = vpop.f32.mrb[35].mxu1  ;;  %v757_v51 = vadd.f32 %v2412_v53, %v2429_v14 }
 0x160   : > { %1440 = vst.msk [vmem:[%s2423_s22] sm:$0xff] %vm1439_vm1, %v1375_v13  ;;  %v1067_v25 = vadd.f32 %v1066_v22, %v682_v55 }
 0x161   : > { %v1378_v26 = vmax.f32 %v1072_v18, 0.0 }
 0x162   : > { %v1377_v29 = vmax.f32 %v1067_v25, 0.0  ;;  %v2439_v30 = vpop.f32.mrb[36].mxu0  ;;  %v1720_v33 = vpop.f32.mrb[36].mxu1 }
 0x163   : > { %1443 = vst.msk [vmem:[%s2423_s22 + $0x18] sm:$0xff] %vm1439_vm1, %v1378_v26  ;;  %v1082_v34 = vadd.f32 %v1720_v33, %v697_v3  ;;  %v763_v37 = vpop.f32.mrb[37].mxu0  ;;  %v1076_v38 = vpop.f32.mrb[37].mxu1  ;;  %v762_v62 = vadd.f32 %v2412_v53, %v2439_v30 }
 0x164   : > { %1442 = vst.msk [vmem:[%s2423_s22 + $0x10] sm:$0xff] %vm1439_vm1, %v1377_v29  ;;  %v1077_v41 = vadd.f32 %v1076_v38, %v692_v63 }
 0x165   : > { %v1380_v42 = vmax.f32 %v1082_v34, 0.0 }
 0x166   : > { %v1379_v45 = vmax.f32 %v1077_v41, 0.0  ;;  %v2449_v46 = vpop.f32.mrb[38].mxu0  ;;  %v1723_v49 = vpop.f32.mrb[38].mxu1 }
 0x167   : > { %1445 = vst.msk [vmem:[%s2423_s22 + $0x28] sm:$0xff] %vm1439_vm1, %v1380_v42  ;;  %v1092_v50 = vadd.f32 %v1723_v49, %v707_v11  ;;  %v768_v54 = vpop.f32.mrb[39].mxu0  ;;  %v1086_v57 = vpop.f32.mrb[39].mxu1  ;;  %v767_v14 = vadd.f32 %v2412_v53, %v2449_v46 }
 0x168   : > { %1444 = vst.msk [vmem:[%s2423_s22 + $0x20] sm:$0xff] %vm1439_vm1, %v1379_v45  ;;  %v1087_v58 = vadd.f32 %v1086_v57, %v702_v7 }
 0x169   : > { %v1382_v61 = vmax.f32 %v1092_v50, 0.0 }
 0x16a   : > { %v1381_v1 = vmax.f32 %v1087_v58, 0.0  ;;  %v2459_v2 = vpop.f32.mrb[40].mxu0  ;;  %v1726_v5 = vpop.f32.mrb[40].mxu1 }
 0x16b   : > { %1447 = vst.msk [vmem:[%s2423_s22 + $0x38] sm:$0xff] %vm1439_vm1, %v1382_v61  ;;  %v1102_v6 = vadd.f32 %v1726_v5, %v717_v19  ;;  %v773_v9 = vpop.f32.mrb[41].mxu0  ;;  %v1096_v59 = vpop.f32.mrb[41].mxu1 }
 0x16c   : > { %1446 = vst.msk [vmem:[%s2423_s22 + $0x30] sm:$0xff] %vm1439_vm1, %v1381_v1  ;;  %v1097_v10 = vadd.f32 %v1096_v59, %v712_v15 }
 0x16d   : > { %v1384_v55 = vmax.f32 %v1102_v6, 0.0 }
 0x16e   : > { %v1383_v13 = vmax.f32 %v1097_v10, 0.0  ;;  %v776_v17 = vpop.f32.mrb[42].mxu0  ;;  %v1729_v18 = vpop.f32.mrb[42].mxu1 }
 0x16f   : > { %1449 = vst.msk [vmem:[%s2423_s22 + $0x48] sm:$0xff] %vm1439_vm1, %v1384_v55  ;;  %v1112_v21 = vadd.f32 %v1729_v18, %v727_v27  ;;  %v778_v22 = vpop.f32.mrb[43].mxu0  ;;  %v1106_v25 = vpop.f32.mrb[43].mxu1 }
 0x170   : > { %1448 = vst.msk [vmem:[%s2423_s22 + $0x40] sm:$0xff] %vm1439_vm1, %v1383_v13  ;;  %v1107_v3 = vadd.f32 %v1106_v25, %v722_v23  ;;  %v777_v22 = vadd.f32 %v2412_v53, %v776_v17  ;;  %v772_v25 = vadd.f32 %v2412_v53, %v2459_v2 }
 0x171   : > { %v1386_v26 = vmax.f32 %v1112_v21, 0.0 }
 0x172   : > { %v1385_v63 = vmax.f32 %v1107_v3, 0.0  ;;  %v781_v29 = vpop.f32.mrb[44].mxu0  ;;  %v1732_v33 = vpop.f32.mrb[44].mxu1 }
 0x173   : > { %1451 = vst.msk [vmem:[%s2423_s22 + $0x58] sm:$0xff] %vm1439_vm1, %v1386_v26  ;;  %v1122_v34 = vadd.f32 %v1732_v33, %v737_v35  ;;  %v783_v37 = vpop.f32.mrb[45].mxu0  ;;  %v1116_v38 = vpop.f32.mrb[45].mxu1 }
 0x174   : > { %1450 = vst.msk [vmem:[%s2423_s22 + $0x50] sm:$0xff] %vm1439_vm1, %v1385_v63  ;;  %v1117_v41 = vadd.f32 %v1116_v38, %v732_v31  ;;  %v782_v37 = vadd.f32 %v2412_v53, %v781_v29 }
 0x175   : > { %v1388_v11 = vmax.f32 %v1122_v34, 0.0 }
 0x176   : > { %v1387_v42 = vmax.f32 %v1117_v41, 0.0  ;;  %v786_v7 = vpop.f32.mrb[46].mxu0  ;;  %v1735_v45 = vpop.f32.mrb[46].mxu1 }
 0x177   : > { %1453 = vst.msk [vmem:[%s2423_s22 + $0x68] sm:$0xff] %vm1439_vm1, %v1388_v11  ;;  %v1132_v49 = vadd.f32 %v1735_v45, %v747_v43  ;;  %v788_v50 = vpop.f32.mrb[47].mxu0  ;;  %v1126_v54 = vpop.f32.mrb[47].mxu1  ;;  %v787_v34 = vadd.f32 %v2412_v53, %v786_v7 }
 0x178   : > { %1452 = vst.msk [vmem:[%s2423_s22 + $0x60] sm:$0xff] %vm1439_vm1, %v1387_v42  ;;  %v1127_v57 = vadd.f32 %v1126_v54, %v742_v39 }
 0x179   : > { %v1390_v58 = vmax.f32 %v1132_v49, 0.0 }
 0x17a   : > { %v1389_v19 = vmax.f32 %v1127_v57, 0.0  ;;  %v791_v61 = vpop.f32.mrb[48].mxu0  ;;  %v1738_v15 = vpop.f32.mrb[48].mxu1 }
 0x17b   : > { %1455 = vst.msk [vmem:[%s2423_s22 + $0x78] sm:$0xff] %vm1439_vm1, %v1390_v58  ;;  %v1142_v1 = vadd.f32 %v1738_v15, %v757_v51  ;;  %v793_v5 = vpop.f32.mrb[49].mxu0  ;;  %v1136_v6 = vpop.f32.mrb[49].mxu1  ;;  %v792_v7 = vadd.f32 %v2412_v53, %v791_v61 }
 0x17c   : > { %1454 = vst.msk [vmem:[%s2423_s22 + $0x70] sm:$0xff] %vm1439_vm1, %v1389_v19  ;;  %v1137_v9 = vadd.f32 %v1136_v6, %v752_v47 }
 0x17d   : > { %v1392_v59 = vmax.f32 %v1142_v1, 0.0 }
 0x17e   : > { %v1391_v10 = vmax.f32 %v1137_v9, 0.0  ;;  %v796_v27 = vpop.f32.mrb[50].mxu0  ;;  %v1741_v55 = vpop.f32.mrb[50].mxu1 }
 0x17f   : > { %1457 = vst.msk [vmem:[%s2423_s22 + $0x88] sm:$0xff] %vm1439_vm1, %v1392_v59  ;;  %v1152_v23 = vadd.f32 %v1741_v55, %v767_v14  ;;  %v798_v13 = vpop.f32.mrb[51].mxu0  ;;  %v1146_v18 = vpop.f32.mrb[51].mxu1  ;;  %v797_v45 = vadd.f32 %v2412_v53, %v796_v27 }
 0x180   : > { %1456 = vst.msk [vmem:[%s2423_s22 + $0x80] sm:$0xff] %vm1439_vm1, %v1391_v10  ;;  %v1147_v21 = vadd.f32 %v1146_v18, %v762_v62 }
 0x181   : > { %v1394_v46 = vmax.f32 %v1152_v23, 0.0 }
 0x182   : > { %v1393_v30 = vmax.f32 %v1147_v21, 0.0  ;;  %v801_v3 = vpop.f32.mrb[52].mxu0  ;;  %v1744_v35 = vpop.f32.mrb[52].mxu1 }
 0x183   : > { %1459 = vst.msk [vmem:[%s2423_s22 + $0x98] sm:$0xff] %vm1439_vm1, %v1394_v46  ;;  %v1162_v26 = vadd.f32 %v1744_v35, %v777_v22  ;;  %v803_v31 = vpop.f32.mrb[53].mxu0  ;;  %v1156_v63 = vpop.f32.mrb[53].mxu1  ;;  %v802_v1 = vadd.f32 %v2412_v53, %v801_v3 }
 0x184   : > { %1458 = vst.msk [vmem:[%s2423_s22 + $0x90] sm:$0xff] %vm1439_vm1, %v1393_v30  ;;  %v1157_v33 = vadd.f32 %v1156_v63, %v772_v25 }
 0x185   : > { %v1396_v17 = vmax.f32 %v1162_v26, 0.0 }
 0x186   : > { %v1395_v2 = vmax.f32 %v1157_v33, 0.0  ;;  %v806_v38 = vpop.f32.mrb[54].mxu0  ;;  %v1747_v41 = vpop.f32.mrb[54].mxu1 }
 0x187   : > { %1461 = vst.msk [vmem:[%s2423_s22 + $0xa8] sm:$0xff] %vm1439_vm1, %v1396_v17  ;;  %v1172_v43 = vadd.f32 %v1747_v41, %v787_v34  ;;  %v808_v11 = vpop.f32.mrb[55].mxu0  ;;  %v1166_v39 = vpop.f32.mrb[55].mxu1  ;;  %v807_v19 = vadd.f32 %v2412_v53, %v806_v38 }
 0x188   : > { %1460 = vst.msk [vmem:[%s2423_s22 + $0xa0] sm:$0xff] %vm1439_vm1, %v1395_v2  ;;  %v1167_v42 = vadd.f32 %v1166_v39, %v782_v37 }
 0x189   : > { %v1398_v49 = vmax.f32 %v1172_v43, 0.0 }
 0x18a   : > { %v1397_v29 = vmax.f32 %v1167_v42, 0.0  ;;  %v811_v50 = vpop.f32.mrb[56].mxu0  ;;  %v1750_v54 = vpop.f32.mrb[56].mxu1 }
 0x18b   : > { %1463 = vst.msk [vmem:[%s2423_s22 + $0xb8] sm:$0xff] %vm1439_vm1, %v1398_v49  ;;  %v1182_v57 = vadd.f32 %v1750_v54, %v797_v45  ;;  %v813_v51 = vpop.f32.mrb[57].mxu0  ;;  %v1176_v58 = vpop.f32.mrb[57].mxu1  ;;  %v812_v55 = vadd.f32 %v2412_v53, %v811_v50 }
 0x18c   : > { %1462 = vst.msk [vmem:[%s2423_s22 + $0xb0] sm:$0xff] %vm1439_vm1, %v1397_v29  ;;  %v1177_v47 = vadd.f32 %v1176_v58, %v792_v7 }
 0x18d   : > { %v1400_v15 = vmax.f32 %v1182_v57, 0.0 }
 0x18e   : > { %v1399_v61 = vmax.f32 %v1177_v47, 0.0  ;;  %v816_v5 = vpop.f32.mrb[58].mxu0  ;;  %v1753_v6 = vpop.f32.mrb[58].mxu1 }
 0x18f   : > { %1465 = vst.msk [vmem:[%s2423_s22 + $0xc8] sm:$0xff] %vm1439_vm1, %v1400_v15  ;;  %v1192_v9 = vadd.f32 %v1753_v6, %v807_v19  ;;  %v818_v14 = vpop.f32.mrb[59].mxu0  ;;  %v1186_v59 = vpop.f32.mrb[59].mxu1  ;;  %v817_v10 = vadd.f32 %v2412_v53, %v816_v5 }
 0x190   : > { %1464 = vst.msk [vmem:[%s2423_s22 + $0xc0] sm:$0xff] %vm1439_vm1, %v1399_v61  ;;  %v1187_v62 = vadd.f32 %v1186_v59, %v802_v1 }
 0x191   : > { %v1402_v27 = vmax.f32 %v1192_v9, 0.0 }
 0x192   : > { %v1401_v23 = vmax.f32 %v1187_v62, 0.0  ;;  %v821_v13 = vpop.f32.mrb[60].mxu0  ;;  %v1756_v18 = vpop.f32.mrb[60].mxu1 }
 0x193   : > { %1467 = vst.msk [vmem:[%s2423_s22 + $0xd8] sm:$0xff] %vm1439_vm1, %v1402_v27  ;;  %v1202_v21 = vadd.f32 %v1756_v18, %v817_v10  ;;  %v823_v22 = vpop.f32.mrb[61].mxu0  ;;  %v1196_v46 = vpop.f32.mrb[61].mxu1  ;;  %v822_v3 = vadd.f32 %v2412_v53, %v821_v13 }
 0x194   : > { %1466 = vst.msk [vmem:[%s2423_s22 + $0xd0] sm:$0xff] %vm1439_vm1, %v1401_v23  ;;  %v1197_v25 = vadd.f32 %v1196_v46, %v812_v55 }
 0x195   : > { %v1404_v30 = vmax.f32 %v1202_v21, 0.0 }
 0x196   : > { %v1403_v35 = vmax.f32 %v1197_v25, 0.0  ;;  %v826_v26 = vpop.f32.mrb[62].mxu0  ;;  %v1759_v31 = vpop.f32.mrb[62].mxu1 }
 0x197   : > { %1469 = vst.msk [vmem:[%s2423_s22 + $0xe8] sm:$0xff] %vm1439_vm1, %v1404_v30  ;;  %v827_v63 = vadd.f32 %v2412_v53, %v826_v26  ;;  %v828_v33 = vpop.f32.mrb[63].mxu0  ;;  %v1206_v34 = vpop.f32.mrb[63].mxu1 }
 0x198   : > { %1468 = vst.msk [vmem:[%s2423_s22 + $0xe0] sm:$0xff] %vm1439_vm1, %v1403_v35  ;;  %v1207_v17 = vadd.f32 %v1206_v34, %v822_v3 }
 0x199   : > { %v1212_v37 = vadd.f32 %v1759_v31, %v827_v63 }
 0x19a   : > { %v1405_v2 = vmax.f32 %v1207_v17, 0.0  ;;  %v831_v38 = vpop.f32.mrb[64].mxu0  ;;  %v1762_v41 = vpop.f32.mrb[64].mxu1 }
 0x19b   : > { %v1406_v43 = vmax.f32 %v1212_v37, 0.0  ;;  %v832_v11 = vadd.f32 %v2412_v53, %v831_v38  ;;  %v833_v39 = vpop.f32.mrb[65].mxu0  ;;  %v1216_v42 = vpop.f32.mrb[65].mxu1 }
 0x19c   : > { %1470 = vst.msk [vmem:[%s2423_s22 + $0xf0] sm:$0xff] %vm1439_vm1, %v1405_v2 }
 0x19d   : > { %1471 = vst.msk [vmem:[%s2423_s22 + $0xf8] sm:$0xff] %vm1439_vm1, %v1406_v43  ;;  %v1217_v45 = vadd.f32 %v1216_v42, %v832_v11 }
 0x19e   : > { %v836_v49 = vpop.f32.mrb[66].mxu0  ;;  %v1765_v7 = vpop.f32.mrb[66].mxu1 }
 0x19f   : > { %v1407_v29 = vmax.f32 %v1217_v45, 0.0  ;;  %v837_v50 = vadd.f32 %v2412_v53, %v836_v49  ;;  %v838_v54 = vpop.f32.mrb[67].mxu0  ;;  %v1226_v57 = vpop.f32.mrb[67].mxu1 }
 0x1a1   : > { %1472 = vst.msk [vmem:[%s2423_s22 + $0x100] sm:$0xff] %vm1439_vm1, %v1407_v29  ;;  %v1222_v51 = vadd.f32 %v1762_v41, %v837_v50  ;;  %v912_v50 = vadd.f32 %v2412_v53, %v2349_v56  ;;  %v922_v56 = vadd.f32 %v2412_v53, %v2355_v0 }
 0x1a2   : > { %v841_v58 = vpop.f32.mrb[68].mxu0  ;;  %v1768_v47 = vpop.f32.mrb[68].mxu1 }
 0x1a3   : > { %v1408_v19 = vmax.f32 %v1222_v51, 0.0  ;;  %v842_v15 = vadd.f32 %v2412_v53, %v841_v58  ;;  %v843_v1 = vpop.f32.mrb[69].mxu0  ;;  %v1236_v61 = vpop.f32.mrb[69].mxu1 }
 0x1a5   : > { %1473 = vst.msk [vmem:[%s2423_s22 + $0x108] sm:$0xff] %vm1439_vm1, %v1408_v19  ;;  %v1227_v5 = vadd.f32 %v1226_v57, %v842_v15 }
 0x1a6   : > { %v846_v6 = vpop.f32.mrb[70].mxu0  ;;  %v1771_v9 = vpop.f32.mrb[70].mxu1 }
 0x1a7   : > { %v1409_v14 = vmax.f32 %v1227_v5, 0.0  ;;  %v847_v59 = vadd.f32 %v2412_v53, %v846_v6  ;;  %v848_v62 = vpop.f32.mrb[71].mxu0  ;;  %v1246_v10 = vpop.f32.mrb[71].mxu1 }
 0x1a9   : > { %1474 = vst.msk [vmem:[%s2423_s22 + $0x110] sm:$0xff] %vm1439_vm1, %v1409_v14  ;;  %v1232_v27 = vadd.f32 %v1765_v7, %v847_v59  ;;  %v917_v7 = vadd.f32 %v2412_v53, %v2351_v60  ;;  %v927_v60 = vadd.f32 %v2412_v53, %v2359_v4 }
 0x1aa   : > { %v851_v55 = vpop.f32.mrb[72].mxu0  ;;  %v1774_v23 = vpop.f32.mrb[72].mxu1 }
 0x1ab   : > { %v1410_v13 = vmax.f32 %v1232_v27, 0.0  ;;  %v852_v18 = vadd.f32 %v2412_v53, %v851_v55  ;;  %v853_v21 = vpop.f32.mrb[73].mxu0  ;;  %v1256_v22 = vpop.f32.mrb[73].mxu1 }
 0x1ac   : > { %v932_v21 = vadd.f32 %v2412_v53, %v2363_v8 }
 0x1ad   : > { %1475 = vst.msk [vmem:[%s2423_s22 + $0x118] sm:$0xff] %vm1439_vm1, %v1410_v13  ;;  %v1237_v46 = vadd.f32 %v1236_v61, %v852_v18  ;;  %v937_v13 = vadd.f32 %v2412_v53, %v2367_v12 }
 0x1ae   : > { %v856_v25 = vpop.f32.mrb[74].mxu0  ;;  %v2559_v30 = vpop.f32.mrb[74].mxu1 }
 0x1af   : > { %v1411_v3 = vmax.f32 %v1237_v46, 0.0  ;;  %v857_v35 = vadd.f32 %v2412_v53, %v856_v25  ;;  %v858_v26 = vpop.f32.mrb[75].mxu0  ;;  %v2562_v31 = vpop.f32.mrb[75].mxu1 }
 0x1b1   : > { %1476 = vst.msk [vmem:[%s2423_s22 + $0x120] sm:$0xff] %vm1439_vm1, %v1411_v3  ;;  %v1242_v63 = vadd.f32 %v1768_v47, %v857_v35 }
 0x1b2   : > { %v861_v33 = vpop.f32.mrb[76].mxu0  ;;  %v2566_v34 = vpop.f32.mrb[76].mxu1 }
 0x1b3   : > { %v1412_v17 = vmax.f32 %v1242_v63, 0.0  ;;  %v862_v37 = vadd.f32 %v2412_v53, %v861_v33  ;;  %v863_v2 = vpop.f32.mrb[77].mxu0  ;;  %v2569_v38 = vpop.f32.mrb[77].mxu1  ;;  %v947_v33 = vadd.f32 %v2412_v53, %v2375_v20 }
 0x1b5   : > { %1477 = vst.msk [vmem:[%s2423_s22 + $0x128] sm:$0xff] %vm1439_vm1, %v1412_v17  ;;  %v1247_v41 = vadd.f32 %v1246_v10, %v862_v37  ;;  %v942_v37 = vadd.f32 %v2412_v53, %v2371_v16 }
 0x1b6   : > { %v866_v43 = vpop.f32.mrb[78].mxu0  ;;  %v2573_v11 = vpop.f32.mrb[78].mxu1 }
 0x1b7   : > { %v1413_v39 = vmax.f32 %v1247_v41, 0.0  ;;  %v867_v42 = vadd.f32 %v2412_v53, %v866_v43  ;;  %v868_v45 = vpop.f32.mrb[79].mxu0  ;;  %v2576_v49 = vpop.f32.mrb[79].mxu1 }
 0x1b9   : > { %1478 = vst.msk [vmem:[%s2423_s22 + $0x130] sm:$0xff] %vm1439_vm1, %v1413_v39  ;;  %v1252_v29 = vadd.f32 %v1771_v9, %v867_v42 }
 0x1ba   : > { %v871_v54 = vpop.f32.mrb[80].mxu0  ;;  %v1786_v57 = vpop.f32.mrb[80].mxu1 }
 0x1bb   : > { %v1414_v51 = vmax.f32 %v1252_v29, 0.0  ;;  %v872_v58 = vadd.f32 %v2412_v53, %v871_v54  ;;  %v1302_v47 = vadd.f32 %v1786_v57, %v917_v7  ;;  %v873_v19 = vpop.f32.mrb[81].mxu0  ;;  %v1296_v15 = vpop.f32.mrb[81].mxu1  ;;  %v957_v29 = vadd.f32 %v2412_v53, %v2383_v28 }
 0x1bc   : > { %v1297_v1 = vadd.f32 %v1296_v15, %v912_v50  ;;  %v952_v54 = vadd.f32 %v2412_v53, %v2379_v24 }
 0x1bd   : > { %1479 = vst.msk [vmem:[%s2423_s22 + $0x138] sm:$0xff] %vm1439_vm1, %v1414_v51  ;;  %v1257_v61 = vadd.f32 %v1256_v22, %v872_v58  ;;  %v1424_v5 = vmax.f32 %v1302_v47, 0.0 }
 0x1be   : > { %v1423_v6 = vmax.f32 %v1297_v1, 0.0  ;;  %v876_v9 = vpop.f32.mrb[82].mxu0  ;;  %v1789_v14 = vpop.f32.mrb[82].mxu1 }
 0x1bf   : > { %v1415_v59 = vmax.f32 %v1257_v61, 0.0  ;;  %1489 = vst.msk [vmem:[%s2423_s22 + $0x188] sm:$0xff] %vm1439_vm1, %v1424_v5  ;;  %v877_v62 = vadd.f32 %v2412_v53, %v876_v9  ;;  %v1312_v10 = vadd.f32 %v1789_v14, %v927_v60  ;;  %v878_v27 = vpop.f32.mrb[83].mxu0  ;;  %v1306_v4 = vpop.f32.mrb[83].mxu1  ;;  %v967_v60 = vadd.f32 %v2412_v53, %v2391_v36 }
 0x1c0   : > { %1488 = vst.msk [vmem:[%s2423_s22 + $0x180] sm:$0xff] %vm1439_vm1, %v1423_v6  ;;  %v1307_v55 = vadd.f32 %v1306_v4, %v922_v56  ;;  %v962_v5 = vadd.f32 %v2412_v53, %v2387_v32  ;;  %v977_v27 = vadd.f32 %v2412_v53, %v2399_v44 }
 0x1c1   : > { %1480 = vst.msk [vmem:[%s2423_s22 + $0x140] sm:$0xff] %vm1439_vm1, %v1415_v59  ;;  %v1262_v0 = vadd.f32 %v1774_v23, %v877_v62  ;;  %v1426_v18 = vmax.f32 %v1312_v10, 0.0 }
 0x1c2   : > { %v1425_v22 = vmax.f32 %v1307_v55, 0.0  ;;  %v881_v46 = vpop.f32.mrb[84].mxu0  ;;  %v1792_v25 = vpop.f32.mrb[84].mxu1  ;;  %v972_v55 = vadd.f32 %v2412_v53, %v2395_v40 }
 0x1c3   : > { %v1416_v3 = vmax.f32 %v1262_v0, 0.0  ;;  %1491 = vst.msk [vmem:[%s2423_s22 + $0x198] sm:$0xff] %vm1439_vm1, %v1426_v18  ;;  %v882_v35 = vadd.f32 %v2412_v53, %v881_v46  ;;  %v1322_v26 = vadd.f32 %v1792_v25, %v937_v13  ;;  %v883_v63 = vpop.f32.mrb[85].mxu0  ;;  %v1316_v12 = vpop.f32.mrb[85].mxu1 }
 0x1c4   : > { %1490 = vst.msk [vmem:[%s2423_s22 + $0x190] sm:$0xff] %vm1439_vm1, %v1425_v22  ;;  %v1317_v23 = vadd.f32 %v1316_v12, %v932_v21 }
 0x1c5   : > { %1481 = vst.msk [vmem:[%s2423_s22 + $0x148] sm:$0xff] %vm1439_vm1, %v1416_v3  ;;  %v1267_v8 = vadd.f32 %v2562_v31, %v882_v35  ;;  %v1428_v17 = vmax.f32 %v1322_v26, 0.0  ;;  %v987_v3 = vadd.f32 %v2412_v53, %v2407_v52  ;;  %v982_v26 = vadd.f32 %v2412_v53, %v2403_v48 }
 0x1c6   : > { %v1427_v2 = vmax.f32 %v1317_v23, 0.0  ;;  %v886_v41 = vpop.f32.mrb[86].mxu0  ;;  %v1795_v43 = vpop.f32.mrb[86].mxu1 }
 0x1c7   : > { %v1417_v39 = vmax.f32 %v1267_v8, 0.0  ;;  %1493 = vst.msk [vmem:[%s2423_s22 + $0x1a8] sm:$0xff] %vm1439_vm1, %v1428_v17  ;;  %v887_v42 = vadd.f32 %v2412_v53, %v886_v41  ;;  %v1332_v45 = vadd.f32 %v1795_v43, %v947_v33  ;;  %v888_v20 = vpop.f32.mrb[87].mxu0  ;;  %v1326_v7 = vpop.f32.mrb[87].mxu1 }
 0x1c8   : > { %1492 = vst.msk [vmem:[%s2423_s22 + $0x1a0] sm:$0xff] %vm1439_vm1, %v1427_v2  ;;  %v1327_v31 = vadd.f32 %v1326_v7, %v942_v37 }
 0x1c9   : > { %1482 = vst.msk [vmem:[%s2423_s22 + $0x150] sm:$0xff] %vm1439_vm1, %v1417_v39  ;;  %v1272_v16 = vadd.f32 %v2559_v30, %v887_v42  ;;  %v1430_v50 = vmax.f32 %v1332_v45, 0.0 }
 0x1ca   : > { %v1429_v57 = vmax.f32 %v1327_v31, 0.0  ;;  %v891_v51 = vpop.f32.mrb[88].mxu0  ;;  %v1798_v58 = vpop.f32.mrb[88].mxu1 }
 0x1cb   : > { %v1418_v47 = vmax.f32 %v1272_v16, 0.0  ;;  %1495 = vst.msk [vmem:[%s2423_s22 + $0x1b8] sm:$0xff] %vm1439_vm1, %v1430_v50  ;;  %v892_v19 = vadd.f32 %v2412_v53, %v891_v51  ;;  %v1342_v15 = vadd.f32 %v1798_v58, %v957_v29  ;;  %v893_v28 = vpop.f32.mrb[89].mxu0  ;;  %v1336_v1 = vpop.f32.mrb[89].mxu1 }
 0x1cc   : > { %1494 = vst.msk [vmem:[%s2423_s22 + $0x1b0] sm:$0xff] %vm1439_vm1, %v1429_v57  ;;  %v1337_v30 = vadd.f32 %v1336_v1, %v952_v54 }
 0x1cd   : > { %1483 = vst.msk [vmem:[%s2423_s22 + $0x158] sm:$0xff] %vm1439_vm1, %v1418_v47  ;;  %v1277_v24 = vadd.f32 %v2569_v38, %v892_v19  ;;  %v1432_v61 = vmax.f32 %v1342_v15, 0.0 }
 0x1ce   : > { %v1431_v56 = vmax.f32 %v1337_v30, 0.0  ;;  %v896_v6 = vpop.f32.mrb[90].mxu0  ;;  %v1801_v9 = vpop.f32.mrb[90].mxu1 }
 0x1cf   : > { %v1419_v14 = vmax.f32 %v1277_v24, 0.0  ;;  %1497 = vst.msk [vmem:[%s2423_s22 + $0x1c8] sm:$0xff] %vm1439_vm1, %v1432_v61  ;;  %v897_v59 = vadd.f32 %v2412_v53, %v896_v6  ;;  %v1352_v62 = vadd.f32 %v1801_v9, %v967_v60  ;;  %v898_v36 = vpop.f32.mrb[91].mxu0  ;;  %v1346_v10 = vpop.f32.mrb[91].mxu1 }
 0x1d0   : > { %1496 = vst.msk [vmem:[%s2423_s22 + $0x1c0] sm:$0xff] %vm1439_vm1, %v1431_v56  ;;  %v1347_v38 = vadd.f32 %v1346_v10, %v962_v5 }
 0x1d1   : > { %1484 = vst.msk [vmem:[%s2423_s22 + $0x160] sm:$0xff] %vm1439_vm1, %v1419_v14  ;;  %v1282_v32 = vadd.f32 %v2566_v34, %v897_v59  ;;  %v1434_v4 = vmax.f32 %v1352_v62, 0.0 }
 0x1d2   : > { %v1433_v13 = vmax.f32 %v1347_v38, 0.0  ;;  %v901_v0 = vpop.f32.mrb[92].mxu0  ;;  %v1804_v18 = vpop.f32.mrb[92].mxu1 }
 0x1d3   : > { %v1420_v21 = vmax.f32 %v1282_v32, 0.0  ;;  %1499 = vst.msk [vmem:[%s2423_s22 + $0x1d8] sm:$0xff] %vm1439_vm1, %v1434_v4  ;;  %v902_v22 = vadd.f32 %v2412_v53, %v901_v0  ;;  %v1362_v46 = vadd.f32 %v1804_v18, %v977_v27  ;;  %v903_v44 = vpop.f32.mrb[93].mxu0  ;;  %v1356_v25 = vpop.f32.mrb[93].mxu1 }
 0x1d4   : > { %1498 = vst.msk [vmem:[%s2423_s22 + $0x1d0] sm:$0xff] %vm1439_vm1, %v1433_v13  ;;  %v1357_v34 = vadd.f32 %v1356_v25, %v972_v55 }
 0x1d5   : > { %1485 = vst.msk [vmem:[%s2423_s22 + $0x168] sm:$0xff] %vm1439_vm1, %v1420_v21  ;;  %v1287_v40 = vadd.f32 %v2576_v49, %v902_v22  ;;  %v1436_v35 = vmax.f32 %v1362_v46, 0.0 }
 0x1d6   : > { %v1435_v63 = vmax.f32 %v1357_v34, 0.0  ;;  %v906_v12 = vpop.f32.mrb[94].mxu0  ;;  %v1807_v23 = vpop.f32.mrb[94].mxu1 }
 0x1d7   : > { %v1421_v33 = vmax.f32 %v1287_v40, 0.0  ;;  %1501 = vst.msk [vmem:[%s2423_s22 + $0x1e8] sm:$0xff] %vm1439_vm1, %v1436_v35  ;;  %v907_v52 = vadd.f32 %v2412_v53, %v906_v12  ;;  %v1372_v8 = vadd.f32 %v1807_v23, %v987_v3  ;;  %v908_v17 = vpop.f32.mrb[95].mxu0  ;;  %v1366_v37 = vpop.f32.mrb[95].mxu1 }
 0x1d8   : > { %1500 = vst.msk [vmem:[%s2423_s22 + $0x1e0] sm:$0xff] %vm1439_vm1, %v1435_v63  ;;  %v1367_v49 = vadd.f32 %v1366_v37, %v982_v26 }
 0x1d9   : > { %1486 = vst.msk [vmem:[%s2423_s22 + $0x170] sm:$0xff] %vm1439_vm1, %v1421_v33  ;;  %v1292_v48 = vadd.f32 %v2573_v11, %v907_v52  ;;  %v1438_v2 = vmax.f32 %v1372_v8, 0.0 }
 0x1da   : > { %v1437_v41 = vmax.f32 %v1367_v49, 0.0 }
 0x1db   : > { %v1422_v43 = vmax.f32 %v1292_v48, 0.0  ;;  %1503 = vst.msk [vmem:[%s2423_s22 + $0x1f8] sm:$0xff] %vm1439_vm1, %v1438_v2 }
 0x1dc   : > { %1502 = vst.msk [vmem:[%s2423_s22 + $0x1f0] sm:$0xff] %vm1439_vm1, %v1437_v41 }
 0x1dd   : > { %1487 = vst.msk [vmem:[%s2423_s22 + $0x178] sm:$0xff] %vm1439_vm1, %v1422_v43 }
 0x1de PF: > { %s13_s12 = sadd.s32 1, %s1912_s12  }
 0x1df   : > { %p10_p4 = scmp.ge.s32.totalorder %s13_s12, 11  }
 0x1e1   :  { %12 = sbr.rel (!%p10_p4) target bundleno = 1 (0x1), region = 62 }

// kernel: nopool_cnn1_forward.5
= control target key start
LH: loop header
LB: loop body
LE: loop exit
PB: predicated region body
PF: predicated region fallthrough
CT: control target
= control target key end

     0   :  { %s2011_s18 = smov 0   ;;  %s2013_s19 = smov 0   ;;  %s2383_s0 = inlined_call_operand.vmem [shape: f32[8,34816], index: 0, kind: input, shape index: {}]   ;;  %s2384_s1 = inlined_call_operand.vmem [shape: f32[34816,128], index: 1, kind: input, shape index: {}]   ;;  %s2385_s2 = inlined_call_operand.vmem [shape: f32[1,128], index: 2, kind: input, shape index: {}]   ;;  %s2386_s3 = inlined_call_operand.vmem [shape: f32[128,128], index: 3, kind: input, shape index: {}]   ;;  %s2387_s4 = inlined_call_operand.vmem [shape: f32[1,128], index: 4, kind: input, shape index: {}]   ;;  %s2388_s5 = inlined_call_operand.vmem [shape: f32[8,128], index: 5, kind: output, shape index: {}]  }
   0x1   :  { %s2015_s20 = smov 0  }
   0x2 LB: > { %s24_s21 = sadd.s32 1, %s1971_s19  ;;  %p1301_p0 = scmp.ge.s32.totalorder %s1975_s20, 1  ;;  %s1975_s20 = sphi %s2015_s20, %s15_s20   ;;  %s1971_s19 = sphi %s2013_s19, %s2390_s19   ;;  %s1967_s18 = sphi %s2011_s18, %s2389_s18  }
   0x3   : > { %p25_p1 = scmp.ge.s32.totalorder %s24_s21, 17  ;;  %p217_p2 = scmp.lt.s32.totalorder %s1975_s20, 18 }
   0x5   : > { %s2392_s21 = smov (%p25_p1, %s24_s21), 0  ;;  %p218_p3 = pnand %p1301_p0, %p217_p2 }
   0x6   : > { %s1302_s22 = sshll.u32 (!%p218_p3), %s1967_s18, 4  ;;  %s1304_s23 = sshll.u32 (!%p218_p3), %s1967_s18, 8 }
   0x7   : > { %221 = sbr.rel (%p218_p3) target bundleno = 604 (0x25c), region = 40  ;;  %p256_p4 = scmp.lt.s32.totalorder (!%p218_p3), %s1302_s22, 271 }
   0x8   : > { %p264_p5 = scmp.lt.s32.totalorder (!%p218_p3), %s1304_s23, 4351  ;;  %p1306_p6 = scmp.ne.s32.totalorder (!%p218_p3), %s1967_s18, 0 }
   0xe   : > { %s2394_s22 = smov (!%p256_p4, %s1302_s22), 271  ;;  %s2396_s23 = smov (!%p264_p5, %s1304_s23), 4351 }
   0xf   : > { %s1303_s24 = sshll.u32 %s2394_s22, 3  ;;  %s1305_s28 = sshll.u32 %s2396_s23, 3  ;;  %v1977_v0 = vmov (!%p1306_p6), 0.0  }
  0x10   : > { %s2036_s27 = scalar_lea.vmem %s2383_s0, %s1303_s24  ;;  %s2041_s6 = scalar_lea.vmem %s2384_s1, %s1305_s28  ;;  %277 = vst [vmem:[#allocation2] sm:$0xff] (!%p1306_p6), %v1977_v0 }
  0x11   : > { %276 = sbr.rel (%p1306_p6) target bundleno = 24 (0x18), region = 44 }
  0x18 PF: > { %v311_v1 = vld [vmem:[%s2041_s6 + $0x80] sm:$0xff]  ;;  %v312_v2 = vld [vmem:[%s2041_s6 + $0x88] sm:$0xff]  ;;  %v313_v12 = vld [vmem:[%s2041_s6 + $0x90] sm:$0xff]  ;;  %p1307_p7 = scmp.ne.s32.totalorder %s1967_s18, 16 }
  0x19   : > { %v343_v3 = vld [vmem:[%s2041_s6 + $0x180] sm:$0xff]  ;;  %v1645_v4 = vpack.c.bf16 %v312_v2, %v311_v1  ;;  %v344_v5 = vld [vmem:[%s2041_s6 + $0x188] sm:$0xff]  ;;  %v314_v14 = vld [vmem:[%s2041_s6 + $0x98] sm:$0xff]  ;;  %vm1979_vm0 = vmmov (!%p1307_p7), 0  }
  0x1a   : > { %v295_v6 = vld [vmem:[%s2041_s6] sm:$0xff]  ;;  %v296_v7 = vld [vmem:[%s2041_s6 + $0x8] sm:$0xff]  ;;  %v1677_v8 = vpack.c.bf16 %v344_v5, %v343_v3  ;;  %v345_v15 = vld [vmem:[%s2041_s6 + $0x190] sm:$0xff]  ;;  %v1649_v17 = vpack.c.bf16 %v314_v14, %v313_v12 }
  0x1b   : > { %v1647_v9 = vpack.c.bf16 %v296_v7, %v295_v6  ;;  %v327_v10 = vld [vmem:[%s2041_s6 + $0x100] sm:$0xff]  ;;  %v328_v11 = vld [vmem:[%s2041_s6 + $0x108] sm:$0xff]  ;;  %1646 = vmatprep.subr.bf16.mxu0 %v1645_v4  ;;  %v346_v16 = vld [vmem:[%s2041_s6 + $0x198] sm:$0xff] }
  0x1c   : > { %v1679_v13 = vpack.c.bf16 %v328_v11, %v327_v10  ;;  %1678 = vmatprep.subr.bf16.mxu1 %v1677_v8  ;;  %v1681_v18 = vpack.c.bf16 %v346_v16, %v345_v15  ;;  %v297_v19 = vld [vmem:[%s2041_s6 + $0x10] sm:$0xff]  ;;  %v298_v20 = vld [vmem:[%s2041_s6 + $0x18] sm:$0xff]  ;;  %v315_v24 = vld [vmem:[%s2041_s6 + $0xa0] sm:$0xff] }
  0x1d   : > { %1648 = vmatpush3.bf16.msra.mxu0 %v1647_v9  ;;  %v329_v21 = vld [vmem:[%s2041_s6 + $0x110] sm:$0xff]  ;;  %v1651_v22 = vpack.c.bf16 %v298_v20, %v297_v19  ;;  %v330_v23 = vld [vmem:[%s2041_s6 + $0x118] sm:$0xff]  ;;  %v316_v25 = vld [vmem:[%s2041_s6 + $0xa8] sm:$0xff] }
  0x1e   : > { %1680 = vmatpush3.bf16.msra.mxu1 %v1679_v13  ;;  %1650 = vmatprep.subr.bf16.mxu0 %v1649_v17  ;;  %v1683_v26 = vpack.c.bf16 %v330_v23, %v329_v21  ;;  %v1653_v27 = vpack.c.bf16 %v316_v25, %v315_v24  ;;  %v347_v28 = vld [vmem:[%s2041_s6 + $0x1a0] sm:$0xff]  ;;  %v348_v29 = vld [vmem:[%s2041_s6 + $0x1a8] sm:$0xff]  ;;  %v317_v36 = vld [vmem:[%s2041_s6 + $0xb0] sm:$0xff] }
  0x1f   : > { %1682 = vmatprep.subr.bf16.mxu1 %v1681_v18  ;;  %v299_v30 = vld [vmem:[%s2041_s6 + $0x20] sm:$0xff]  ;;  %v1685_v31 = vpack.c.bf16 %v348_v29, %v347_v28  ;;  %v300_v32 = vld [vmem:[%s2041_s6 + $0x28] sm:$0xff]  ;;  %v318_v37 = vld [vmem:[%s2041_s6 + $0xb8] sm:$0xff] }
  0x20   : > { %v331_v33 = vld [vmem:[%s2041_s6 + $0x120] sm:$0xff]  ;;  %v332_v34 = vld [vmem:[%s2041_s6 + $0x128] sm:$0xff]  ;;  %v1655_v35 = vpack.c.bf16 %v300_v32, %v299_v30  ;;  %v349_v38 = vld [vmem:[%s2041_s6 + $0x1b0] sm:$0xff]  ;;  %v1657_v40 = vpack.c.bf16 %v318_v37, %v317_v36 }
  0x21   : > { %1652 = vmatpush3.bf16.msra.mxu0 %v1651_v22  ;;  %v1687_v39 = vpack.c.bf16 %v332_v34, %v331_v33  ;;  %v350_v41 = vld [vmem:[%s2041_s6 + $0x1b8] sm:$0xff]  ;;  %v301_v42 = vld [vmem:[%s2041_s6 + $0x30] sm:$0xff]  ;;  %v319_v47 = vld [vmem:[%s2041_s6 + $0xc0] sm:$0xff] }
  0x22   : > { %1684 = vmatpush3.bf16.msra.mxu1 %v1683_v26  ;;  %1654 = vmatprep.subr.bf16.mxu0 %v1653_v27  ;;  %v302_v43 = vld [vmem:[%s2041_s6 + $0x38] sm:$0xff]  ;;  %v1689_v44 = vpack.c.bf16 %v350_v41, %v349_v38  ;;  %v333_v45 = vld [vmem:[%s2041_s6 + $0x130] sm:$0xff]  ;;  %v320_v48 = vld [vmem:[%s2041_s6 + $0xc8] sm:$0xff] }
  0x23   : > { %1686 = vmatprep.subr.bf16.mxu1 %v1685_v31  ;;  %v334_v46 = vld [vmem:[%s2041_s6 + $0x138] sm:$0xff]  ;;  %v351_v49 = vld [vmem:[%s2041_s6 + $0x1c0] sm:$0xff]  ;;  %v352_v50 = vld [vmem:[%s2041_s6 + $0x1c8] sm:$0xff]  ;;  %v1659_v51 = vpack.c.bf16 %v302_v43, %v301_v42  ;;  %v1661_v53 = vpack.c.bf16 %v320_v48, %v319_v47 }
  0x24   : > { %v1691_v52 = vpack.c.bf16 %v334_v46, %v333_v45  ;;  %v303_v54 = vld [vmem:[%s2041_s6 + $0x40] sm:$0xff]  ;;  %v304_v55 = vld [vmem:[%s2041_s6 + $0x48] sm:$0xff]  ;;  %v1693_v57 = vpack.c.bf16 %v352_v50, %v351_v49  ;;  %v321_v59 = vld [vmem:[%s2041_s6 + $0xd0] sm:$0xff] }
  0x25   : > { %1656 = vmatpush3.bf16.msra.mxu0 %v1655_v35  ;;  %v335_v56 = vld [vmem:[%s2041_s6 + $0x140] sm:$0xff]  ;;  %v336_v58 = vld [vmem:[%s2041_s6 + $0x148] sm:$0xff]  ;;  %v322_v60 = vld [vmem:[%s2041_s6 + $0xd8] sm:$0xff]  ;;  %v1663_v63 = vpack.c.bf16 %v304_v55, %v303_v54 }
  0x26   : > { %1688 = vmatpush3.bf16.msra.mxu1 %v1687_v39  ;;  %1658 = vmatprep.subr.bf16.mxu0 %v1657_v40  ;;  %v353_v61 = vld [vmem:[%s2041_s6 + $0x1d0] sm:$0xff]  ;;  %v354_v62 = vld [vmem:[%s2041_s6 + $0x1d8] sm:$0xff]  ;;  %v1695_v0 = vpack.c.bf16 %v336_v58, %v335_v56  ;;  %v1665_v1 = vpack.c.bf16 %v322_v60, %v321_v59  ;;  %v323_v7 = vld [vmem:[%s2041_s6 + $0xe0] sm:$0xff] }
  0x27   : > { %1690 = vmatprep.subr.bf16.mxu1 %v1689_v44  ;;  %v305_v2 = vld [vmem:[%s2041_s6 + $0x50] sm:$0xff]  ;;  %v306_v3 = vld [vmem:[%s2041_s6 + $0x58] sm:$0xff]  ;;  %v1697_v5 = vpack.c.bf16 %v354_v62, %v353_v61  ;;  %v324_v8 = vld [vmem:[%s2041_s6 + $0xe8] sm:$0xff] }
  0x28   : > { %v337_v4 = vld [vmem:[%s2041_s6 + $0x150] sm:$0xff]  ;;  %v338_v6 = vld [vmem:[%s2041_s6 + $0x158] sm:$0xff]  ;;  %v355_v9 = vld [vmem:[%s2041_s6 + $0x1e0] sm:$0xff]  ;;  %v1667_v11 = vpack.c.bf16 %v306_v3, %v305_v2  ;;  %v1669_v15 = vpack.c.bf16 %v324_v8, %v323_v7 }
  0x29   : > { %1660 = vmatpush3.bf16.msra.mxu0 %v1659_v51  ;;  %v356_v10 = vld [vmem:[%s2041_s6 + $0x1e8] sm:$0xff]  ;;  %v307_v12 = vld [vmem:[%s2041_s6 + $0x60] sm:$0xff]  ;;  %v1699_v14 = vpack.c.bf16 %v338_v6, %v337_v4  ;;  %v282_v18 = vld [vmem:[%s2036_s27 + $0x18] sm:$0xff] }
  0x2a   : > { %1692 = vmatpush3.bf16.msra.mxu1 %v1691_v52  ;;  %1662 = vmatprep.subr.bf16.mxu0 %v1661_v53  ;;  %v308_v13 = vld [vmem:[%s2041_s6 + $0x68] sm:$0xff]  ;;  %v339_v16 = vld [vmem:[%s2041_s6 + $0x160] sm:$0xff]  ;;  %v1701_v19 = vpack.c.bf16 %v356_v10, %v355_v9  ;;  %v325_v21 = vld [vmem:[%s2041_s6 + $0xf0] sm:$0xff] }
  0x2b   : > { %1694 = vmatprep.subr.bf16.mxu1 %v1693_v57  ;;  %v280_v17 = vld [vmem:[%s2036_s27 + $0x8] sm:$0xff]  ;;  %v326_v22 = vld [vmem:[%s2041_s6 + $0xf8] sm:$0xff]  ;;  %v357_v23 = vld [vmem:[%s2041_s6 + $0x1f0] sm:$0xff]  ;;  %685 = vmatprep.mubr.f32.mxu1 %v282_v18  ;;  %v1671_v25 = vpack.c.bf16 %v308_v13, %v307_v12 }
  0x2c   : > { %v340_v20 = vld [vmem:[%s2041_s6 + $0x168] sm:$0xff]  ;;  %615 = vmatprep.mubr.f32.mxu0 %v280_v17  ;;  %v358_v24 = vld [vmem:[%s2041_s6 + $0x1f8] sm:$0xff]  ;;  %v1673_v27 = vpack.c.bf16 %v326_v22, %v325_v21  ;;  %v309_v28 = vld [vmem:[%s2041_s6 + $0x70] sm:$0xff] }
  0x2d   : > { %1664 = vmatpush3.bf16.msra.mxu0 %v1663_v63  ;;  %v1703_v26 = vpack.c.bf16 %v340_v20, %v339_v16  ;;  %v310_v29 = vld [vmem:[%s2041_s6 + $0x78] sm:$0xff]  ;;  %v341_v30 = vld [vmem:[%s2041_s6 + $0x170] sm:$0xff]  ;;  %v1705_v31 = vpack.c.bf16 %v358_v24, %v357_v23  ;;  %v375_v33 = vld [vmem:[%s2041_s6 + $0x280] sm:$0xff] }
  0x2e   : > { %1696 = vmatpush3.bf16.msra.mxu1 %v1695_v0  ;;  %1666 = vmatprep.subr.bf16.mxu0 %v1665_v1  ;;  %v342_v32 = vld [vmem:[%s2041_s6 + $0x178] sm:$0xff]  ;;  %v376_v34 = vld [vmem:[%s2041_s6 + $0x288] sm:$0xff]  ;;  %v407_v35 = vld [vmem:[%s2041_s6 + $0x380] sm:$0xff]  ;;  %v1675_v37 = vpack.c.bf16 %v310_v29, %v309_v28 }
  0x2f   : > { %1698 = vmatprep.subr.bf16.mxu1 %v1697_v5  ;;  %v408_v36 = vld [vmem:[%s2041_s6 + $0x388] sm:$0xff]  ;;  %v1707_v38 = vpack.c.bf16 %v342_v32, %v341_v30  ;;  %v1709_v39 = vpack.c.bf16 %v376_v34, %v375_v33  ;;  %v359_v40 = vld [vmem:[%s2041_s6 + $0x200] sm:$0xff]  ;;  %v377_v45 = vld [vmem:[%s2041_s6 + $0x290] sm:$0xff] }
  0x30   : > { %v360_v41 = vld [vmem:[%s2041_s6 + $0x208] sm:$0xff]  ;;  %v391_v42 = vld [vmem:[%s2041_s6 + $0x300] sm:$0xff]  ;;  %v1741_v43 = vpack.c.bf16 %v408_v36, %v407_v35  ;;  %v378_v46 = vld [vmem:[%s2041_s6 + $0x298] sm:$0xff] }
  0x31   : > { %1668 = vmatpush3.bf16.msra.mxu0 %v1667_v11  ;;  %v392_v44 = vld [vmem:[%s2041_s6 + $0x308] sm:$0xff]  ;;  %v409_v47 = vld [vmem:[%s2041_s6 + $0x390] sm:$0xff]  ;;  %v410_v48 = vld [vmem:[%s2041_s6 + $0x398] sm:$0xff]  ;;  %v1711_v51 = vpack.c.bf16 %v360_v41, %v359_v40  ;;  %v1713_v53 = vpack.c.bf16 %v378_v46, %v377_v45 }
  0x32   : > { %1700 = vmatpush3.bf16.msra.mxu1 %v1699_v14  ;;  %1670 = vmatprep.subr.bf16.mxu0 %v1669_v15  ;;  %v279_v49 = vld [vmem:[%s2036_s27] sm:$0xff]  ;;  %v281_v50 = vld [vmem:[%s2036_s27 + $0x10] sm:$0xff]  ;;  %v1743_v52 = vpack.c.bf16 %v392_v44, %v391_v42  ;;  %v362_v55 = vld [vmem:[%s2041_s6 + $0x218] sm:$0xff]  ;;  %v1745_v57 = vpack.c.bf16 %v410_v48, %v409_v47 }
  0x33   : > { %1702 = vmatprep.subr.bf16.mxu1 %v1701_v19  ;;  %v361_v54 = vld [vmem:[%s2041_s6 + $0x210] sm:$0xff]  ;;  %v394_v58 = vld [vmem:[%s2041_s6 + $0x318] sm:$0xff]  ;;  %v379_v59 = vld [vmem:[%s2041_s6 + $0x2a0] sm:$0xff] }
  0x34   : > { %v393_v56 = vld [vmem:[%s2041_s6 + $0x310] sm:$0xff]  ;;  %v380_v60 = vld [vmem:[%s2041_s6 + $0x2a8] sm:$0xff]  ;;  %v411_v61 = vld [vmem:[%s2041_s6 + $0x3a0] sm:$0xff]  ;;  %v1715_v63 = vpack.c.bf16 %v362_v55, %v361_v54 }
  0x35   : > { %1672 = vmatpush3.bf16.msra.mxu0 %v1671_v25  ;;  %v412_v62 = vld [vmem:[%s2041_s6 + $0x3a8] sm:$0xff]  ;;  %v1747_v0 = vpack.c.bf16 %v394_v58, %v393_v56  ;;  %v1717_v1 = vpack.c.bf16 %v380_v60, %v379_v59  ;;  %v363_v2 = vld [vmem:[%s2041_s6 + $0x220] sm:$0xff]  ;;  %v381_v7 = vld [vmem:[%s2041_s6 + $0x2b0] sm:$0xff] }
  0x36   : > { %1704 = vmatpush3.bf16.msra.mxu1 %v1703_v26  ;;  %1674 = vmatprep.subr.bf16.mxu0 %v1673_v27  ;;  %v364_v3 = vld [vmem:[%s2041_s6 + $0x228] sm:$0xff]  ;;  %v395_v4 = vld [vmem:[%s2041_s6 + $0x320] sm:$0xff]  ;;  %v1749_v5 = vpack.c.bf16 %v412_v62, %v411_v61  ;;  %v382_v8 = vld [vmem:[%s2041_s6 + $0x2b8] sm:$0xff] }
  0x37   : > { %1706 = vmatprep.subr.bf16.mxu1 %v1705_v31  ;;  %v396_v6 = vld [vmem:[%s2041_s6 + $0x328] sm:$0xff]  ;;  %v413_v9 = vld [vmem:[%s2041_s6 + $0x3b0] sm:$0xff]  ;;  %v414_v10 = vld [vmem:[%s2041_s6 + $0x3b8] sm:$0xff]  ;;  %v1719_v11 = vpack.c.bf16 %v364_v3, %v363_v2  ;;  %v1721_v13 = vpack.c.bf16 %v382_v8, %v381_v7 }
  0x38   : > { %v1751_v12 = vpack.c.bf16 %v396_v6, %v395_v4  ;;  %v365_v14 = vld [vmem:[%s2041_s6 + $0x230] sm:$0xff]  ;;  %v366_v15 = vld [vmem:[%s2041_s6 + $0x238] sm:$0xff]  ;;  %v1753_v17 = vpack.c.bf16 %v414_v10, %v413_v9  ;;  %v383_v19 = vld [vmem:[%s2041_s6 + $0x2c0] sm:$0xff] }
  0x39   : > { %1676 = vmatpush3.bf16.msra.mxu0 %v1675_v37  ;;  %v397_v16 = vld [vmem:[%s2041_s6 + $0x330] sm:$0xff]  ;;  %v398_v18 = vld [vmem:[%s2041_s6 + $0x338] sm:$0xff]  ;;  %v384_v20 = vld [vmem:[%s2041_s6 + $0x2c8] sm:$0xff]  ;;  %v1723_v23 = vpack.c.bf16 %v366_v15, %v365_v14 }
  0x3a   : > { %1708 = vmatpush3.bf16.msra.mxu1 %v1707_v38  ;;  %1710 = vmatprep.subr.bf16.mxu0 %v1709_v39  ;;  %v415_v21 = vld [vmem:[%s2041_s6 + $0x3c0] sm:$0xff]  ;;  %v416_v22 = vld [vmem:[%s2041_s6 + $0x3c8] sm:$0xff]  ;;  %v1755_v26 = vpack.c.bf16 %v398_v18, %v397_v16  ;;  %v1725_v27 = vpack.c.bf16 %v384_v20, %v383_v19  ;;  %v286_v30 = vld [vmem:[%s2036_s27 + $0x38] sm:$0xff] }
  0x3b   : > { %1742 = vmatprep.subr.bf16.mxu1 %v1741_v43  ;;  %v367_v24 = vld [vmem:[%s2041_s6 + $0x240] sm:$0xff]  ;;  %v284_v25 = vld [vmem:[%s2036_s27 + $0x28] sm:$0xff]  ;;  %v1757_v31 = vpack.c.bf16 %v416_v22, %v415_v21  ;;  %v385_v33 = vld [vmem:[%s2041_s6 + $0x2d0] sm:$0xff] }
  0x3c   : > { %616 = vmatmul.mubr.f32.vlgmr.msra.gmra.mrb[0].mxu0 %v279_v49  ;;  %v368_v28 = vld [vmem:[%s2041_s6 + $0x248] sm:$0xff]  ;;  %v399_v29 = vld [vmem:[%s2041_s6 + $0x340] sm:$0xff]  ;;  %v386_v34 = vld [vmem:[%s2041_s6 + $0x2d8] sm:$0xff] }
  0x3d   : > { %686 = vmatmul.mubr.f32.vlgmr.msra.gmra.mrb[0].mxu1 %v281_v50  ;;  %1712 = vmatpush3.bf16.msra.mxu0 %v1711_v51  ;;  %v400_v32 = vld [vmem:[%s2041_s6 + $0x348] sm:$0xff]  ;;  %v417_v35 = vld [vmem:[%s2041_s6 + $0x3d0] sm:$0xff]  ;;  %v418_v36 = vld [vmem:[%s2041_s6 + $0x3d8] sm:$0xff]  ;;  %v1727_v37 = vpack.c.bf16 %v368_v28, %v367_v24  ;;  %v1729_v39 = vpack.c.bf16 %v386_v34, %v385_v33 }
  0x3e   : > { %1744 = vmatpush3.bf16.msra.mxu1 %v1743_v52  ;;  %1714 = vmatprep.subr.bf16.mxu0 %v1713_v53  ;;  %v1759_v38 = vpack.c.bf16 %v400_v32, %v399_v29  ;;  %v369_v40 = vld [vmem:[%s2041_s6 + $0x250] sm:$0xff]  ;;  %v370_v41 = vld [vmem:[%s2041_s6 + $0x258] sm:$0xff]  ;;  %v1761_v43 = vpack.c.bf16 %v418_v36, %v417_v35  ;;  %v387_v45 = vld [vmem:[%s2041_s6 + $0x2e0] sm:$0xff] }
  0x3f   : > { %1746 = vmatprep.subr.bf16.mxu1 %v1745_v57  ;;  %755 = vmatprep.mubr.f32.mxu0 %v284_v25  ;;  %v401_v42 = vld [vmem:[%s2041_s6 + $0x350] sm:$0xff]  ;;  %v402_v44 = vld [vmem:[%s2041_s6 + $0x358] sm:$0xff]  ;;  %v388_v46 = vld [vmem:[%s2041_s6 + $0x2e8] sm:$0xff]  ;;  %v1731_v49 = vpack.c.bf16 %v370_v41, %v369_v40 }
  0x40   : > { %825 = vmatprep.mubr.f32.mxu1 %v286_v30  ;;  %v419_v47 = vld [vmem:[%s2041_s6 + $0x3e0] sm:$0xff]  ;;  %v420_v48 = vld [vmem:[%s2041_s6 + $0x3e8] sm:$0xff]  ;;  %v1763_v50 = vpack.c.bf16 %v402_v44, %v401_v42  ;;  %v1733_v51 = vpack.c.bf16 %v388_v46, %v387_v45  ;;  %v389_v57 = vld [vmem:[%s2041_s6 + $0x2f0] sm:$0xff] }
  0x41   : > { %1716 = vmatpush3.bf16.msra.mxu0 %v1715_v63  ;;  %v371_v52 = vld [vmem:[%s2041_s6 + $0x260] sm:$0xff]  ;;  %v372_v53 = vld [vmem:[%s2041_s6 + $0x268] sm:$0xff]  ;;  %v1765_v55 = vpack.c.bf16 %v420_v48, %v419_v47  ;;  %v390_v58 = vld [vmem:[%s2041_s6 + $0x2f8] sm:$0xff] }
  0x42   : > { %1748 = vmatpush3.bf16.msra.mxu1 %v1747_v0  ;;  %1718 = vmatprep.subr.bf16.mxu0 %v1717_v1  ;;  %v403_v54 = vld [vmem:[%s2041_s6 + $0x360] sm:$0xff]  ;;  %v404_v56 = vld [vmem:[%s2041_s6 + $0x368] sm:$0xff]  ;;  %v421_v59 = vld [vmem:[%s2041_s6 + $0x3f0] sm:$0xff]  ;;  %v1735_v61 = vpack.c.bf16 %v372_v53, %v371_v52  ;;  %v1737_v63 = vpack.c.bf16 %v390_v58, %v389_v57 }
  0x43   : > { %1750 = vmatprep.subr.bf16.mxu1 %v1749_v5  ;;  %v422_v60 = vld [vmem:[%s2041_s6 + $0x3f8] sm:$0xff]  ;;  %v1767_v62 = vpack.c.bf16 %v404_v56, %v403_v54  ;;  %v373_v0 = vld [vmem:[%s2041_s6 + $0x270] sm:$0xff]  ;;  %v439_v5 = vld [vmem:[%s2041_s6 + $0x480] sm:$0xff] }
  0x44   : > { %v374_v1 = vld [vmem:[%s2041_s6 + $0x278] sm:$0xff]  ;;  %v405_v2 = vld [vmem:[%s2041_s6 + $0x370] sm:$0xff]  ;;  %v1769_v3 = vpack.c.bf16 %v422_v60, %v421_v59  ;;  %v440_v6 = vld [vmem:[%s2041_s6 + $0x488] sm:$0xff] }
  0x45   : > { %1720 = vmatpush3.bf16.msra.mxu0 %v1719_v11  ;;  %v406_v4 = vld [vmem:[%s2041_s6 + $0x378] sm:$0xff]  ;;  %v471_v7 = vld [vmem:[%s2041_s6 + $0x580] sm:$0xff]  ;;  %v472_v8 = vld [vmem:[%s2041_s6 + $0x588] sm:$0xff]  ;;  %v1739_v9 = vpack.c.bf16 %v374_v1, %v373_v0  ;;  %v1773_v11 = vpack.c.bf16 %v440_v6, %v439_v5 }
  0x46   : > { %1752 = vmatpush3.bf16.msra.mxu1 %v1751_v12  ;;  %1722 = vmatprep.subr.bf16.mxu0 %v1721_v13  ;;  %v1771_v10 = vpack.c.bf16 %v406_v4, %v405_v2  ;;  %v423_v12 = vld [vmem:[%s2041_s6 + $0x400] sm:$0xff]  ;;  %v424_v13 = vld [vmem:[%s2041_s6 + $0x408] sm:$0xff]  ;;  %v1805_v15 = vpack.c.bf16 %v472_v8, %v471_v7  ;;  %v442_v18 = vld [vmem:[%s2041_s6 + $0x498] sm:$0xff] }
  0x47   : > { %1754 = vmatprep.subr.bf16.mxu1 %v1753_v17  ;;  %v455_v14 = vld [vmem:[%s2041_s6 + $0x500] sm:$0xff]  ;;  %v456_v16 = vld [vmem:[%s2041_s6 + $0x508] sm:$0xff]  ;;  %v441_v17 = vld [vmem:[%s2041_s6 + $0x490] sm:$0xff]  ;;  %v1775_v22 = vpack.c.bf16 %v424_v13, %v423_v12 }
  0x48   : > { %v473_v19 = vld [vmem:[%s2041_s6 + $0x590] sm:$0xff]  ;;  %v474_v20 = vld [vmem:[%s2041_s6 + $0x598] sm:$0xff]  ;;  %v283_v21 = vld [vmem:[%s2036_s27 + $0x20] sm:$0xff]  ;;  %v1807_v24 = vpack.c.bf16 %v456_v16, %v455_v14  ;;  %v1777_v25 = vpack.c.bf16 %v442_v18, %v441_v17 }
  0x49   : > { %1724 = vmatpush3.bf16.msra.mxu0 %v1723_v23  ;;  %v285_v23 = vld [vmem:[%s2036_s27 + $0x30] sm:$0xff]  ;;  %v1809_v29 = vpack.c.bf16 %v474_v20, %v473_v19  ;;  %v458_v30 = vld [vmem:[%s2041_s6 + $0x518] sm:$0xff]  ;;  %v444_v32 = vld [vmem:[%s2041_s6 + $0x4a8] sm:$0xff] }
  0x4a   : > { %1756 = vmatpush3.bf16.msra.mxu1 %v1755_v26  ;;  %1726 = vmatprep.subr.bf16.mxu0 %v1725_v27  ;;  %v425_v26 = vld [vmem:[%s2041_s6 + $0x410] sm:$0xff]  ;;  %v426_v27 = vld [vmem:[%s2041_s6 + $0x418] sm:$0xff]  ;;  %v475_v33 = vld [vmem:[%s2041_s6 + $0x5a0] sm:$0xff] }
  0x4b   : > { %1758 = vmatprep.subr.bf16.mxu1 %v1757_v31  ;;  %v457_v28 = vld [vmem:[%s2041_s6 + $0x510] sm:$0xff]  ;;  %v443_v31 = vld [vmem:[%s2041_s6 + $0x4a0] sm:$0xff]  ;;  %v476_v34 = vld [vmem:[%s2041_s6 + $0x5a8] sm:$0xff]  ;;  %v1779_v36 = vpack.c.bf16 %v426_v27, %v425_v26 }
  0x4c   : > { %v288_v35 = vld [vmem:[%s2036_s27 + $0x48] sm:$0xff]  ;;  %v427_v40 = vld [vmem:[%s2041_s6 + $0x420] sm:$0xff]  ;;  %v445_v45 = vld [vmem:[%s2041_s6 + $0x4b0] sm:$0xff] }
  0x4d   : > { %1728 = vmatpush3.bf16.msra.mxu0 %v1727_v37  ;;  %v290_v37 = vld [vmem:[%s2036_s27 + $0x58] sm:$0xff]  ;;  %v428_v41 = vld [vmem:[%s2041_s6 + $0x428] sm:$0xff]  ;;  %v459_v42 = vld [vmem:[%s2041_s6 + $0x520] sm:$0xff] }
  0x4e   : > { %1760 = vmatpush3.bf16.msra.mxu1 %v1759_v38  ;;  %1730 = vmatprep.subr.bf16.mxu0 %v1729_v39  ;;  %v1811_v38 = vpack.c.bf16 %v458_v30, %v457_v28  ;;  %v1781_v39 = vpack.c.bf16 %v444_v32, %v443_v31  ;;  %v460_v44 = vld [vmem:[%s2041_s6 + $0x528] sm:$0xff]  ;;  %v446_v46 = vld [vmem:[%s2041_s6 + $0x4b8] sm:$0xff]  ;;  %v477_v47 = vld [vmem:[%s2041_s6 + $0x5b0] sm:$0xff] }
  0x4f   : > { %1762 = vmatprep.subr.bf16.mxu1 %v1761_v43  ;;  %v1813_v43 = vpack.c.bf16 %v476_v34, %v475_v33  ;;  %v478_v48 = vld [vmem:[%s2041_s6 + $0x5b8] sm:$0xff]  ;;  %v429_v52 = vld [vmem:[%s2041_s6 + $0x430] sm:$0xff]  ;;  %v447_v57 = vld [vmem:[%s2041_s6 + $0x4c0] sm:$0xff] }
  0x50   : > { %v430_v53 = vld [vmem:[%s2041_s6 + $0x438] sm:$0xff]  ;;  %v461_v54 = vld [vmem:[%s2041_s6 + $0x530] sm:$0xff]  ;;  %v448_v58 = vld [vmem:[%s2041_s6 + $0x4c8] sm:$0xff] }
  0x51   : > { %1732 = vmatpush3.bf16.msra.mxu0 %v1731_v49  ;;  %v1783_v49 = vpack.c.bf16 %v428_v41, %v427_v40  ;;  %v462_v56 = vld [vmem:[%s2041_s6 + $0x538] sm:$0xff]  ;;  %v479_v59 = vld [vmem:[%s2041_s6 + $0x5c0] sm:$0xff]  ;;  %v480_v60 = vld [vmem:[%s2041_s6 + $0x5c8] sm:$0xff] }
  0x52   : > { %1764 = vmatpush3.bf16.msra.mxu1 %v1763_v50  ;;  %1734 = vmatprep.subr.bf16.mxu0 %v1733_v51  ;;  %v1815_v50 = vpack.c.bf16 %v460_v44, %v459_v42  ;;  %v1785_v51 = vpack.c.bf16 %v446_v46, %v445_v45  ;;  %v431_v0 = vld [vmem:[%s2041_s6 + $0x440] sm:$0xff]  ;;  %v432_v1 = vld [vmem:[%s2041_s6 + $0x448] sm:$0xff]  ;;  %v449_v5 = vld [vmem:[%s2041_s6 + $0x4d0] sm:$0xff] }
  0x53   : > { %1766 = vmatprep.subr.bf16.mxu1 %v1765_v55  ;;  %v1817_v55 = vpack.c.bf16 %v478_v48, %v477_v47  ;;  %v463_v2 = vld [vmem:[%s2041_s6 + $0x540] sm:$0xff]  ;;  %v464_v4 = vld [vmem:[%s2041_s6 + $0x548] sm:$0xff]  ;;  %v450_v6 = vld [vmem:[%s2041_s6 + $0x4d8] sm:$0xff] }
  0x54   : > { %v481_v7 = vld [vmem:[%s2041_s6 + $0x5d0] sm:$0xff]  ;;  %v482_v8 = vld [vmem:[%s2041_s6 + $0x5d8] sm:$0xff]  ;;  %v451_v17 = vld [vmem:[%s2041_s6 + $0x4e0] sm:$0xff] }
  0x55   : > { %1736 = vmatpush3.bf16.msra.mxu0 %v1735_v61  ;;  %v1787_v61 = vpack.c.bf16 %v430_v53, %v429_v52  ;;  %v433_v12 = vld [vmem:[%s2041_s6 + $0x450] sm:$0xff]  ;;  %v434_v13 = vld [vmem:[%s2041_s6 + $0x458] sm:$0xff]  ;;  %v452_v18 = vld [vmem:[%s2041_s6 + $0x4e8] sm:$0xff] }
  0x56   : > { %1768 = vmatpush3.bf16.msra.mxu1 %v1767_v62  ;;  %1738 = vmatprep.subr.bf16.mxu0 %v1737_v63  ;;  %v1819_v62 = vpack.c.bf16 %v462_v56, %v461_v54  ;;  %v1789_v63 = vpack.c.bf16 %v448_v58, %v447_v57  ;;  %v465_v14 = vld [vmem:[%s2041_s6 + $0x550] sm:$0xff]  ;;  %v466_v16 = vld [vmem:[%s2041_s6 + $0x558] sm:$0xff]  ;;  %v483_v19 = vld [vmem:[%s2041_s6 + $0x5e0] sm:$0xff] }
  0x57   : > { %1770 = vmatprep.subr.bf16.mxu1 %v1769_v3  ;;  %v1821_v3 = vpack.c.bf16 %v480_v60, %v479_v59  ;;  %v484_v20 = vld [vmem:[%s2041_s6 + $0x5e8] sm:$0xff]  ;;  %v467_v26 = vld [vmem:[%s2041_s6 + $0x560] sm:$0xff]  ;;  %v454_v30 = vld [vmem:[%s2041_s6 + $0x4f8] sm:$0xff] }
  0x58   : > { %v1829_v27 = vpack.c.bf16 %v484_v20, %v483_v19  ;;  %v468_v28 = vld [vmem:[%s2041_s6 + $0x568] sm:$0xff]  ;;  %v485_v31 = vld [vmem:[%s2041_s6 + $0x5f0] sm:$0xff]  ;;  %v486_v32 = vld [vmem:[%s2041_s6 + $0x5f8] sm:$0xff] }
  0x59   : > { %1740 = vmatpush3.bf16.msra.mxu0 %v1739_v9  ;;  %v1791_v9 = vpack.c.bf16 %v432_v1, %v431_v0  ;;  %v1831_v34 = vpack.c.bf16 %v468_v28, %v467_v26  ;;  %v470_v40 = vld [vmem:[%s2041_s6 + $0x578] sm:$0xff]  ;;  %v503_v41 = vld [vmem:[%s2041_s6 + $0x680] sm:$0xff]  ;;  %v504_v42 = vld [vmem:[%s2041_s6 + $0x688] sm:$0xff] }
  0x5a   : > { %1772 = vmatpush3.bf16.msra.mxu1 %v1771_v10  ;;  %1774 = vmatprep.subr.bf16.mxu0 %v1773_v11  ;;  %v1823_v10 = vpack.c.bf16 %v464_v4, %v463_v2  ;;  %v1793_v11 = vpack.c.bf16 %v450_v6, %v449_v5  ;;  %v536_v44 = vld [vmem:[%s2041_s6 + $0x788] sm:$0xff]  ;;  %v1837_v47 = vpack.c.bf16 %v504_v42, %v503_v41  ;;  %v487_v48 = vld [vmem:[%s2041_s6 + $0x600] sm:$0xff]  ;;  %v505_v53 = vld [vmem:[%s2041_s6 + $0x690] sm:$0xff] }
  0x5b   : > { %1806 = vmatprep.subr.bf16.mxu1 %v1805_v15  ;;  %v1825_v15 = vpack.c.bf16 %v482_v8, %v481_v7  ;;  %v520_v52 = vld [vmem:[%s2041_s6 + $0x708] sm:$0xff]  ;;  %v506_v54 = vld [vmem:[%s2041_s6 + $0x698] sm:$0xff]  ;;  %v287_v57 = vld [vmem:[%s2036_s27 + $0x40] sm:$0xff] }
  0x5c   : > { %756 = vmatmul.mubr.f32.vlgmr.msra.gmra.mrb[2].mxu0 %v283_v21  ;;  %v1795_v21 = vpack.c.bf16 %v434_v13, %v433_v12  ;;  %v538_v56 = vld [vmem:[%s2041_s6 + $0x798] sm:$0xff]  ;;  %v289_v59 = vld [vmem:[%s2036_s27 + $0x50] sm:$0xff]  ;;  %v508_v4 = vld [vmem:[%s2041_s6 + $0x6a8] sm:$0xff] }
  0x5d   : > { %1776 = vmatpush3.bf16.msra.mxu0 %v1775_v22  ;;  %826 = vmatmul.mubr.f32.vlgmr.msra.gmra.mrb[2].mxu1 %v285_v23  ;;  %v1827_v22 = vpack.c.bf16 %v466_v16, %v465_v14  ;;  %v1797_v23 = vpack.c.bf16 %v452_v18, %v451_v17  ;;  %v521_v0 = vld [vmem:[%s2041_s6 + $0x710] sm:$0xff]  ;;  %v522_v2 = vld [vmem:[%s2041_s6 + $0x718] sm:$0xff]  ;;  %v539_v5 = vld [vmem:[%s2041_s6 + $0x7a0] sm:$0xff] }
  0x5e   : > { %1808 = vmatpush3.bf16.msra.mxu1 %v1807_v24  ;;  %1778 = vmatprep.subr.bf16.mxu0 %v1777_v25  ;;  %v435_v24 = vld [vmem:[%s2041_s6 + $0x460] sm:$0xff]  ;;  %v436_v25 = vld [vmem:[%s2041_s6 + $0x468] sm:$0xff]  ;;  %v509_v17 = vld [vmem:[%s2041_s6 + $0x6b0] sm:$0xff] }
  0x5f   : > { %1810 = vmatprep.subr.bf16.mxu1 %v1809_v29  ;;  %895 = vmatprep.mubr.f32.mxu0 %v288_v35  ;;  %v453_v29 = vld [vmem:[%s2041_s6 + $0x4f0] sm:$0xff]  ;;  %v1799_v33 = vpack.c.bf16 %v436_v25, %v435_v24  ;;  %v540_v6 = vld [vmem:[%s2041_s6 + $0x7a8] sm:$0xff]  ;;  %v491_v12 = vld [vmem:[%s2041_s6 + $0x620] sm:$0xff] }
  0x60   : > { %965 = vmatprep.mubr.f32.mxu1 %v290_v37  ;;  %v1801_v35 = vpack.c.bf16 %v454_v30, %v453_v29  ;;  %v438_v37 = vld [vmem:[%s2041_s6 + $0x478] sm:$0xff]  ;;  %v292_v7 = vld [vmem:[%s2036_s27 + $0x68] sm:$0xff]  ;;  %v523_v14 = vld [vmem:[%s2041_s6 + $0x720] sm:$0xff] }
  0x61   : > { %1780 = vmatpush3.bf16.msra.mxu0 %v1779_v36  ;;  %v437_v36 = vld [vmem:[%s2041_s6 + $0x470] sm:$0xff]  ;;  %v492_v13 = vld [vmem:[%s2041_s6 + $0x628] sm:$0xff]  ;;  %v510_v18 = vld [vmem:[%s2041_s6 + $0x6b8] sm:$0xff] }
  0x62   : > { %1812 = vmatpush3.bf16.msra.mxu1 %v1811_v38  ;;  %1782 = vmatprep.subr.bf16.mxu0 %v1781_v39  ;;  %v469_v38 = vld [vmem:[%s2041_s6 + $0x570] sm:$0xff]  ;;  %v1833_v39 = vpack.c.bf16 %v486_v32, %v485_v31  ;;  %v1803_v45 = vpack.c.bf16 %v438_v37, %v437_v36  ;;  %v524_v16 = vld [vmem:[%s2041_s6 + $0x728] sm:$0xff]  ;;  %v542_v20 = vld [vmem:[%s2041_s6 + $0x7b8] sm:$0xff] }
  0x63   : > { %1814 = vmatprep.subr.bf16.mxu1 %v1813_v43  ;;  %v535_v43 = vld [vmem:[%s2041_s6 + $0x780] sm:$0xff]  ;;  %v1835_v46 = vpack.c.bf16 %v470_v40, %v469_v38  ;;  %v541_v19 = vld [vmem:[%s2041_s6 + $0x7b0] sm:$0xff]  ;;  %v494_v25 = vld [vmem:[%s2041_s6 + $0x638] sm:$0xff] }
  0x64   : > { %v493_v24 = vld [vmem:[%s2041_s6 + $0x630] sm:$0xff]  ;;  %v526_v28 = vld [vmem:[%s2041_s6 + $0x738] sm:$0xff]  ;;  %v511_v29 = vld [vmem:[%s2041_s6 + $0x6c0] sm:$0xff] }
  0x65   : > { %1784 = vmatpush3.bf16.msra.mxu0 %v1783_v49  ;;  %v488_v49 = vld [vmem:[%s2041_s6 + $0x608] sm:$0xff]  ;;  %v525_v26 = vld [vmem:[%s2041_s6 + $0x730] sm:$0xff]  ;;  %v543_v31 = vld [vmem:[%s2041_s6 + $0x7c0] sm:$0xff] }
  0x66   : > { %1816 = vmatpush3.bf16.msra.mxu1 %v1815_v50  ;;  %1786 = vmatprep.subr.bf16.mxu0 %v1785_v51  ;;  %v519_v50 = vld [vmem:[%s2041_s6 + $0x700] sm:$0xff]  ;;  %v1869_v51 = vpack.c.bf16 %v536_v44, %v535_v43  ;;  %v1839_v58 = vpack.c.bf16 %v488_v49, %v487_v48  ;;  %v512_v30 = vld [vmem:[%s2041_s6 + $0x6c8] sm:$0xff]  ;;  %v513_v41 = vld [vmem:[%s2041_s6 + $0x6d0] sm:$0xff] }
  0x67   : > { %1818 = vmatprep.subr.bf16.mxu1 %v1817_v55  ;;  %v537_v55 = vld [vmem:[%s2041_s6 + $0x790] sm:$0xff]  ;;  %v1871_v60 = vpack.c.bf16 %v520_v52, %v519_v50  ;;  %v544_v32 = vld [vmem:[%s2041_s6 + $0x7c8] sm:$0xff]  ;;  %v495_v36 = vld [vmem:[%s2041_s6 + $0x640] sm:$0xff] }
  0x68   : > { %v1873_v1 = vpack.c.bf16 %v538_v56, %v537_v55  ;;  %v496_v37 = vld [vmem:[%s2041_s6 + $0x648] sm:$0xff]  ;;  %v527_v38 = vld [vmem:[%s2041_s6 + $0x740] sm:$0xff]  ;;  %v514_v42 = vld [vmem:[%s2041_s6 + $0x6d8] sm:$0xff] }
  0x69   : > { %1788 = vmatpush3.bf16.msra.mxu0 %v1787_v61  ;;  %v1841_v61 = vpack.c.bf16 %v506_v54, %v505_v53  ;;  %v528_v40 = vld [vmem:[%s2041_s6 + $0x748] sm:$0xff]  ;;  %v545_v43 = vld [vmem:[%s2041_s6 + $0x7d0] sm:$0xff]  ;;  %v546_v44 = vld [vmem:[%s2041_s6 + $0x7d8] sm:$0xff] }
  0x6a   : > { %1820 = vmatpush3.bf16.msra.mxu1 %v1819_v62  ;;  %1790 = vmatprep.subr.bf16.mxu0 %v1789_v63  ;;  %v489_v62 = vld [vmem:[%s2041_s6 + $0x610] sm:$0xff]  ;;  %v490_v63 = vld [vmem:[%s2041_s6 + $0x618] sm:$0xff]  ;;  %v515_v53 = vld [vmem:[%s2041_s6 + $0x6e0] sm:$0xff] }
  0x6b   : > { %1822 = vmatprep.subr.bf16.mxu1 %v1821_v3  ;;  %v507_v3 = vld [vmem:[%s2041_s6 + $0x6a0] sm:$0xff]  ;;  %v1843_v8 = vpack.c.bf16 %v490_v63, %v489_v62  ;;  %v497_v48 = vld [vmem:[%s2041_s6 + $0x650] sm:$0xff]  ;;  %v498_v49 = vld [vmem:[%s2041_s6 + $0x658] sm:$0xff] }
  0x6c   : > { %v529_v50 = vld [vmem:[%s2041_s6 + $0x750] sm:$0xff]  ;;  %v530_v52 = vld [vmem:[%s2041_s6 + $0x758] sm:$0xff]  ;;  %v516_v54 = vld [vmem:[%s2041_s6 + $0x6e8] sm:$0xff] }
  0x6d   : > { %1792 = vmatpush3.bf16.msra.mxu0 %v1791_v9  ;;  %v294_v9 = vld [vmem:[%s2036_s27 + $0x78] sm:$0xff]  ;;  %v547_v55 = vld [vmem:[%s2041_s6 + $0x7e0] sm:$0xff]  ;;  %v548_v56 = vld [vmem:[%s2041_s6 + $0x7e8] sm:$0xff] }
  0x6e   : > { %1824 = vmatpush3.bf16.msra.mxu1 %v1823_v10  ;;  %1794 = vmatprep.subr.bf16.mxu0 %v1793_v11  ;;  %v1875_v10 = vpack.c.bf16 %v522_v2, %v521_v0  ;;  %v1845_v11 = vpack.c.bf16 %v508_v4, %v507_v3  ;;  %v531_v62 = vld [vmem:[%s2041_s6 + $0x760] sm:$0xff]  ;;  %v1893_v63 = vpack.c.bf16 %v548_v56, %v547_v55  ;;  %v532_v0 = vld [vmem:[%s2041_s6 + $0x768] sm:$0xff]  ;;  %v518_v2 = vld [vmem:[%s2041_s6 + $0x6f8] sm:$0xff]  ;;  %v1980_v56 = vmov (!%p1307_p7), 0.0  }
  0x6f   : > { %1826 = vmatprep.subr.bf16.mxu1 %v1825_v15  ;;  %v1877_v15 = vpack.c.bf16 %v540_v6, %v539_v5  ;;  %v549_v3 = vld [vmem:[%s2041_s6 + $0x7f0] sm:$0xff]  ;;  %v550_v4 = vld [vmem:[%s2041_s6 + $0x7f8] sm:$0xff]  ;;  %v1895_v6 = vpack.c.bf16 %v532_v0, %v531_v62  ;;  %v1135_v0 = vld [vmem:[%s2386_s3 + $0x40] sm:$0xff] (!%p1307_p7) }
  0x70   : > { %v1130_v55 = vld [vmem:[%s2386_s3 + $0x18] sm:$0xff] (!%p1307_p7) }
  0x71   : > { %1796 = vmatpush3.bf16.msra.mxu0 %v1795_v21  ;;  %v1847_v21 = vpack.c.bf16 %v492_v13, %v491_v12  ;;  %v534_v12 = vld [vmem:[%s2041_s6 + $0x778] sm:$0xff] }
  0x72   : > { %1828 = vmatpush3.bf16.msra.mxu1 %v1827_v22  ;;  %1798 = vmatprep.subr.bf16.mxu0 %v1797_v23  ;;  %v1879_v22 = vpack.c.bf16 %v524_v16, %v523_v14  ;;  %v1849_v23 = vpack.c.bf16 %v510_v18, %v509_v17  ;;  %v293_v16 = vld [vmem:[%s2036_s27 + $0x70] sm:$0xff]  ;;  %v1134_v62 = vld [vmem:[%s2386_s3 + $0x38] sm:$0xff] (!%p1307_p7) }
  0x73   : > { %1830 = vmatprep.subr.bf16.mxu1 %v1829_v27  ;;  %v1881_v27 = vpack.c.bf16 %v542_v20, %v541_v19 }
  0x75   : > { %1800 = vmatpush3.bf16.msra.mxu0 %v1799_v33  ;;  %v1851_v33 = vpack.c.bf16 %v494_v25, %v493_v24 }
  0x76   : > { %1832 = vmatpush3.bf16.msra.mxu1 %v1831_v34  ;;  %1802 = vmatprep.subr.bf16.mxu0 %v1801_v35  ;;  %v1883_v34 = vpack.c.bf16 %v526_v28, %v525_v26  ;;  %v1853_v35 = vpack.c.bf16 %v512_v30, %v511_v29 }
  0x77   : > { %1834 = vmatprep.subr.bf16.mxu1 %v1833_v39  ;;  %v1885_v39 = vpack.c.bf16 %v544_v32, %v543_v31 }
  0x79   : > { %1804 = vmatpush3.bf16.msra.mxu0 %v1803_v45  ;;  %v1855_v45 = vpack.c.bf16 %v496_v37, %v495_v36 }
  0x7a   : > { %1836 = vmatpush3.bf16.msra.mxu1 %v1835_v46  ;;  %1838 = vmatprep.subr.bf16.mxu0 %v1837_v47  ;;  %v1887_v46 = vpack.c.bf16 %v528_v40, %v527_v38  ;;  %v1857_v47 = vpack.c.bf16 %v514_v42, %v513_v41 }
  0x7b   : > { %1870 = vmatprep.subr.bf16.mxu1 %v1869_v51  ;;  %v1889_v51 = vpack.c.bf16 %v546_v44, %v545_v43 }
  0x7c   : > { %896 = vmatmul.mubr.f32.vlgmr.msra.gmra.mrb[4].mxu0 %v287_v57  ;;  %v1859_v57 = vpack.c.bf16 %v498_v49, %v497_v48 }
  0x7d   : > { %1840 = vmatpush3.bf16.msra.mxu0 %v1839_v58  ;;  %966 = vmatmul.mubr.f32.vlgmr.msra.gmra.mrb[4].mxu1 %v289_v59  ;;  %v1891_v58 = vpack.c.bf16 %v530_v52, %v529_v50  ;;  %v1861_v59 = vpack.c.bf16 %v516_v54, %v515_v53  ;;  %v1127_v50 = vld [vmem:[%s2386_s3] sm:$0xff] (!%p1307_p7)  ;;  %v1129_v52 = vld [vmem:[%s2386_s3 + $0x10] sm:$0xff] (!%p1307_p7)  ;;  %v1978_v53 = vmov (!%p1307_p7), 0.0|0.0  }
  0x7e   : > { %1872 = vmatpush3.bf16.msra.mxu1 %v1871_v60  ;;  %1842 = vmatprep.subr.bf16.mxu0 %v1841_v61  ;;  %v499_v60 = vld [vmem:[%s2041_s6 + $0x660] sm:$0xff]  ;;  %v500_v61 = vld [vmem:[%s2041_s6 + $0x668] sm:$0xff] }
  0x7f   : > { %1874 = vmatprep.subr.bf16.mxu1 %v1873_v1  ;;  %1035 = vmatprep.mubr.f32.mxu0 %v292_v7  ;;  %v517_v1 = vld [vmem:[%s2041_s6 + $0x6f0] sm:$0xff]  ;;  %v1863_v5 = vpack.c.bf16 %v500_v61, %v499_v60 }
  0x80   : > { %1105 = vmatprep.mubr.f32.mxu1 %v294_v9  ;;  %v1865_v7 = vpack.c.bf16 %v518_v2, %v517_v1  ;;  %v502_v9 = vld [vmem:[%s2041_s6 + $0x678] sm:$0xff]  ;;  %v1133_v61 = vld [vmem:[%s2386_s3 + $0x30] sm:$0xff] (!%p1307_p7)  ;;  %v1136_v1 = vld [vmem:[%s2386_s3 + $0x48] sm:$0xff] (!%p1307_p7) }
  0x81   : > { %1844 = vmatpush3.bf16.msra.mxu0 %v1843_v8  ;;  %v501_v8 = vld [vmem:[%s2041_s6 + $0x670] sm:$0xff]  ;;  %v1914_v2 = vpack.c.bf16 (!%p1307_p7), %v1136_v1, %v1135_v0 }
  0x82   : > { %1876 = vmatpush3.bf16.msra.mxu1 %v1875_v10  ;;  %1846 = vmatprep.subr.bf16.mxu0 %v1845_v11  ;;  %v1897_v10 = vpack.c.bf16 %v550_v4, %v549_v3  ;;  %v533_v11 = vld [vmem:[%s2041_s6 + $0x770] sm:$0xff]  ;;  %v1867_v13 = vpack.c.bf16 %v502_v9, %v501_v8  ;;  %v1138_v4 = vld [vmem:[%s2386_s3 + $0x58] sm:$0xff] (!%p1307_p7) }
  0x83   : > { %1878 = vmatprep.subr.bf16.mxu1 %v1877_v15  ;;  %v1899_v14 = vpack.c.bf16 %v534_v12, %v533_v11  ;;  %v291_v15 = vld [vmem:[%s2036_s27 + $0x60] sm:$0xff]  ;;  %v1137_v3 = vld [vmem:[%s2386_s3 + $0x50] sm:$0xff] (!%p1307_p7)  ;;  %v1142_v12 = vld [vmem:[%s2386_s3 + $0x78] sm:$0xff] (!%p1307_p7) }
  0x84   : > { %v1141_v11 = vld [vmem:[%s2386_s3 + $0x70] sm:$0xff] (!%p1307_p7) }
  0x85   : > { %1848 = vmatpush3.bf16.msra.mxu0 %v1847_v21 }
  0x86   : > { %1880 = vmatpush3.bf16.msra.mxu1 %v1879_v22  ;;  %1850 = vmatprep.subr.bf16.mxu0 %v1849_v23 }
  0x87   : > { %1882 = vmatprep.subr.bf16.mxu1 %v1881_v27 }
  0x89   : > { %1852 = vmatpush3.bf16.msra.mxu0 %v1851_v33 }
  0x8a   : > { %1884 = vmatpush3.bf16.msra.mxu1 %v1883_v34  ;;  %1854 = vmatprep.subr.bf16.mxu0 %v1853_v35 }
  0x8b   : > { %1886 = vmatprep.subr.bf16.mxu1 %v1885_v39 }
  0x8d   : > { %1856 = vmatpush3.bf16.msra.mxu0 %v1855_v45 }
  0x8e   : > { %1888 = vmatpush3.bf16.msra.mxu1 %v1887_v46  ;;  %1858 = vmatprep.subr.bf16.mxu0 %v1857_v47  ;;  %v278_v47 = vld [vmem:[#allocation2] sm:$0xff] }
  0x8f   : > { %1890 = vmatprep.subr.bf16.mxu1 %v1889_v51  ;;  %v1128_v51 = vld [vmem:[%s2386_s3 + $0x8] sm:$0xff] (!%p1307_p7) }
  0x90   : > { %v1902_v54 = vpack.c.bf16 (!%p1307_p7), %v1128_v51, %v1127_v50 }
  0x91   : > { %1860 = vmatpush3.bf16.msra.mxu0 %v1859_v57  ;;  %v1905_v57 = vpack.c.bf16 (!%p1307_p7), %v1130_v55, %v1129_v52 }
  0x92   : > { %1892 = vmatpush3.bf16.msra.mxu1 %v1891_v58  ;;  %1862 = vmatprep.subr.bf16.mxu0 %v1861_v59  ;;  %v1131_v58 = vld [vmem:[%s2386_s3 + $0x20] sm:$0xff] (!%p1307_p7)  ;;  %v1132_v59 = vld [vmem:[%s2386_s3 + $0x28] sm:$0xff] (!%p1307_p7) }
  0x93   : > { %1894 = vmatprep.subr.bf16.mxu1 %v1893_v63  ;;  %v1908_v60 = vpack.c.bf16 (!%p1307_p7), %v1132_v59, %v1131_v58  ;;  %v1911_v63 = vpack.c.bf16 (!%p1307_p7), %v1134_v62, %v1133_v61 }
  0x95   : > { %1864 = vmatpush3.bf16.msra.mxu0 %v1863_v5  ;;  %v1917_v5 = vpack.c.bf16 (!%p1307_p7), %v1138_v4, %v1137_v3 }
  0x96   : > { %1896 = vmatpush3.bf16.msra.mxu1 %v1895_v6  ;;  %1866 = vmatprep.subr.bf16.mxu0 %v1865_v7  ;;  %v1139_v6 = vld [vmem:[%s2386_s3 + $0x60] sm:$0xff] (!%p1307_p7)  ;;  %v1140_v7 = vld [vmem:[%s2386_s3 + $0x68] sm:$0xff] (!%p1307_p7) }
  0x97   : > { %1898 = vmatprep.subr.bf16.mxu1 %v1897_v10  ;;  %v1920_v8 = vpack.c.bf16 (!%p1307_p7), %v1140_v7, %v1139_v6  ;;  %v1308_v10 = vld [vmem:[%s2385_s2] ss:$0 sm:$0xff] (!%p1307_p7) }
  0x99   : > { %1868 = vmatpush3.bf16.msra.mxu0 %v1867_v13 }
  0x9a   : > { %1900 = vmatpush3.bf16.msra.mxu1 %v1899_v14  ;;  %1901 = vmatprep.subr.bf16.mxu0 (!%p1307_p7), %v1978_v53  ;;  %v1923_v14 = vpack.c.bf16 (!%p1307_p7), %v1142_v12, %v1141_v11 }
  0x9c   : > { %1036 = vmatmul.mubr.f32.vlgmr.msra.gmra.mrb[6].mxu0 %v291_v15 }
  0x9d   : > { %1106 = vmatmul.mubr.f32.vlgmr.msra.gmra.mrb[6].mxu1 %v293_v16  ;;  %1642 = vmatprep.mubr.msk.f32.mxu0 (!%p1307_p7), %vm1979_vm0, %v1980_v56  ;;  %v1309_v16 = vld [vmem:[%s2387_s4] ss:$0 sm:$0xff] (!%p1307_p7) }
  0x9e   : > { %1903 = vmatpush3.bf16.msra.mxu0 (!%p1307_p7), %v1902_v54 }
  0x9f   : > { %1904 = vmatprep.subr.bf16.mxu0 (!%p1307_p7), %v1978_v53 }
  0xa2   : > { %1906 = vmatpush3.bf16.msra.mxu0 (!%p1307_p7), %v1905_v57 }
  0xa3   : > { %1907 = vmatprep.subr.bf16.mxu0 (!%p1307_p7), %v1978_v53 }
  0xa6   : > { %1909 = vmatpush3.bf16.msra.mxu0 (!%p1307_p7), %v1908_v60 }
  0xa7   : > { %1910 = vmatprep.subr.bf16.mxu0 (!%p1307_p7), %v1978_v53 }
  0xaa   : > { %1912 = vmatpush3.bf16.msra.mxu0 (!%p1307_p7), %v1911_v63 }
  0xab   : > { %1913 = vmatprep.subr.bf16.mxu0 (!%p1307_p7), %v1978_v53 }
  0xae   : > { %1915 = vmatpush3.bf16.msra.mxu0 (!%p1307_p7), %v1914_v2 }
  0xaf   : > { %1916 = vmatprep.subr.bf16.mxu0 (!%p1307_p7), %v1978_v53 }
  0xb2   : > { %1918 = vmatpush3.bf16.msra.mxu0 (!%p1307_p7), %v1917_v5 }
  0xb3   : > { %1919 = vmatprep.subr.bf16.mxu0 (!%p1307_p7), %v1978_v53 }
  0xb6   : > { %1921 = vmatpush3.bf16.msra.mxu0 (!%p1307_p7), %v1920_v8 }
  0xb7   : > { %1922 = vmatprep.subr.bf16.mxu0 (!%p1307_p7), %v1978_v53 }
  0xba   : > { %1924 = vmatpush3.bf16.msra.mxu0 (!%p1307_p7), %v1923_v14 }
 0x10f   : > { %v1345_v17 = vpop.f32.mrb[0].mxu0 }
 0x110   : > { %v1380_v18 = vpop.f32.mrb[0].mxu1  ;;  %v1346_v19 = vpop.f32.mrb[1].mxu0 }
 0x111   : > { %v1347_v20 = vadd.f32 %v1346_v19, %v1345_v17  ;;  %v1381_v21 = vpop.f32.mrb[1].mxu1 }
 0x112   : > { %v1382_v22 = vadd.f32 %v1381_v21, %v1380_v18 }
 0x114   : > { %v688_v23 = vadd.f32 %v1382_v22, %v1347_v20 }
 0x12f   : > { %v1415_v24 = vpop.f32.mrb[2].mxu0 }
 0x130   : > { %v1416_v25 = vpop.f32.mrb[3].mxu0  ;;  %v1450_v26 = vpop.f32.mrb[2].mxu1 }
 0x131   : > { %v1417_v27 = vadd.f32 %v1416_v25, %v1415_v24  ;;  %v1451_v28 = vpop.f32.mrb[3].mxu1 }
 0x132   : > { %v1452_v29 = vadd.f32 %v1451_v28, %v1450_v26 }
 0x133   : > { %v758_v30 = vadd.f32 %v1417_v27, %v688_v23 }
 0x135   : > { %v828_v31 = vadd.f32 %v1452_v29, %v758_v30 }
 0x14f   : > { %v1485_v32 = vpop.f32.mrb[4].mxu0 }
 0x150   : > { %v1486_v33 = vpop.f32.mrb[5].mxu0  ;;  %v1520_v34 = vpop.f32.mrb[4].mxu1 }
 0x151   : > { %v1487_v35 = vadd.f32 %v1486_v33, %v1485_v32  ;;  %v1521_v36 = vpop.f32.mrb[5].mxu1 }
 0x152   : > { %v1522_v37 = vadd.f32 %v1521_v36, %v1520_v34 }
 0x153   : > { %v898_v38 = vadd.f32 %v1487_v35, %v828_v31 }
 0x155   : > { %v968_v39 = vadd.f32 %v1522_v37, %v898_v38 }
 0x16f   : > { %v1555_v40 = vpop.f32.mrb[6].mxu0 }
 0x170   : > { %v1556_v41 = vpop.f32.mrb[7].mxu0  ;;  %v1590_v42 = vpop.f32.mrb[6].mxu1 }
 0x171   : > { %v1557_v43 = vadd.f32 %v1556_v41, %v1555_v40  ;;  %v1591_v44 = vpop.f32.mrb[7].mxu1 }
 0x172   : > { %v1592_v45 = vadd.f32 %v1591_v44, %v1590_v42 }
 0x173   : > { %v1038_v46 = vadd.f32 %v1557_v43, %v968_v39  ;;  %1116 = sbr.rel (%p1307_p7) target bundleno = 604 (0x25c), region = 48 }
 0x175   : > { %v1108_v48 = vadd.f32 %v1592_v45, %v1038_v46 }
 0x177   : > { %v1111_v49 = vadd.f32 %v1108_v48, %v278_v47 }
 0x179   : > { %1112 = vst [vmem:[#allocation2] sm:$0xff] %v1111_v49 }
 0x180   : > { %v1117_v9 = vld [vmem:[#allocation2] sm:$0xff] }
 0x181   : > { %v1125_v13 = vadd.f32 %v1308_v10, %v1117_v9 }
 0x183   : > { %v1126_v15 = vmax.f32 %v1125_v13, 0.0 }
 0x185   : > { %1643 = vmatmul.mubr.f32.vlgmr.msra.gmra.mrb[0].mxu0 %v1126_v15 }
 0x258   : > { %v1216_v17 = vpop.f32.mrb[0].mxu0 }
 0x259   : > { %v1217_v18 = vadd.f32 %v1309_v16, %v1216_v17  ;;  %v1644_v19 = vpop.f32.mrb[1].mxu0 }
 0x25b   : > { %1220 = vst [vmem:[%s2388_s5] sm:$0xff] %v1217_v18 }
 0x25c PF: > { %s15_s20 = sadd.s32 1, %s1975_s20   ;;  %s2389_s18 = smov %s1971_s19 }
 0x25d   : > { %p12_p8 = scmp.ge.s32.totalorder %s15_s20, 19   ;;  %s2390_s19 = smov %s2392_s21 }
 0x25f   :  { %14 = sbr.rel (!%p12_p8) target bundleno = 2 (0x2), region = 81 }

</bundles_post_ra>
